<compile_context>
chip_gen: v7x
topology: tpu7x:2x2x1
jax: 0.10.0
libtpu: 0.0.40
codegen_flags: <defaults>
</compile_context>

<pallas_src>
import functools

import numpy as np
import jax
import jax.numpy as jnp
from jax import lax
from jax.experimental import pallas as pl
from jax.experimental.pallas import tpu as pltpu


# --------------------------- Pallas fused window-block kernel ---------------------------

def _make_block_kernel(num_heads, head_dim, tb, n_tok, mm_dtype, approx_recip, eps=1e-5):
    C = num_heads * head_dim
    rows = tb * n_tok
    f32 = jnp.float32

    def kernel(x_ref, nw_ref, nb_ref, wqkv_ref, bqkv_ref, wproj_ref, bproj_ref,
               bm_ref, o_ref):
        # ---- fused norm1 LayerNorm on the pre-norm (TB*N, C) slab (f32) -----------
        x = x_ref[...].reshape(rows, C)                       # pre-norm activations, f32
        mu = jnp.mean(x, axis=-1, keepdims=True)
        xc = x - mu
        var = jnp.mean(xc * xc, axis=-1, keepdims=True)
        xn = xc * lax.rsqrt(var + eps) * nw_ref[...] + nb_ref[...]

        # ---- QKV projection (scale folded into Q columns on host; one MXU matmul) --
        qkv = jnp.dot(xn.astype(mm_dtype), wqkv_ref[...], preferred_element_type=f32)
        qkv = (qkv + bqkv_ref[...]).astype(mm_dtype)          # (rows, 3C)

        wproj = wproj_ref[...]                                # (C, C), resident
        bm = bm_ref[...]                                      # (H, TB, N, N) fused bias+mask

        # ---- per-head attention + output-projection partial sums (kept in vregs) ---
        y = jnp.zeros((rows, C), f32)
        for h in range(num_heads):
            lo = h * head_dim
            q = qkv[:, lo:lo + head_dim].reshape(tb, n_tok, head_dim)
            k = qkv[:, C + lo:C + lo + head_dim].reshape(tb, n_tok, head_dim)
            v = qkv[:, 2 * C + lo:2 * C + lo + head_dim].reshape(tb, n_tok, head_dim)

            s = jnp.einsum('bnd,bmd->bnm', q, k, preferred_element_type=f32)
            s = s + bm[h]                                     # single fused bias+mask add

            s = s - jnp.max(s, axis=-1, keepdims=True)
            p = jnp.exp(s)
            p = p * pl.reciprocal(jnp.sum(p, axis=-1, keepdims=True),
                                  approx=approx_recip)

            ctx = jnp.einsum('bnm,bmd->bnd', p.astype(mm_dtype), v,
                             preferred_element_type=f32)      # (TB, N, hd)
            # head h's slice of the output projection, accumulated in vregs
            y = y + jnp.dot(ctx.reshape(rows, head_dim).astype(mm_dtype),
                            wproj[lo:lo + head_dim, :],
                            preferred_element_type=f32)

        # ---- bias + attention residual (pre-norm x already resident) + one store ---
        o_ref[...] = (x + y + bproj_ref[...]).reshape(tb, n_tok, C).astype(o_ref.dtype)

    return kernel


def _choose_window_block(num_windows, n_tok, n_masks, max_rows=1024):
    """Largest TB that divides B_, keeps the fused bias+mask blockable
    (nW % TB == 0 or TB % nW == 0), stays under max_rows rows per step, and
    prefers >= 4 grid steps (>= 2 per TensorCore on v7x), then >= 2, then any."""
    cands = [tb for tb in range(1, num_windows + 1)
             if num_windows % tb == 0
             and (n_masks % tb == 0 or tb % n_masks == 0)
             and tb * n_tok <= max_rows]
    if not cands:
        return 1
    for min_steps in (4, 2, 1):
        pool = [tb for tb in cands if num_windows // tb >= min_steps]
        if pool:
            return max(pool)
    return max(cands)


def window_block_pallas(xw, p, num_heads, *, use_bf16=True, approx_recip=True,
                        block_windows=None):
    """Fused  xw + WindowAttention(LayerNorm(xw))  on pre-norm windows.

    xw: (B_, N, C) pre-norm, already rolled + window-partitioned.
    p:  dict with norm1_w/b, attn_params=(wqkv,bqkv,wproj,bproj), rel_bias (H,N,N),
        attn_mask (nW,N,N).
    """
    B_, N, C = xw.shape
    head_dim = C // num_heads
    scale = head_dim ** -0.5
    mask = p['attn_mask']
    rel_bias = p['rel_bias']
    nW = mask.shape[0]
    assert B_ % nW == 0

    TB = block_windows or _choose_window_block(B_, N, nW)
    assert B_ % TB == 0 and (nW % TB == 0 or TB % nW == 0)

    mm_dtype = jnp.bfloat16 if use_bf16 else jnp.float32

    # ---- host-side prep ------------------------------------------------------------
    wqkv, bqkv, wproj, bproj = p['attn_params']
    qscale = jnp.concatenate([jnp.full((C,), scale, jnp.float32),
                              jnp.ones((2 * C,), jnp.float32)])
    wqkv_t = (wqkv.astype(jnp.float32).T * qscale[None, :]).astype(mm_dtype)   # (C, 3C)
    bqkv_s = (bqkv.astype(jnp.float32) * qscale).reshape(1, 3 * C)             # f32
    wproj_t = wproj.astype(jnp.float32).T.astype(mm_dtype)                     # (C, C)
    bproj_r = bproj.astype(jnp.float32).reshape(1, C)
    nw1 = p['norm1_w'].astype(jnp.float32).reshape(1, C)
    nb1 = p['norm1_b'].astype(jnp.float32).reshape(1, C)

    # pre-fused relative-position bias + shift mask: (H, nW, N, N)
    fused_bm = (rel_bias.astype(jnp.float32)[:, None, :, :]
                + mask.astype(jnp.float32)[None, :, :, :])
    if TB > nW:
        fused_bm = jnp.tile(fused_bm, (1, TB // nW, 1, 1))    # tiny; tiled once on host
        n_mask_blocks = 1
    else:
        n_mask_blocks = nW // TB

    kernel = _make_block_kernel(num_heads, head_dim, TB, N, mm_dtype, approx_recip)

    grid_spec = pltpu.PrefetchScalarGridSpec(
        num_scalar_prefetch=0,
        grid=(B_ // TB,),
        in_specs=[
            pl.BlockSpec((TB, N, C), lambda b: (b, 0, 0)),                     # pre-norm x
            pl.BlockSpec((1, C), lambda b: (0, 0)),                            # norm1 w
            pl.BlockSpec((1, C), lambda b: (0, 0)),                            # norm1 b
            pl.BlockSpec((C, 3 * C), lambda b: (0, 0)),                        # Wqkv^T (scaled)
            pl.BlockSpec((1, 3 * C), lambda b: (0, 0)),                        # bqkv (scaled)
            pl.BlockSpec((C, C), lambda b: (0, 0)),                            # Wproj^T
            pl.BlockSpec((1, C), lambda b: (0, 0)),                            # bproj
            pl.BlockSpec((num_heads, TB, N, N),
                         lambda b: (0, b % n_mask_blocks, 0, 0)),              # bias+mask
        ],
        out_specs=pl.BlockSpec((TB, N, C), lambda b: (b, 0, 0)),
    )
    return pl.pallas_call(
        kernel,
        out_shape=jax.ShapeDtypeStruct((B_, N, C), xw.dtype),
        grid_spec=grid_spec,
        compiler_params=pltpu.CompilerParams(dimension_semantics=("parallel",)),
    )(xw.astype(jnp.float32), nw1, nb1, wqkv_t, bqkv_s, wproj_t, bproj_r, fused_bm)


# ------------------------------ JAX reference window block ------------------------------

def window_attention_ref(x, params, rel_bias, num_heads, mask):
    B_, N, C = x.shape
    hd = C // num_heads
    scale = hd ** -0.5
    wqkv, bqkv, wproj, bproj = params
    qkv = x @ wqkv.T + bqkv
    qkv = qkv.reshape(B_, N, 3, num_heads, hd).transpose(2, 0, 3, 1, 4)
    q, k, v = qkv[0] * scale, qkv[1], qkv[2]
    attn = q @ jnp.swapaxes(k, -2, -1) + rel_bias[None]
    nW = mask.shape[0]
    attn = attn.reshape(B_ // nW, nW, num_heads, N, N) + mask[None, :, None]
    attn = attn.reshape(-1, num_heads, N, N)
    attn = jax.nn.softmax(attn, axis=-1)
    out = jnp.swapaxes(attn @ v, 1, 2).reshape(B_, N, C)
    return out @ wproj.T + bproj


def window_block_ref(xw, p, num_heads):
    xn = layer_norm(xw, p['norm1_w'], p['norm1_b'])
    return xw + window_attention_ref(xn, p['attn_params'], p['rel_bias'],
                                     num_heads, p['attn_mask'])


# ------------------------ Swin block surroundings (plain JAX) ------------------------

def layer_norm(x, w, b, eps=1e-5):
    mu = jnp.mean(x, axis=-1, keepdims=True)
    var = jnp.mean(jnp.square(x - mu), axis=-1, keepdims=True)
    return (x - mu) * lax.rsqrt(var + eps) * w + b


def depthwise_conv2d(x_nchw, w, b):
    out = lax.conv_general_dilated(
        x_nchw, w, window_strides=(1, 1), padding=((1, 1), (1, 1)),
        dimension_numbers=('NCHW', 'OIHW', 'NCHW'),
        feature_group_count=x_nchw.shape[1])
    return out + b[None, :, None, None]


def window_partition(x, ws):
    B, H, W, C = x.shape
    x = x.reshape(B, H // ws, ws, W // ws, ws, C)
    return jnp.transpose(x, (0, 1, 3, 2, 4, 5)).reshape(-1, ws, ws, C)


def window_reverse(wins, ws, H, W):
    B = wins.shape[0] // ((H // ws) * (W // ws))
    x = wins.reshape(B, H // ws, W // ws, ws, ws, -1)
    return jnp.transpose(x, (0, 1, 3, 2, 4, 5)).reshape(B, H, W, -1)


def build_relative_position_bias(table, window_size, num_heads):
    Wh, Ww = window_size
    coords = np.stack(np.meshgrid(np.arange(Wh), np.arange(Ww), indexing='ij'))
    cf = coords.reshape(2, -1)
    rel = cf[:, :, None] - cf[:, None, :]
    rel = rel.transpose(1, 2, 0).copy()
    rel[:, :, 0] += Wh - 1
    rel[:, :, 1] += Ww - 1
    rel[:, :, 0] *= 2 * Ww - 1
    idx = rel.sum(-1)
    N = Wh * Ww
    bias = table[jnp.asarray(idx.reshape(-1))].reshape(N, N, num_heads)
    return jnp.transpose(bias, (2, 0, 1)).astype(jnp.float32)


def calculate_mask(x_size, window_size, shift_size):
    """Mirrors SwinAttention.calculate_mask (incl. the shift_size=0 degenerate case)."""
    H, W = x_size
    img = np.zeros((1, H, W, 1), dtype=np.float32)
    slices = (slice(0, -window_size),
              slice(-window_size, -shift_size),
              slice(-shift_size, None))
    cnt = 0
    for hs in slices:
        for ws_ in slices:
            img[:, hs, ws_, :] = cnt
            cnt += 1
    mw = img.reshape(1, H // window_size, window_size, W // window_size, window_size, 1)
    mw = mw.transpose(0, 1, 3, 2, 4, 5).reshape(-1, window_size * window_size)
    am = mw[:, None, :] - mw[:, :, None]
    am = np.where(am != 0, -100.0, 0.0).astype(np.float32)
    return jnp.asarray(am)


def swin_attention_forward(x, x_size, p, *, window_size, shift_size, num_heads,
                           block_impl):
    """Full SwinAttention.forward.  The (shifted) window attention branch, including
    norm1 and its residual, is handled by `block_impl` on the pre-norm windows
    (LayerNorm commutes with roll / window_partition, which are token permutations)."""
    H, W = x_size
    B, L, C = x.shape

    h = x.reshape(B, H, W, C)
    if shift_size > 0:
        h = jnp.roll(h, shift=(-shift_size, -shift_size), axis=(1, 2))
    xw = window_partition(h, window_size).reshape(-1, window_size * window_size, C)

    yw = block_impl(xw, p, num_heads)            # xw + attn(LN(xw))  (residual fused)

    yw = yw.reshape(-1, window_size, window_size, C)
    h = window_reverse(yw, window_size, H, W)
    if shift_size > 0:
        h = jnp.roll(h, shift=(shift_size, shift_size), axis=(1, 2))
    x = h.reshape(B, H * W, C)                   # == shortcut + attention branch

    xi = x.reshape(B, H, W, C)
    n2 = layer_norm(xi, p['norm2_w'], p['norm2_b'])
    branch = jnp.transpose(xi, (0, 3, 1, 2)) + depthwise_conv2d(
        jnp.transpose(n2, (0, 3, 1, 2)), p['dw_w'], p['dw_b'])
    return jnp.transpose(branch, (0, 2, 3, 1)).reshape(B, H * W, C)


# --------------------------------------- main ---------------------------------------

if __name__ == "__main__":
    dim = 128               # channel dim (lane multiple -> lane-dense loads/stores)
    num_heads = 4
    window_size = 4
    H = W = 16
    B = 2
    N = window_size * window_size     # 16 tokens per window
    L = H * W                          # 256 tokens -> 32 windows total

    key = jax.random.PRNGKey(0)
    ks = jax.random.split(key, 12)
    x = jax.random.normal(ks[0], (B, L, dim), dtype=jnp.float32)

    table = 0.02 * jax.random.normal(
        ks[1], ((2 * window_size - 1) ** 2, num_heads), dtype=jnp.float32)
    wqkv = 0.05 * jax.random.normal(ks[2], (3 * dim, dim), dtype=jnp.float32)
    bqkv = 0.05 * jax.random.normal(ks[3], (3 * dim,), dtype=jnp.float32)
    wproj = 0.05 * jax.random.normal(ks[4], (dim, dim), dtype=jnp.float32)
    bproj = 0.05 * jax.random.normal(ks[5], (dim,), dtype=jnp.float32)
    norm1_w = 1.0 + 0.1 * jax.random.normal(ks[6], (dim,), dtype=jnp.float32)
    norm1_b = 0.1 * jax.random.normal(ks[7], (dim,), dtype=jnp.float32)
    norm2_w = 1.0 + 0.1 * jax.random.normal(ks[8], (dim,), dtype=jnp.float32)
    norm2_b = 0.1 * jax.random.normal(ks[9], (dim,), dtype=jnp.float32)
    dw_w = 0.1 * jax.random.normal(ks[10], (dim, 1, 3, 3), dtype=jnp.float32)
    dw_b = 0.1 * jax.random.normal(ks[11], (dim,), dtype=jnp.float32)

    rel_bias = build_relative_position_bias(table, (window_size, window_size), num_heads)
    attn_params = (wqkv, bqkv, wproj, bproj)

    def make_params(shift_size):
        return dict(norm1_w=norm1_w, norm1_b=norm1_b,
                    norm2_w=norm2_w, norm2_b=norm2_b,
                    dw_w=dw_w, dw_b=dw_b,
                    attn_params=attn_params, rel_bias=rel_bias,
                    attn_mask=calculate_mask((H, W), window_size, shift_size))

    # f32 / exact-reciprocal kernel vs pure-JAX reference (non-shifted and shifted).
    attn_f32 = functools.partial(window_block_pallas,
                                 use_bf16=False, approx_recip=False)
    for shift_size in (0, window_size // 2):
        p = make_params(shift_size)
        out = swin_attention_forward(
            x, (H, W), p, window_size=window_size, shift_size=shift_size,
            num_heads=num_heads, block_impl=attn_f32)
        out = jax.block_until_ready(out)
        ref = swin_attention_forward(
            x, (H, W), p, window_size=window_size, shift_size=shift_size,
            num_heads=num_heads, block_impl=window_block_ref)
        np.testing.assert_allclose(np.asarray(out), np.asarray(ref),
                                   rtol=1e-3, atol=1e-3)

    # Default configuration (bf16 MXU operands + approx EUP reciprocal, f32 accumulation
    # and f32 LayerNorm/softmax math) -- validated against the f32 reference, relaxed tol.
    shift_size = window_size // 2
    p = make_params(shift_size)
    out_def = swin_attention_forward(
        x, (H, W), p, window_size=window_size, shift_size=shift_size,
        num_heads=num_heads, block_impl=window_block_pallas)
    out_def = jax.block_until_ready(out_def)
    ref = swin_attention_forward(
        x, (H, W), p, window_size=window_size, shift_size=shift_size,
        num_heads=num_heads, block_impl=window_block_ref)
    np.testing.assert_allclose(np.asarray(out_def), np.asarray(ref),
                               rtol=5e-2, atol=5e-2)

    print("KERNEL_OK")
</pallas_src>

<mosaic_0001>
module attributes {stable_mosaic.version = 11 : i64} {
  func.func @kernel(%arg0: i32, %arg1: memref<8x16x128xf32, #tpu.memory_space<vmem>>, %arg2: memref<1x128xf32, #tpu.memory_space<vmem>>, %arg3: memref<1x128xf32, #tpu.memory_space<vmem>>, %arg4: memref<128x384xf32, #tpu.memory_space<vmem>>, %arg5: memref<1x384xf32, #tpu.memory_space<vmem>>, %arg6: memref<128x128xf32, #tpu.memory_space<vmem>>, %arg7: memref<1x128xf32, #tpu.memory_space<vmem>>, %arg8: memref<4x8x16x16xf32, #tpu.memory_space<vmem>>, %arg9: memref<8x16x128xf32, #tpu.memory_space<vmem>>) attributes {dimension_semantics = [#tpu.dimension_semantics<parallel>], iteration_bounds = array<i64: 4>, scalar_prefetch = 0 : i64, scratch_operands = 0 : i64, tpu.core_type = #tpu.core_type<tc>, window_params = [{transform_indices = @transform_0, window_bounds = array<i64: 8, 16, 128>}, {pipeline_mode = #tpu.pipeline_mode<synchronous>, transform_indices = @transform_1, window_bounds = array<i64: 1, 128>}, {pipeline_mode = #tpu.pipeline_mode<synchronous>, transform_indices = @transform_2, window_bounds = array<i64: 1, 128>}, {pipeline_mode = #tpu.pipeline_mode<synchronous>, transform_indices = @transform_3, window_bounds = array<i64: 128, 384>}, {pipeline_mode = #tpu.pipeline_mode<synchronous>, transform_indices = @transform_4, window_bounds = array<i64: 1, 384>}, {pipeline_mode = #tpu.pipeline_mode<synchronous>, transform_indices = @transform_5, window_bounds = array<i64: 128, 128>}, {pipeline_mode = #tpu.pipeline_mode<synchronous>, transform_indices = @transform_6, window_bounds = array<i64: 1, 128>}, {transform_indices = @transform_7, window_bounds = array<i64: 4, 8, 16, 16>}, {transform_indices = @transform_8, window_bounds = array<i64: 8, 16, 128>}]} {
    %c0 = arith.constant 0 : index
    %c0_0 = arith.constant 0 : index
    %c0_1 = arith.constant 0 : index
    %0 = vector.load %arg1[%c0, %c0_0, %c0_1] : memref<8x16x128xf32, #tpu.memory_space<vmem>>, vector<8x16x128xf32>
    %1 = vector.shape_cast %0 : vector<8x16x128xf32> to vector<128x128xf32>
    %cst = arith.constant dense<0.000000e+00> : vector<128xf32>
    %2 = vector.multi_reduction <add>, %1, %cst [1] : vector<128x128xf32> to vector<128xf32>
    %3 = vector.shape_cast %2 : vector<128xf32> to vector<128x1xf32>
    %cst_2 = arith.constant 1.280000e+02 : f32
    %4 = vector.broadcast %cst_2 : f32 to vector<128x1xf32>
    %5 = arith.divf %3, %4 : vector<128x1xf32>
    %6 = vector.broadcast %5 : vector<128x1xf32> to vector<128x128xf32>
    %7 = arith.subf %1, %6 : vector<128x128xf32>
    %8 = arith.mulf %7, %7 : vector<128x128xf32>
    %cst_3 = arith.constant dense<0.000000e+00> : vector<128xf32>
    %9 = vector.multi_reduction <add>, %8, %cst_3 [1] : vector<128x128xf32> to vector<128xf32>
    %10 = vector.shape_cast %9 : vector<128xf32> to vector<128x1xf32>
    %cst_4 = arith.constant 1.280000e+02 : f32
    %11 = vector.broadcast %cst_4 : f32 to vector<128x1xf32>
    %12 = arith.divf %10, %11 : vector<128x1xf32>
    %cst_5 = arith.constant 9.99999974E-6 : f32
    %13 = vector.broadcast %cst_5 : f32 to vector<128x1xf32>
    %14 = arith.addf %12, %13 : vector<128x1xf32>
    %15 = math.rsqrt %14 : vector<128x1xf32>
    %16 = vector.broadcast %15 : vector<128x1xf32> to vector<128x128xf32>
    %17 = arith.mulf %7, %16 : vector<128x128xf32>
    %c0_6 = arith.constant 0 : index
    %c0_7 = arith.constant 0 : index
    %18 = vector.load %arg2[%c0_6, %c0_7] : memref<1x128xf32, #tpu.memory_space<vmem>>, vector<1x128xf32>
    %19 = vector.broadcast %18 : vector<1x128xf32> to vector<128x128xf32>
    %20 = arith.mulf %17, %19 : vector<128x128xf32>
    %c0_8 = arith.constant 0 : index
    %c0_9 = arith.constant 0 : index
    %21 = vector.load %arg3[%c0_8, %c0_9] : memref<1x128xf32, #tpu.memory_space<vmem>>, vector<1x128xf32>
    %22 = vector.broadcast %21 : vector<1x128xf32> to vector<128x128xf32>
    %23 = arith.addf %20, %22 : vector<128x128xf32>
    %c0_10 = arith.constant 0 : index
    %c0_11 = arith.constant 0 : index
    %24 = vector.load %arg4[%c0_10, %c0_11] : memref<128x384xf32, #tpu.memory_space<vmem>>, vector<128x384xf32>
    %cst_12 = arith.constant dense<0.000000e+00> : vector<128x384xf32>
    %25 = tpu.matmul %23, %24, %cst_12 {dimension_numbers = #tpu.dot_dimension_numbers<[1], [0], [0], [1], [0, 0, 1, 1], [], []>} : vector<128x128xf32>, vector<128x384xf32>, vector<128x384xf32> -> vector<128x384xf32>
    %c0_13 = arith.constant 0 : index
    %c0_14 = arith.constant 0 : index
    %26 = vector.load %arg5[%c0_13, %c0_14] : memref<1x384xf32, #tpu.memory_space<vmem>>, vector<1x384xf32>
    %27 = vector.broadcast %26 : vector<1x384xf32> to vector<128x384xf32>
    %28 = arith.addf %25, %27 : vector<128x384xf32>
    %c0_15 = arith.constant 0 : index
    %c0_16 = arith.constant 0 : index
    %29 = vector.load %arg6[%c0_15, %c0_16] : memref<128x128xf32, #tpu.memory_space<vmem>>, vector<128x128xf32>
    %c0_17 = arith.constant 0 : index
    %c0_18 = arith.constant 0 : index
    %c0_19 = arith.constant 0 : index
    %c0_20 = arith.constant 0 : index
    %30 = vector.load %arg8[%c0_17, %c0_18, %c0_19, %c0_20] : memref<4x8x16x16xf32, #tpu.memory_space<vmem>>, vector<4x8x16x16xf32>
    %cst_21 = arith.constant 0.000000e+00 : f32
    %31 = vector.broadcast %cst_21 : f32 to vector<128x128xf32>
    %32 = vector.extract_strided_slice %28 {offsets = [0, 0], sizes = [128, 32], strides = [1, 1]} : vector<128x384xf32> to vector<128x32xf32>
    %33 = vector.shape_cast %32 : vector<128x32xf32> to vector<8x16x32xf32>
    %34 = vector.extract_strided_slice %28 {offsets = [0, 128], sizes = [128, 32], strides = [1, 1]} : vector<128x384xf32> to vector<128x32xf32>
    %35 = vector.shape_cast %34 : vector<128x32xf32> to vector<8x16x32xf32>
    %36 = vector.extract_strided_slice %28 {offsets = [0, 256], sizes = [128, 32], strides = [1, 1]} : vector<128x384xf32> to vector<128x32xf32>
    %37 = vector.shape_cast %36 : vector<128x32xf32> to vector<8x16x32xf32>
    "tpu.trace_start"() <{level = 10 : i32, message = "bnd,bmd->bnm"}> : () -> ()
    %cst_22 = arith.constant dense<0.000000e+00> : vector<8x16x16xf32>
    %38 = tpu.matmul %33, %35, %cst_22 {dimension_numbers = #tpu.dot_dimension_numbers<[2], [2], [1], [1], [0, 0, 0, 1, 1, 1], [0], [0]>} : vector<8x16x32xf32>, vector<8x16x32xf32>, vector<8x16x16xf32> -> vector<8x16x16xf32>
    "tpu.trace_stop"() : () -> ()
    %39 = vector.extract_strided_slice %30 {offsets = [0, 0, 0, 0], sizes = [1, 8, 16, 16], strides = [1, 1, 1, 1]} : vector<4x8x16x16xf32> to vector<1x8x16x16xf32>
    %40 = vector.shape_cast %39 : vector<1x8x16x16xf32> to vector<8x16x16xf32>
    %41 = arith.addf %38, %40 : vector<8x16x16xf32>
    %cst_23 = arith.constant dense<0xFF800000> : vector<8x16xf32>
    %42 = vector.multi_reduction <maximumf>, %41, %cst_23 [2] : vector<8x16x16xf32> to vector<8x16xf32>
    %43 = vector.shape_cast %42 : vector<8x16xf32> to vector<8x16x1xf32>
    %44 = vector.broadcast %43 : vector<8x16x1xf32> to vector<8x16x16xf32>
    %45 = arith.subf %41, %44 : vector<8x16x16xf32>
    %46 = math.exp %45 : vector<8x16x16xf32>
    %cst_24 = arith.constant dense<0.000000e+00> : vector<8x16xf32>
    %47 = vector.multi_reduction <add>, %46, %cst_24 [2] : vector<8x16x16xf32> to vector<8x16xf32>
    %48 = vector.shape_cast %47 : vector<8x16xf32> to vector<8x16x1xf32>
    %49 = tpu.reciprocal %48 : vector<8x16x1xf32> -> vector<8x16x1xf32>
    %50 = vector.broadcast %49 : vector<8x16x1xf32> to vector<8x16x16xf32>
    %51 = arith.mulf %46, %50 : vector<8x16x16xf32>
    "tpu.trace_start"() <{level = 10 : i32, message = "bnm,bmd->bnd"}> : () -> ()
    %cst_25 = arith.constant dense<0.000000e+00> : vector<8x16x32xf32>
    %52 = tpu.matmul %51, %37, %cst_25 {dimension_numbers = #tpu.dot_dimension_numbers<[2], [1], [1], [2], [0, 0, 0, 1, 1, 2], [0], [0]>} : vector<8x16x16xf32>, vector<8x16x32xf32>, vector<8x16x32xf32> -> vector<8x16x32xf32>
    "tpu.trace_stop"() : () -> ()
    %53 = vector.shape_cast %52 : vector<8x16x32xf32> to vector<128x32xf32>
    %54 = vector.extract_strided_slice %29 {offsets = [0, 0], sizes = [32, 128], strides = [1, 1]} : vector<128x128xf32> to vector<32x128xf32>
    %cst_26 = arith.constant dense<0.000000e+00> : vector<128x128xf32>
    %55 = tpu.matmul %53, %54, %cst_26 {dimension_numbers = #tpu.dot_dimension_numbers<[1], [0], [0], [1], [0, 0, 1, 1], [], []>} : vector<128x32xf32>, vector<32x128xf32>, vector<128x128xf32> -> vector<128x128xf32>
    %56 = arith.addf %31, %55 : vector<128x128xf32>
    %57 = vector.extract_strided_slice %28 {offsets = [0, 32], sizes = [128, 32], strides = [1, 1]} : vector<128x384xf32> to vector<128x32xf32>
    %58 = vector.shape_cast %57 : vector<128x32xf32> to vector<8x16x32xf32>
    %59 = vector.extract_strided_slice %28 {offsets = [0, 160], sizes = [128, 32], strides = [1, 1]} : vector<128x384xf32> to vector<128x32xf32>
    %60 = vector.shape_cast %59 : vector<128x32xf32> to vector<8x16x32xf32>
    %61 = vector.extract_strided_slice %28 {offsets = [0, 288], sizes = [128, 32], strides = [1, 1]} : vector<128x384xf32> to vector<128x32xf32>
    %62 = vector.shape_cast %61 : vector<128x32xf32> to vector<8x16x32xf32>
    "tpu.trace_start"() <{level = 10 : i32, message = "bnd,bmd->bnm"}> : () -> ()
    %cst_27 = arith.constant dense<0.000000e+00> : vector<8x16x16xf32>
    %63 = tpu.matmul %58, %60, %cst_27 {dimension_numbers = #tpu.dot_dimension_numbers<[2], [2], [1], [1], [0, 0, 0, 1, 1, 1], [0], [0]>} : vector<8x16x32xf32>, vector<8x16x32xf32>, vector<8x16x16xf32> -> vector<8x16x16xf32>
    "tpu.trace_stop"() : () -> ()
    %64 = vector.extract_strided_slice %30 {offsets = [1, 0, 0, 0], sizes = [1, 8, 16, 16], strides = [1, 1, 1, 1]} : vector<4x8x16x16xf32> to vector<1x8x16x16xf32>
    %65 = vector.shape_cast %64 : vector<1x8x16x16xf32> to vector<8x16x16xf32>
    %66 = arith.addf %63, %65 : vector<8x16x16xf32>
    %cst_28 = arith.constant dense<0xFF800000> : vector<8x16xf32>
    %67 = vector.multi_reduction <maximumf>, %66, %cst_28 [2] : vector<8x16x16xf32> to vector<8x16xf32>
    %68 = vector.shape_cast %67 : vector<8x16xf32> to vector<8x16x1xf32>
    %69 = vector.broadcast %68 : vector<8x16x1xf32> to vector<8x16x16xf32>
    %70 = arith.subf %66, %69 : vector<8x16x16xf32>
    %71 = math.exp %70 : vector<8x16x16xf32>
    %cst_29 = arith.constant dense<0.000000e+00> : vector<8x16xf32>
    %72 = vector.multi_reduction <add>, %71, %cst_29 [2] : vector<8x16x16xf32> to vector<8x16xf32>
    %73 = vector.shape_cast %72 : vector<8x16xf32> to vector<8x16x1xf32>
    %74 = tpu.reciprocal %73 : vector<8x16x1xf32> -> vector<8x16x1xf32>
    %75 = vector.broadcast %74 : vector<8x16x1xf32> to vector<8x16x16xf32>
    %76 = arith.mulf %71, %75 : vector<8x16x16xf32>
    "tpu.trace_start"() <{level = 10 : i32, message = "bnm,bmd->bnd"}> : () -> ()
    %cst_30 = arith.constant dense<0.000000e+00> : vector<8x16x32xf32>
    %77 = tpu.matmul %76, %62, %cst_30 {dimension_numbers = #tpu.dot_dimension_numbers<[2], [1], [1], [2], [0, 0, 0, 1, 1, 2], [0], [0]>} : vector<8x16x16xf32>, vector<8x16x32xf32>, vector<8x16x32xf32> -> vector<8x16x32xf32>
    "tpu.trace_stop"() : () -> ()
    %78 = vector.shape_cast %77 : vector<8x16x32xf32> to vector<128x32xf32>
    %79 = vector.extract_strided_slice %29 {offsets = [32, 0], sizes = [32, 128], strides = [1, 1]} : vector<128x128xf32> to vector<32x128xf32>
    %cst_31 = arith.constant dense<0.000000e+00> : vector<128x128xf32>
    %80 = tpu.matmul %78, %79, %cst_31 {dimension_numbers = #tpu.dot_dimension_numbers<[1], [0], [0], [1], [0, 0, 1, 1], [], []>} : vector<128x32xf32>, vector<32x128xf32>, vector<128x128xf32> -> vector<128x128xf32>
    %81 = arith.addf %56, %80 : vector<128x128xf32>
    %82 = vector.extract_strided_slice %28 {offsets = [0, 64], sizes = [128, 32], strides = [1, 1]} : vector<128x384xf32> to vector<128x32xf32>
    %83 = vector.shape_cast %82 : vector<128x32xf32> to vector<8x16x32xf32>
    %84 = vector.extract_strided_slice %28 {offsets = [0, 192], sizes = [128, 32], strides = [1, 1]} : vector<128x384xf32> to vector<128x32xf32>
    %85 = vector.shape_cast %84 : vector<128x32xf32> to vector<8x16x32xf32>
    %86 = vector.extract_strided_slice %28 {offsets = [0, 320], sizes = [128, 32], strides = [1, 1]} : vector<128x384xf32> to vector<128x32xf32>
    %87 = vector.shape_cast %86 : vector<128x32xf32> to vector<8x16x32xf32>
    "tpu.trace_start"() <{level = 10 : i32, message = "bnd,bmd->bnm"}> : () -> ()
    %cst_32 = arith.constant dense<0.000000e+00> : vector<8x16x16xf32>
    %88 = tpu.matmul %83, %85, %cst_32 {dimension_numbers = #tpu.dot_dimension_numbers<[2], [2], [1], [1], [0, 0, 0, 1, 1, 1], [0], [0]>} : vector<8x16x32xf32>, vector<8x16x32xf32>, vector<8x16x16xf32> -> vector<8x16x16xf32>
    "tpu.trace_stop"() : () -> ()
    %89 = vector.extract_strided_slice %30 {offsets = [2, 0, 0, 0], sizes = [1, 8, 16, 16], strides = [1, 1, 1, 1]} : vector<4x8x16x16xf32> to vector<1x8x16x16xf32>
    %90 = vector.shape_cast %89 : vector<1x8x16x16xf32> to vector<8x16x16xf32>
    %91 = arith.addf %88, %90 : vector<8x16x16xf32>
    %cst_33 = arith.constant dense<0xFF800000> : vector<8x16xf32>
    %92 = vector.multi_reduction <maximumf>, %91, %cst_33 [2] : vector<8x16x16xf32> to vector<8x16xf32>
    %93 = vector.shape_cast %92 : vector<8x16xf32> to vector<8x16x1xf32>
    %94 = vector.broadcast %93 : vector<8x16x1xf32> to vector<8x16x16xf32>
    %95 = arith.subf %91, %94 : vector<8x16x16xf32>
    %96 = math.exp %95 : vector<8x16x16xf32>
    %cst_34 = arith.constant dense<0.000000e+00> : vector<8x16xf32>
    %97 = vector.multi_reduction <add>, %96, %cst_34 [2] : vector<8x16x16xf32> to vector<8x16xf32>
    %98 = vector.shape_cast %97 : vector<8x16xf32> to vector<8x16x1xf32>
    %99 = tpu.reciprocal %98 : vector<8x16x1xf32> -> vector<8x16x1xf32>
    %100 = vector.broadcast %99 : vector<8x16x1xf32> to vector<8x16x16xf32>
    %101 = arith.mulf %96, %100 : vector<8x16x16xf32>
    "tpu.trace_start"() <{level = 10 : i32, message = "bnm,bmd->bnd"}> : () -> ()
    %cst_35 = arith.constant dense<0.000000e+00> : vector<8x16x32xf32>
    %102 = tpu.matmul %101, %87, %cst_35 {dimension_numbers = #tpu.dot_dimension_numbers<[2], [1], [1], [2], [0, 0, 0, 1, 1, 2], [0], [0]>} : vector<8x16x16xf32>, vector<8x16x32xf32>, vector<8x16x32xf32> -> vector<8x16x32xf32>
    "tpu.trace_stop"() : () -> ()
    %103 = vector.shape_cast %102 : vector<8x16x32xf32> to vector<128x32xf32>
    %104 = vector.extract_strided_slice %29 {offsets = [64, 0], sizes = [32, 128], strides = [1, 1]} : vector<128x128xf32> to vector<32x128xf32>
    %cst_36 = arith.constant dense<0.000000e+00> : vector<128x128xf32>
    %105 = tpu.matmul %103, %104, %cst_36 {dimension_numbers = #tpu.dot_dimension_numbers<[1], [0], [0], [1], [0, 0, 1, 1], [], []>} : vector<128x32xf32>, vector<32x128xf32>, vector<128x128xf32> -> vector<128x128xf32>
    %106 = arith.addf %81, %105 : vector<128x128xf32>
    %107 = vector.extract_strided_slice %28 {offsets = [0, 96], sizes = [128, 32], strides = [1, 1]} : vector<128x384xf32> to vector<128x32xf32>
    %108 = vector.shape_cast %107 : vector<128x32xf32> to vector<8x16x32xf32>
    %109 = vector.extract_strided_slice %28 {offsets = [0, 224], sizes = [128, 32], strides = [1, 1]} : vector<128x384xf32> to vector<128x32xf32>
    %110 = vector.shape_cast %109 : vector<128x32xf32> to vector<8x16x32xf32>
    %111 = vector.extract_strided_slice %28 {offsets = [0, 352], sizes = [128, 32], strides = [1, 1]} : vector<128x384xf32> to vector<128x32xf32>
    %112 = vector.shape_cast %111 : vector<128x32xf32> to vector<8x16x32xf32>
    "tpu.trace_start"() <{level = 10 : i32, message = "bnd,bmd->bnm"}> : () -> ()
    %cst_37 = arith.constant dense<0.000000e+00> : vector<8x16x16xf32>
    %113 = tpu.matmul %108, %110, %cst_37 {dimension_numbers = #tpu.dot_dimension_numbers<[2], [2], [1], [1], [0, 0, 0, 1, 1, 1], [0], [0]>} : vector<8x16x32xf32>, vector<8x16x32xf32>, vector<8x16x16xf32> -> vector<8x16x16xf32>
    "tpu.trace_stop"() : () -> ()
    %114 = vector.extract_strided_slice %30 {offsets = [3, 0, 0, 0], sizes = [1, 8, 16, 16], strides = [1, 1, 1, 1]} : vector<4x8x16x16xf32> to vector<1x8x16x16xf32>
    %115 = vector.shape_cast %114 : vector<1x8x16x16xf32> to vector<8x16x16xf32>
    %116 = arith.addf %113, %115 : vector<8x16x16xf32>
    %cst_38 = arith.constant dense<0xFF800000> : vector<8x16xf32>
    %117 = vector.multi_reduction <maximumf>, %116, %cst_38 [2] : vector<8x16x16xf32> to vector<8x16xf32>
    %118 = vector.shape_cast %117 : vector<8x16xf32> to vector<8x16x1xf32>
    %119 = vector.broadcast %118 : vector<8x16x1xf32> to vector<8x16x16xf32>
    %120 = arith.subf %116, %119 : vector<8x16x16xf32>
    %121 = math.exp %120 : vector<8x16x16xf32>
    %cst_39 = arith.constant dense<0.000000e+00> : vector<8x16xf32>
    %122 = vector.multi_reduction <add>, %121, %cst_39 [2] : vector<8x16x16xf32> to vector<8x16xf32>
    %123 = vector.shape_cast %122 : vector<8x16xf32> to vector<8x16x1xf32>
    %124 = tpu.reciprocal %123 : vector<8x16x1xf32> -> vector<8x16x1xf32>
    %125 = vector.broadcast %124 : vector<8x16x1xf32> to vector<8x16x16xf32>
    %126 = arith.mulf %121, %125 : vector<8x16x16xf32>
    "tpu.trace_start"() <{level = 10 : i32, message = "bnm,bmd->bnd"}> : () -> ()
    %cst_40 = arith.constant dense<0.000000e+00> : vector<8x16x32xf32>
    %127 = tpu.matmul %126, %112, %cst_40 {dimension_numbers = #tpu.dot_dimension_numbers<[2], [1], [1], [2], [0, 0, 0, 1, 1, 2], [0], [0]>} : vector<8x16x16xf32>, vector<8x16x32xf32>, vector<8x16x32xf32> -> vector<8x16x32xf32>
    "tpu.trace_stop"() : () -> ()
    %128 = vector.shape_cast %127 : vector<8x16x32xf32> to vector<128x32xf32>
    %129 = vector.extract_strided_slice %29 {offsets = [96, 0], sizes = [32, 128], strides = [1, 1]} : vector<128x128xf32> to vector<32x128xf32>
    %cst_41 = arith.constant dense<0.000000e+00> : vector<128x128xf32>
    %130 = tpu.matmul %128, %129, %cst_41 {dimension_numbers = #tpu.dot_dimension_numbers<[1], [0], [0], [1], [0, 0, 1, 1], [], []>} : vector<128x32xf32>, vector<32x128xf32>, vector<128x128xf32> -> vector<128x128xf32>
    %131 = arith.addf %106, %130 : vector<128x128xf32>
    %132 = arith.addf %1, %131 : vector<128x128xf32>
    %c0_42 = arith.constant 0 : index
    %c0_43 = arith.constant 0 : index
    %133 = vector.load %arg7[%c0_42, %c0_43] : memref<1x128xf32, #tpu.memory_space<vmem>>, vector<1x128xf32>
    %134 = vector.broadcast %133 : vector<1x128xf32> to vector<128x128xf32>
    %135 = arith.addf %132, %134 : vector<128x128xf32>
    %136 = vector.shape_cast %135 : vector<128x128xf32> to vector<8x16x128xf32>
    %c0_44 = arith.constant 0 : index
    %c0_45 = arith.constant 0 : index
    %c0_46 = arith.constant 0 : index
    %137 = vector.load %arg9[%c0_44, %c0_45, %c0_46] : memref<8x16x128xf32, #tpu.memory_space<vmem>>, vector<8x16x128xf32>
    tpu.vector_store %arg9[%c0_44, %c0_45, %c0_46], %136 {strides = array<i32>} : memref<8x16x128xf32, #tpu.memory_space<vmem>>, vector<8x16x128xf32>,
    return
  }
  func.func @transform_0(%arg0: i32) -> (i32, i32, i32) {
    %c0_i32 = arith.constant 0 : i32
    %c0_i32_0 = arith.constant 0 : i32
    %c0_i32_1 = arith.constant 0 : i32
    return %arg0, %c0_i32, %c0_i32_0 : i32, i32, i32
  }
  func.func @transform_1(%arg0: i32) -> (i32, i32) {
    %c0_i32 = arith.constant 0 : i32
    %c0_i32_0 = arith.constant 0 : i32
    %c0_i32_1 = arith.constant 0 : i32
    return %c0_i32, %c0_i32_0 : i32, i32
  }
  func.func @transform_2(%arg0: i32) -> (i32, i32) {
    %c0_i32 = arith.constant 0 : i32
    %c0_i32_0 = arith.constant 0 : i32
    %c0_i32_1 = arith.constant 0 : i32
    return %c0_i32, %c0_i32_0 : i32, i32
  }
  func.func @transform_3(%arg0: i32) -> (i32, i32) {
    %c0_i32 = arith.constant 0 : i32
    %c0_i32_0 = arith.constant 0 : i32
    %c0_i32_1 = arith.constant 0 : i32
    return %c0_i32, %c0_i32_0 : i32, i32
  }
  func.func @transform_4(%arg0: i32) -> (i32, i32) {
    %c0_i32 = arith.constant 0 : i32
    %c0_i32_0 = arith.constant 0 : i32
    %c0_i32_1 = arith.constant 0 : i32
    return %c0_i32, %c0_i32_0 : i32, i32
  }
  func.func @transform_5(%arg0: i32) -> (i32, i32) {
    %c0_i32 = arith.constant 0 : i32
    %c0_i32_0 = arith.constant 0 : i32
    %c0_i32_1 = arith.constant 0 : i32
    return %c0_i32, %c0_i32_0 : i32, i32
  }
  func.func @transform_6(%arg0: i32) -> (i32, i32) {
    %c0_i32 = arith.constant 0 : i32
    %c0_i32_0 = arith.constant 0 : i32
    %c0_i32_1 = arith.constant 0 : i32
    return %c0_i32, %c0_i32_0 : i32, i32
  }
  func.func @transform_7(%arg0: i32) -> (i32, i32, i32, i32) {
    %c2_i32 = arith.constant 2 : i32
    %c0_i32 = arith.constant 0 : i32
    %0 = arith.cmpi eq, %c2_i32, %c0_i32 : i32
    %c1_i32 = arith.constant 1 : i32
    %1 = arith.select %0, %c1_i32, %c2_i32 : i32
    %2 = arith.remsi %arg0, %1 : i32
    %c0_i32_0 = arith.constant 0 : i32
    %3 = arith.cmpi ne, %2, %c0_i32_0 : i32
    %c0_i32_1 = arith.constant 0 : i32
    %4 = arith.cmpi slt, %2, %c0_i32_1 : i32
    %c0_i32_2 = arith.constant 0 : i32
    %5 = arith.cmpi slt, %1, %c0_i32_2 : i32
    %6 = arith.xori %4, %5 : i1
    %7 = arith.andi %6, %3 : i1
    %8 = arith.addi %2, %1 : i32
    %9 = arith.select %7, %8, %2 : i32
    %c0_i32_3 = arith.constant 0 : i32
    %c0_i32_4 = arith.constant 0 : i32
    %c0_i32_5 = arith.constant 0 : i32
    %c0_i32_6 = arith.constant 0 : i32
    return %c0_i32_3, %9, %c0_i32_4, %c0_i32_5 : i32, i32, i32, i32
  }
  func.func @transform_8(%arg0: i32) -> (i32, i32, i32) {
    %c0_i32 = arith.constant 0 : i32
    %c0_i32_0 = arith.constant 0 : i32
    %c0_i32_1 = arith.constant 0 : i32
    return %arg0, %c0_i32, %c0_i32_0 : i32, i32, i32
  }
}

</mosaic_0001>

<bundles_post_ra>
// kernel: tpu_custom_call.1
= control target key start
LH: loop header
LB: loop body
LE: loop exit
PB: predicated region body
PF: predicated region fallthrough
CT: control target
= control target key end

     0   :  { %s13309_s0 = inlined_call_operand.hbm [shape: f32[32,16,128], index: 0, kind: input, shape index: {}]   ;;  %s13310_s1 = inlined_call_operand.vmem [shape: f32[1,128], index: 1, kind: input, shape index: {}]   ;;  %s13311_s2 = inlined_call_operand.vmem [shape: f32[1,128], index: 2, kind: input, shape index: {}]   ;;  %s13312_s3 = inlined_call_operand.hbm [shape: f32[128,384], index: 3, kind: input, shape index: {}]   ;;  %s13313_s4 = inlined_call_operand.vmem [shape: f32[1,384], index: 4, kind: input, shape index: {}]   ;;  %s13314_s5 = inlined_call_operand.hbm [shape: f32[128,128], index: 5, kind: input, shape index: {}]   ;;  %s13315_s6 = inlined_call_operand.vmem [shape: f32[1,128], index: 6, kind: input, shape index: {}]   ;;  %s13316_s7 = inlined_call_operand.hbm [shape: f32[4,16,16,16], index: 7, kind: input, shape index: {}]   ;;  %s13317_s8 = inlined_call_operand.hbm [shape: f32[32,16,128], index: 8, kind: output, shape index: {}]  }
   0x1   :  { %13359 = sst [smem:[#allocation47_spill]] %s13311_s2 }
   0x2   :  { %13360 = sst [smem:[#allocation48_spill]] %s13313_s4 }
   0x3   :  { %13361 = sst [smem:[#allocation49_spill]] %s13315_s6 }
   0x4   :  { %13362 = sst [smem:[#allocation50_spill]] %s13317_s8 }
   0x5   :  { %13 = vsyncpa [#allocation3], 0 }
   0x6   :  { %15 = vsyncpa [#allocation3 + $0x1], 0 }
   0x7   :  { %16 = vsyncpa [#allocation6], 0 }
   0x8   :  { %17 = vsyncpa [#allocation9], 0 }
   0x9   :  { %19 = vsyncpa [#allocation9 + $0x1], 0 }
   0xa   :  { %20 = vsyncpa [#allocation4], 0 }
   0xb   :  { %22 = vsyncpa [#allocation4 + $0x1], 0  ;;  %s11165_s27 = smov 0   ;;  %s11167_s28 = smov 0  }
   0xc   :  { %s11169_s29 = smov 0   ;;  %s11171_s30 = smov 0  }
   0xd   :  { %s11173_s9 = smov 0   ;;  %s11175_s10 = smov 0  }
   0xe   :  { %s11177_s11 = smov 0  }
   0xf LB: > { %13363 = sst [smem:[#allocation18_spill]] %s11084_s30  ;;  %s11201_s12 = sadd.s32 4294967295, %s11096_s11   ;;  %s11096_s11 = sphi %s11177_s11, %s13449_s11   ;;  %s11092_s10 = sphi %s11175_s10, %s13457_s10   ;;  %s11088_s9 = sphi %s11173_s9, %s13456_s9   ;;  %s11084_s30 = sphi %s11171_s30, %s13455_s30   ;;  %s11080_s29 = sphi %s11169_s29, %s13454_s29   ;;  %s11076_s28 = sphi %s11167_s28, %s13453_s28   ;;  %s11072_s27 = sphi %s11165_s27, %s13452_s27  }
  0x10   : > { %s11205_s14 = sadd.s32 1, %s11096_s11   ;;  %s35_s15 = sadd.s32 1, %s11092_s10 }
  0x11   : > { %13364 = sst [smem:[#allocation19_spill]] %s11205_s14  ;;  %s32_s16 = ssub.s32 %s11096_s11, %s11205_s14 }
  0x12   : > { %p42_p0 = scmp.ne.s32.totalorder %s11092_s10, %s11088_s9  ;;  %p33_p1 = scmp.eq.s32.totalorder %s32_s16, 0 }
  0x13   : > { %p43_p2 = scmp.eq.s32.totalorder %s11096_s11, 0  ;;  %p48_p3 = scmp.ne.s32.totalorder %s11088_s9, %s11084_s30 }
  0x14   : > { %p13319_p4 = scmp.eq.s32.totalorder %s11201_s12, 0  ;;  %p184_p7 = scmp.lt.s32.totalorder %s11096_s11, 0 }
  0x15   : > { %s11217_s17 = scalar_select %p33_p1, %s11092_s10, %s35_s15  }
  0x16   : > { %p11224_p5 = por %p43_p2, %p42_p0  ;;  %p11233_p6 = por %p13319_p4, %p48_p3 }
  0x17   : > { %13365 = sst [smem:[#allocation20_spill]] %s11217_s17  ;;  %s185_s20 = ssub.s32 0, %s11096_s11 }
  0x18   : > { %s13366_s18 = scalar_select %p11224_p5, 1, 0 }
  0x19   : > { %s13367_s19 = scalar_select %p11233_p6, 1, 0 }
  0x1a   : > { %s8489_s21 = smin.u32 %s11096_s11, %s185_s20  ;;  %p196_p8 = scmp.lt.s32.totalorder %s11205_s14, 0 }
  0x1b   : > { %s187_s22 = sand.u32 1, %s8489_s21   ;;  %s197_s23 = ssub.s32 0, %s11205_s14 }
  0x1c   : > { %s188_s24 = ssub.s32 0, %s187_s22  ;;  %s8492_s25 = smin.u32 %s197_s23, %s11205_s14 }
  0x1d   : > { %s13459_s24 = smov (!%p184_p7, %s188_s24), %s187_s22  ;;  %s199_s26 = sand.u32 1, %s8492_s25  }
  0x1e   : > { %s211_s15 = sadd.s32 1, %s11080_s29  ;;  %p8491_p9 = scmp.lt.s32.totalorder %s13459_s24, 0 }
  0x1f   : > { %s194_s16 = sadd.s32 2, %s13459_s24  ;;  %s200_s13 = ssub.s32 0, %s199_s26 }
  0x20   : > { %p218_p10 = scmp.ne.s32.totalorder %s11080_s29, %s11076_s28  ;;  %s13461_s16 = smov (!%p8491_p9, %s194_s16), %s13459_s24 }
  0x21   : > { %s13463_s13 = smov (!%p196_p8, %s200_s13), %s199_s26  ;;  %p224_p12 = scmp.ne.s32.totalorder %s11076_s28, %s11072_s27 }
  0x22   : > { %p11250_p11 = por %p218_p10, %p43_p2  ;;  %p8494_p13 = scmp.lt.s32.totalorder %s13463_s13, 0 }
  0x23   : > { %s206_s21 = sadd.s32 2, %s13463_s13  ;;  %p11258_p1 = por %p224_p12, %p13319_p4 }
  0x24   : > { %s13368_s20 = scalar_select %p11250_p11, 1, 0 }
  0x25   : > { %s13369_s22 = scalar_select %p11258_p1, 1, 0 }
  0x26   : > { %p248_p7 = scmp.eq.s32.totalorder %s11201_s12, 3  ;;  %s13465_s21 = smov (!%p8494_p13, %s206_s21), %s13463_s13 }
  0x27   : > { %s13372_s24 = sadd.s32 4294967294, %s11096_s11   ;;  %s208_s25 = ssub.s32 %s13461_s16, %s13465_s21 }
  0x28   : > { %p11266_p9 = por %p248_p7, %p42_p0  ;;  %p254_p2 = scmp.eq.s32.totalorder %s13372_s24, 3 }
  0x29   : > { %p8495_p8 = scmp.ge.s32.totalorder %s11096_s11, 1  ;;  %p209_p10 = scmp.eq.s32.totalorder %s208_s25, 0 }
  0x2a   : > { %s13370_s23 = scalar_select %p11266_p9, 1, 0 }
  0x2b   : > { %p11277_p6 = por %p254_p2, %p48_p3  ;;  %p261_p12 = scmp.lt.s32.totalorder %s11096_s11, 5 }
  0x2c   : > { %13371 = sst [smem:[#allocation21_spill]] %s13370_s23  ;;  %s11098_s17 = smov [#allocation5]  }
  0x2d   : > { %s13373_s27 = scalar_select %p11277_p6, 1, 0 }
  0x2e   : > { %s11283_s26 = scalar_select %p209_p10, %s11080_s29, %s211_s15  }
  0x2f   : > { %13374 = sst [smem:[#allocation22_spill]] %s13373_s27  ;;  %p11285_p4 = pnand %p8495_p8, %p261_p12 }
  0x30   : > { %13375 = sst [smem:[#allocation23_spill]] %s11283_s26  ;;  %s279_s14 = sshll.u32 %s11098_s17, 4  ;;  %s280_s14 = int_to_ptr.vmem [resolvable:$true] %s279_s14 }
  0x31   : > { %s13376_s13 = scalar_select %p11285_p4, 1, 0 }
  0x32   : > { %p10278_p0 = pneg %p11285_p4  ;;  %p13377_p13 = scmp.eq.s32.totalorder %s11201_s12, 0 }
  0x33   : > { %s11099_s24 = smov [#allocation7]   ;;  %s10914_s27 = scalar_lea.hbm %s13312_s3, 6144 }
  0x34   : > { %p11293_p7 = pnand %p10278_p0, %p13377_p13  ;;  %s295_s15 = sshll.u32 %s11099_s24, 4  ;;  %s11297_s15 = int_to_ptr.vmem [resolvable:$true] %s295_s15 }
  0x35   : > { %p10915_p3 = scmp.ne.s32.totalorder %s13312_s3, %s10914_s27  ;;  %p10921_p12 = scmp.lt.u32.totalorder %s10914_s27, %s13312_s3 }
  0x36   : > { %p10916_p2 = pneg %p11293_p7 }
  0x38   : > { %p10917_p8 = pnand %p10916_p2, %p10915_p3 }
  0x3a   : > { %p10918_p10 = pneg %p10917_p8 }
  0x3c   : > { %p10923_p0 = pnand %p10921_p12, %p10918_p10 }
  0x3e   : > { %10926 = shalt.err (!%p10923_p0)
}
  0x3f   : > { %s10927_s24 = scalar_lea.vmem %s280_s14, 6144  ;;  %p10935_p1 = scmp.lt.s32.totalorder %s280_s14, %s280_s14 }
  0x40   : > { %p10928_p13 = scmp.ne.s32.totalorder %s280_s14, %s10927_s24  ;;  %p10936_p4 = scmp.lt.s32.totalorder %s10927_s24, %s10927_s24 }
  0x42   : > { %p10930_p6 = pnand %p10928_p13, %p10916_p2  ;;  %p10937_p11 = por %p10936_p4, %p10935_p1 }
  0x44   : > { %p10931_p9 = pneg %p10930_p6 }
  0x46   : > { %p10938_p5 = pnand %p10937_p11, %p10931_p9 }
  0x48   : > { %10941 = shalt.err (!%p10938_p5)
}
  0x49   : > { %s11100_s30 = smov 384   ;;  %s11101_s26 = smov 24  }
  0x4a   : > { %10281 = dma.hbm_to_vmem [thread:$0]  (!%p11293_p7), %s13312_s3, 6144, %s280_s14, [#allocation6], %s11100_s30, %s11100_s30, %s11101_s26  }
  0x4b   : > { %s10942_s17 = scalar_lea.hbm %s13314_s5, 2048 }
  0x4c   : > { %p10943_p6 = scmp.ne.s32.totalorder %s13314_s5, %s10942_s17  ;;  %p10949_p11 = scmp.lt.u32.totalorder %s10942_s17, %s13314_s5 }
  0x4e   : > { %p10945_p4 = pnand %p10943_p6, %p10916_p2 }
  0x50   : > { %p10946_p5 = pneg %p10945_p4 }
  0x52   : > { %p10951_p1 = pnand %p10949_p11, %p10946_p5 }
  0x54   : > { %10954 = shalt.err (!%p10951_p1)
}
  0x55   : > { %s10955_s14 = scalar_lea.vmem %s11297_s15, 2048  ;;  %p10963_p10 = scmp.lt.s32.totalorder %s11297_s15, %s11297_s15 }
  0x56   : > { %p10956_p9 = scmp.ne.s32.totalorder %s11297_s15, %s10955_s14  ;;  %p10964_p12 = scmp.lt.s32.totalorder %s10955_s14, %s10955_s14 }
  0x58   : > { %p10958_p3 = pnand %p10956_p9, %p10916_p2  ;;  %p10965_p0 = por %p10964_p12, %p10963_p10 }
  0x5a   : > { %p10959_p8 = pneg %p10958_p3 }
  0x5c   : > { %p10966_p13 = pnand %p10965_p0, %p10959_p8 }
  0x5e   : > { %10969 = shalt.err (!%p10966_p13)
}
  0x5f   : > { %s11102_s2 = smov 128   ;;  %s11103_s4 = smov 8  }
  0x60   : > { %10284 = dma.hbm_to_vmem [thread:$0]  (!%p11293_p7), %s13314_s5, 2048, %s11297_s15, [#allocation6], %s11102_s2, %s11102_s2, %s11103_s4  }
  0x61   : > { %p8498_p6 = scmp.ge.s32.totalorder %s11096_s11, 4 }
  0x62   : > { %s312_s26 = sand.u32 (!%p8498_p6), 1, %s11092_s10   ;;  %s8784_s8 = sshll.u32 (!%p8498_p6), %s11096_s11, 11 }
  0x63   : > { %308 = sbr.rel (%p8498_p6) target bundleno = 140 (0x8c), region = 40  ;;  %s8499_s23 = sshll.u32 (!%p8498_p6), %s312_s26, 7 }
  0x64   : > { %s11352_s17 = scalar_lea.hbm (!%p8498_p6), %s13309_s0, %s8784_s8  ;;  %s316_s21 = scalar_lea.vmem (!%p8498_p6), [#allocation2], %s8499_s23 }
  0x65   : > { %s324_s15 = sshll.u32 (!%p8498_p6), %s316_s21, 4  ;;  %s11356_s24 = scalar_lea.sflag (!%p8498_p6), [#allocation3], %s312_s26  ;;  %s11354_s15 = int_to_ptr.vmem [resolvable:$true] %s324_s15 }
  0x66   : > { %s10970_s14 = scalar_lea.hbm (!%p8498_p6), %s11352_s17, 2048  ;;  %p13379_p2 = scmp.ne.s32.totalorder (!%p8498_p6), %s13366_s18, 0 }
  0x67   : > { %p10971_p7 = scmp.ne.s32.totalorder (!%p8498_p6), %s11352_s17, %s10970_s14  ;;  %s10974_s6 = scalar_lea.hbm (!%p8498_p6), %s13309_s0, 8192 }
  0x68   : > { %p10975_p11 = scmp.lt.u32.totalorder (!%p8498_p6), %s11352_s17, %s13309_s0  ;;  %p10976_p1 = scmp.lt.u32.totalorder (!%p8498_p6), %s10974_s6, %s10970_s14 }
  0x69   : > { %p10972_p4 = pnand (!%p8498_p6), %p10971_p7, %p13379_p2  ;;  %p10978_p3 = scmp.lt.u32.totalorder (!%p8498_p6), %s10970_s14, %s11352_s17 }
  0x6a   : > { %p10977_p9 = por %p10976_p1, %p10975_p11 }
  0x6b   : > { %p10973_p5 = pneg %p10972_p4 }
  0x6c   : > { %p10979_p8 = por %p10978_p3, %p10977_p9 }
  0x6e   : > { %p10980_p10 = pnand %p10979_p8, %p10973_p5 }
  0x70   : > { %10983 = shalt.err (!%p10980_p10)
}
  0x71   : > { %s10984_s26 = scalar_lea.vmem %s11354_s15, 2048  ;;  %s11104_s23 = smov [#allocation2]  }
  0x72   : > { %p10985_p12 = scmp.ne.s32.totalorder %s11354_s15, %s10984_s26  ;;  %s10988_s27 = sshll.u32 %s11104_s23, 4  ;;  %s10989_s27 = int_to_ptr.vmem [resolvable:$false] %s10988_s27 }
  0x73   : > { %s10990_s25 = scalar_lea.vmem %s10989_s27, 4096  ;;  %p10991_p6 = scmp.lt.s32.totalorder %s11354_s15, %s10989_s27 }
  0x74   : > { %p10986_p0 = pnand %p10985_p12, %p13379_p2  ;;  %p10992_p7 = scmp.lt.s32.totalorder %s10990_s25, %s10984_s26 }
  0x76   : > { %p10987_p13 = pneg %p10986_p0  ;;  %p10993_p4 = por %p10992_p7, %p10991_p6 }
  0x78   : > { %p10994_p11 = pnand %p10993_p4, %p10987_p13 }
  0x7a   : > { %10997 = shalt.err (!%p10994_p11)
}
  0x7b   : > { %s11105_s21 = smov 128   ;;  %s11106_s14 = smov 8  }
  0x7c   : > { %10261 = dma.hbm_to_vmem [thread:$0]  (%p13379_p2), %s11352_s17, 2048, %s11354_s15, %s11356_s24, %s11105_s21, %s11105_s21, %s11106_s14  }
  0x7d   : > { %s334_s2 = sand.u32 1, %s11080_s29   ;;  %s8786_s4 = sshll.u32 %s13461_s16, 11 }
  0x7e   : > { %s8503_s6 = sshll.u32 %s334_s2, 9  ;;  %s357_s26 = scalar_lea.hbm %s13316_s7, %s8786_s4 }
  0x7f   : > { %p13380_p5 = scmp.ne.s32.totalorder %s13368_s20, 0  ;;  %s338_s18 = scalar_lea.vmem [#allocation8], %s8503_s6 }
  0x80   : > { %s370_s17 = sshll.u32 %s338_s18, 4  ;;  %s11107_s24 = smov 4096   ;;  %s371_s17 = int_to_ptr.vmem [resolvable:$true] %s370_s17 }
  0x81   : > { %s10262_s23 = scalar_select %p13380_p5, [#allocation0], [#allocation13] }
  0x82   : > { %10263 = sst [smem:[#allocation12]] (%p13380_p5), %s11107_s24  ;;  %s11108_s27 = smov 2048  }
  0x83   : > { %s362_s15 = sld [smem:[%s10262_s23]]   ;;  %s11109_s16 = smov 16  }
  0x84   : > { %10264 = sst [smem:[#allocation12 + $0x1]] (%p13380_p5), %s11108_s27  ;;  %s11110_s25 = smov 128  }
  0x85   : > { %10265 = sst [smem:[#allocation12 + $0x2]] (%p13380_p5), %s11109_s16  ;;  %s11111_s14 = smov 8  }
  0x86   : > { %10266 = sst [smem:[#allocation12 + $0x3]] (%p13380_p5), %s11110_s25  ;;  %s335_s6 = scalar_lea.sflag [#allocation9], %s334_s2 }
  0x87   : > { %10267 = sst [smem:[#allocation12 + $0x4]] (%p13380_p5), %s11110_s25  ;;  %s11112_s30 = smov [#allocation11]  }
  0x88   : > { %10268 = sst [smem:[#allocation12 + $0x5]] (%p13380_p5), %s11111_s14 }
  0x89   : > { %s8510_s21 = sshll.u32 %s362_s15, 26 }
  0x8a   : > { %s8511_s4 = sadd.s32 134217728, %s8510_s21 }
  0x8b   : > { %10269 = dma.general (%p13380_p5), %s357_s26, 8192, %s371_s17, %s335_s6, %s11112_s30, [#allocation12], %s8511_s4, 0  }
  0x8c PF: > { %p13381_p2 = scmp.ne.s32.totalorder %s13376_s13, 0 }
  0x8e   : > { %395 = sbr.rel (%p13381_p2) target bundleno = 3868 (0xf1c), region = 52 }
  0x95   : > { %s11404_s8 = sand.u32 1, %s11088_s9   ;;  %p13382_p1 = scmp.ne.s32.totalorder %s13367_s19, 0 }
  0x96   : > { %s8513_s23 = sshll.u32 %s11404_s8, 7  ;;  %s398_s18 = scalar_lea.sflag [#allocation3], %s11404_s8 }
  0x97   : > { %s11410_s15 = scalar_lea.vmem [#allocation2], %s8513_s23 }
  0x98   : > { %11055 = dma.done.wait (%p13382_p1), %s398_s18, 2048  }
  0x99   : > { %11057 = vsyncadd (%p13382_p1), %s398_s18, 4294965248  ;;  %p13383_p9 = scmp.eq.s32.totalorder %s11201_s12, 0 }
  0x9b   : > { %11059 = dma.done.wait (%p13383_p9), [#allocation6], 8192   ;;  %p13384_p3 = pmov %p13383_p9 }
  0x9c   : > { %s414_s20 = sand.u32 1, %s11076_s28   ;;  %p13385_p8 = scmp.ne.s32.totalorder %s13369_s22, 0 }
  0x9d   : > { %11061 = vsyncadd (%p13384_p3), [#allocation6], 4294959104  ;;  %s8516_s13 = sshll.u32 %s414_s20, 9  ;;  %s415_s2 = scalar_lea.sflag [#allocation9], %s414_s20 }
  0x9e   : > { %s11421_s26 = scalar_lea.vmem [#allocation8], %s8516_s13 }
  0x9f   : > { %11063 = dma.done.wait (%p13385_p8), %s415_s2, 8192  }
  0xa0   : > { %11065 = vsyncadd (%p13385_p8), %s415_s2, 4294959104  ;;  %v11428_v0 = vld [vmem:[%s11410_s15] sm:$0xff]  ;;  %v11431_v1 = vld [vmem:[%s11410_s15 + $0x10] sm:$0xff]  ;;  %s13386_s27 = sld [smem:[#allocation47_spill]]  ;;  %s13387_s21 = sld [smem:[#allocation48_spill]]  ;;  %vm1161_vm0 = vcmask 261120  }
  0xa1   : > { %487 = vadd.xlane.f32.xlu0 %v11428_v0  ;;  %491 = vadd.xlane.f32.xlu1 %v11431_v1  ;;  %v11436_v2 = vld [vmem:[%s11410_s15 + $0x8] sm:$0xff]  ;;  %v11439_v3 = vld [vmem:[%s11410_s15 + $0x18] sm:$0xff]  ;;  %v11444_v4 = vld [vmem:[%s11410_s15 + $0x20] sm:$0xff]  ;;  %vm1858_vm2 = vcmask 130048   ;;  %s11114_s14 = smov 96   ;;  %s11115_s4 = smov 64  }
  0xa2   : > { %v11447_v5 = vld [vmem:[%s11410_s15 + $0x28] sm:$0xff]  ;;  %v11452_v6 = vld [vmem:[%s11410_s15 + $0x30] sm:$0xff]  ;;  %v11455_v7 = vld [vmem:[%s11410_s15 + $0x38] sm:$0xff]  ;;  %s11116_s6 = smov 32   ;;  %s13441_s20 = sld [smem:[#allocation49_spill]] }
  0xa3   : > { %v11460_v8 = vld [vmem:[%s11410_s15 + $0x40] sm:$0xff]  ;;  %v11463_v9 = vld [vmem:[%s11410_s15 + $0x48] sm:$0xff]  ;;  %v11468_v10 = vld [vmem:[%s11410_s15 + $0x50] sm:$0xff]  ;;  %s13194_s13 = scalar_lea.vmem [#allocation10], %s8513_s23  ;;  %s8788_s23 = sshll.u32 %s11201_s12, 11 }
  0xa4   : > { %v11471_v11 = vld [vmem:[%s11410_s15 + $0x58] sm:$0xff]  ;;  %v11476_v12 = vld [vmem:[%s11410_s15 + $0x60] sm:$0xff]  ;;  %v11479_v13 = vld [vmem:[%s11410_s15 + $0x68] sm:$0xff]  ;;  %s8373_s2 = sshll.u32 %s13194_s13, 4  ;;  %s13444_s17 = sld [smem:[#allocation50_spill]]  ;;  %s13254_s2 = int_to_ptr.vmem [resolvable:$true] %s8373_s2 }
  0xa5   : > { %489 = vadd.xlane.f32.xlu0 %v11436_v2  ;;  %493 = vadd.xlane.f32.xlu1 %v11439_v3  ;;  %v11484_v14 = vld [vmem:[%s11410_s15 + $0x70] sm:$0xff]  ;;  %v11487_v15 = vld [vmem:[%s11410_s15 + $0x78] sm:$0xff]  ;;  %v711_v16 = vld [vmem:[#allocation5 + $0x8] sm:$0xff]  ;;  %s8359_s12 = scalar_lea.sflag [#allocation4], %s11404_s8 }
  0xa6   : > { %v714_v17 = vld [vmem:[#allocation5 + $0x20] sm:$0xff]  ;;  %v713_v20 = vld [vmem:[#allocation5 + $0x18] sm:$0xff]  ;;  %v720_v22 = vld [vmem:[#allocation5 + $0x50] sm:$0xff] }
  0xa7   : > { %v710_v18 = vld [vmem:[#allocation5] sm:$0xff]  ;;  %v9789_v19 = vpack.c.bf16 %v714_v17, %v711_v16  ;;  %v717_v21 = vld [vmem:[#allocation5 + $0x38] sm:$0xff]  ;;  %v712_v25 = vld [vmem:[#allocation5 + $0x10] sm:$0xff] }
  0xa8   : > { %v9791_v23 = vpack.c.bf16 %v713_v20, %v710_v18  ;;  %v9793_v24 = vpack.c.bf16 %v720_v22, %v717_v21  ;;  %v715_v26 = vld [vmem:[#allocation5 + $0x28] sm:$0xff]  ;;  %v716_v27 = vld [vmem:[#allocation5 + $0x30] sm:$0xff]  ;;  %v726_v31 = vld [vmem:[#allocation5 + $0x80] sm:$0xff] }
  0xa9   : > { %495 = vadd.xlane.f32.xlu0 %v11444_v4  ;;  %497 = vadd.xlane.f32.xlu1 %v11447_v5  ;;  %v9821_v28 = vpack.c.bf16 %v715_v26, %v712_v25  ;;  %v719_v29 = vld [vmem:[#allocation5 + $0x48] sm:$0xff]  ;;  %v718_v33 = vld [vmem:[#allocation5 + $0x40] sm:$0xff]  ;;  %v721_v34 = vld [vmem:[#allocation5 + $0x58] sm:$0xff] }
  0xaa   : > { %9790 = vmatprep.subr.bf16.mxu0 %v9789_v19  ;;  %v723_v30 = vld [vmem:[#allocation5 + $0x68] sm:$0xff]  ;;  %v9795_v32 = vpack.c.bf16 %v719_v29, %v716_v27  ;;  %v9825_v36 = vpack.c.bf16 %v721_v34, %v718_v33  ;;  %v722_v37 = vld [vmem:[#allocation5 + $0x60] sm:$0xff]  ;;  %v725_v38 = vld [vmem:[#allocation5 + $0x78] sm:$0xff]  ;;  %s13252_s24 = scalar_lea.hbm %s13444_s17, %s8788_s23 }
  0xab   : > { %9792 = vmatpush1.bf16.msra.mxu0 %v9791_v23  ;;  %9822 = vmatprep.subr.bf16.mxu1 %v9821_v28  ;;  %v9797_v35 = vpack.c.bf16 %v726_v31, %v723_v30  ;;  %v9799_v39 = vpack.c.bf16 %v725_v38, %v722_v37  ;;  %v732_v23 = vld [vmem:[#allocation5 + $0xb0] sm:$0xff]  ;;  %v731_v30 = vld [vmem:[#allocation5 + $0xa8] sm:$0xff]  ;;  %vm11665_vm1 = vmpackc.low %vm1161_vm0, %vm1161_vm0 }
  0xac   : > { %9794 = vmatprep.subr.bf16.mxu0 %v9793_v24  ;;  %9824 = vmatpush3.bf16.msra.mxu1 %v9821_v28  ;;  %v724_v24 = vld [vmem:[#allocation5 + $0x70] sm:$0xff]  ;;  %v727_v28 = vld [vmem:[#allocation5 + $0x88] sm:$0xff] }
  0xad   : > { %499 = vadd.xlane.f32.xlu0 %v11452_v6  ;;  %501 = vadd.xlane.f32.xlu1 %v11455_v7  ;;  %v728_v29 = vld [vmem:[#allocation5 + $0x90] sm:$0xff] }
  0xae   : > { %9826 = vmatprep.subr.bf16.mxu1 %v9825_v36  ;;  %v9803_v34 = vpack.c.bf16 %v731_v30, %v728_v29  ;;  %v753_v30 = vld [vmem:[#allocation5 + $0x158] sm:$0xff] }
  0xaf   : > { %9796 = vmatpush1.bf16.msra.mxu0 %v9795_v32 }
  0xb0   : > { %9798 = vmatprep.subr.bf16.mxu0 %v9797_v35  ;;  %9828 = vmatpush3.bf16.msra.mxu1 %v9825_v36 }
  0xb1   : > { %503 = vadd.xlane.f32.xlu0 %v11460_v8  ;;  %505 = vadd.xlane.f32.xlu1 %v11463_v9 }
  0xb3   : > { %9800 = vmatpush1.bf16.msra.mxu0 %v9799_v39  ;;  %v735_v39 = vld [vmem:[#allocation5 + $0xc8] sm:$0xff] }
  0xb5   : > { %507 = vadd.xlane.f32.xlu0 %v11468_v10  ;;  %509 = vadd.xlane.f32.xlu1 %v11471_v11 }
  0xb9   : > { %511 = vadd.xlane.f32.xlu0 %v11476_v12  ;;  %513 = vadd.xlane.f32.xlu1 %v11479_v13 }
  0xbd   : > { %515 = vadd.xlane.f32.xlu0 %v11484_v14  ;;  %517 = vadd.xlane.f32.xlu1 %v11487_v15 }
 0x12e   : > { %v488_v40 = vpop.xlane.xlu0 %487  ;;  %v492_v41 = vpop.xlane.xlu1 %491 }
 0x12f   : > { %v520_v42 = vmul.f32 0.0078125, %v488_v40  ;;  %v522_v43 = vmul.f32 0.0078125, %v492_v41  ;;  %v738_v40 = vld [vmem:[#allocation5 + $0xe0] sm:$0xff] }
 0x130   : > { %v730_v41 = vld [vmem:[#allocation5 + $0xa0] sm:$0xff] }
 0x131   : > { %v11492_v44 = vsub.f32 %v11428_v0, %v520_v42  ;;  %v11495_v45 = vsub.f32 %v11431_v1, %v522_v43 }
 0x132   : > { %v490_v46 = vpop.xlane.xlu0 %489  ;;  %v494_v47 = vpop.xlane.xlu1 %493 }
 0x133   : > { %v521_v48 = vmul.f32 0.0078125, %v490_v46  ;;  %v552_v49 = vmul.f32 %v11492_v44, %v11492_v44  ;;  %v523_v50 = vmul.f32 0.0078125, %v494_v47  ;;  %v554_v51 = vmul.f32 %v11495_v45, %v11495_v45  ;;  %v733_v47 = vld [vmem:[#allocation5 + $0xb8] sm:$0xff] }
 0x135   : > { %568 = vadd.xlane.f32.xlu0 %v552_v49  ;;  %v11502_v52 = vsub.f32 %v11436_v2, %v521_v48  ;;  %v11505_v53 = vsub.f32 %v11439_v3, %v523_v50  ;;  %v734_v48 = vld [vmem:[#allocation5 + $0xc0] sm:$0xff]  ;;  %v9805_v49 = vpack.c.bf16 %v738_v40, %v735_v39  ;;  %v9833_v50 = vpack.c.bf16 %v733_v47, %v730_v41  ;;  %v757_v40 = vld [vmem:[#allocation5 + $0x178] sm:$0xff] }
 0x136   : > { %v496_v54 = vpop.xlane.xlu0 %495  ;;  %v498_v55 = vpop.xlane.xlu1 %497  ;;  %v754_v39 = vld [vmem:[#allocation5 + $0x160] sm:$0xff] }
 0x137   : > { %v524_v56 = vmul.f32 0.0078125, %v496_v54  ;;  %v553_v57 = vmul.f32 %v11502_v52, %v11502_v52  ;;  %v525_v58 = vmul.f32 0.0078125, %v498_v55  ;;  %v555_v59 = vmul.f32 %v11505_v53, %v11505_v53 }
 0x138   : > { %v9849_v41 = vpack.c.bf16 %v757_v40, %v754_v39 }
 0x139   : > { %572 = vadd.xlane.f32.xlu0 %v554_v51  ;;  %570 = vadd.xlane.f32.xlu1 %v553_v57  ;;  %v11512_v60 = vsub.f32 %v11444_v4, %v524_v56  ;;  %v11515_v61 = vsub.f32 %v11447_v5, %v525_v58  ;;  %v741_v58 = vld [vmem:[#allocation5 + $0xf8] sm:$0xff] }
 0x13a   : > { %v500_v62 = vpop.xlane.xlu0 %499  ;;  %v502_v63 = vpop.xlane.xlu1 %501 }
 0x13b   : > { %v526_v0 = vmul.f32 0.0078125, %v500_v62  ;;  %v556_v1 = vmul.f32 %v11512_v60, %v11512_v60  ;;  %v527_v2 = vmul.f32 0.0078125, %v502_v63  ;;  %v557_v3 = vmul.f32 %v11515_v61, %v11515_v61  ;;  %v736_v62 = vld [vmem:[#allocation5 + $0xd0] sm:$0xff] }
 0x13d   : > { %574 = vadd.xlane.f32.xlu1 %v555_v59  ;;  %576 = vadd.xlane.f32.xlu0 %v556_v1  ;;  %v11522_v16 = vsub.f32 %v11452_v6, %v526_v0  ;;  %v11525_v4 = vsub.f32 %v11455_v7, %v527_v2  ;;  %v729_v7 = vld [vmem:[#allocation5 + $0x98] sm:$0xff]  ;;  %v744_v59 = vld [vmem:[#allocation5 + $0x110] sm:$0xff]  ;;  %v739_v2 = vld [vmem:[#allocation5 + $0xe8] sm:$0xff] }
 0x13e   : > { %v504_v5 = vpop.xlane.xlu0 %503  ;;  %v506_v17 = vpop.xlane.xlu1 %505  ;;  %v9801_v27 = vpack.c.bf16 %v732_v23, %v729_v7  ;;  %v750_v7 = vld [vmem:[#allocation5 + $0x140] sm:$0xff] }
 0x13f   : > { %v528_v18 = vmul.f32 0.0078125, %v504_v5  ;;  %v558_v19 = vmul.f32 %v11522_v16, %v11522_v16  ;;  %v529_v20 = vmul.f32 0.0078125, %v506_v17  ;;  %v559_v21 = vmul.f32 %v11525_v4, %v11525_v4  ;;  %v742_v23 = vld [vmem:[#allocation5 + $0x100] sm:$0xff] }
 0x140   : > { %9802 = vmatprep.subr.bf16.mxu0 %v9801_v27  ;;  %v9809_v5 = vpack.c.bf16 %v744_v59, %v741_v58  ;;  %v746_v27 = vld [vmem:[#allocation5 + $0x120] sm:$0xff] }
 0x141   : > { %578 = vadd.xlane.f32.xlu1 %v557_v3  ;;  %580 = vadd.xlane.f32.xlu0 %v558_v19  ;;  %v11532_v22 = vsub.f32 %v11460_v8, %v528_v18  ;;  %v11535_v6 = vsub.f32 %v11463_v9, %v529_v20  ;;  %v9829_v8 = vpack.c.bf16 %v727_v28, %v724_v24  ;;  %v743_v3 = vld [vmem:[#allocation5 + $0x108] sm:$0xff]  ;;  %v749_v28 = vld [vmem:[#allocation5 + $0x138] sm:$0xff] }
 0x142   : > { %v508_v25 = vpop.xlane.xlu0 %507  ;;  %v510_v26 = vpop.xlane.xlu1 %509  ;;  %9804 = vmatpush1.bf16.msra.mxu0 %v9803_v34  ;;  %v752_v34 = vld [vmem:[#allocation5 + $0x150] sm:$0xff] }
 0x143   : > { %v530_v31 = vmul.f32 0.0078125, %v508_v25  ;;  %v560_v32 = vmul.f32 %v11532_v22, %v11532_v22  ;;  %v531_v33 = vmul.f32 0.0078125, %v510_v26  ;;  %v561_v9 = vmul.f32 %v11535_v6, %v11535_v6  ;;  %9830 = vmatprep.subr.bf16.mxu1 %v9829_v8  ;;  %9806 = vmatprep.subr.bf16.mxu0 %v9805_v49  ;;  %v745_v26 = vld [vmem:[#allocation5 + $0x118] sm:$0xff] }
 0x144   : > { %9832 = vmatpush3.bf16.msra.mxu1 %v9829_v8  ;;  %v9841_v29 = vpack.c.bf16 %v745_v26, %v742_v23  ;;  %v751_v8 = vld [vmem:[#allocation5 + $0x148] sm:$0xff] }
 0x145   : > { %582 = vadd.xlane.f32.xlu1 %v559_v21  ;;  %584 = vadd.xlane.f32.xlu0 %v560_v32  ;;  %v11542_v35 = vsub.f32 %v11468_v10, %v530_v31  ;;  %v11545_v36 = vsub.f32 %v11471_v11, %v531_v33  ;;  %v737_v10 = vld [vmem:[#allocation5 + $0xd8] sm:$0xff]  ;;  %v747_v21 = vld [vmem:[#allocation5 + $0x128] sm:$0xff]  ;;  %v756_v31 = vld [vmem:[#allocation5 + $0x170] sm:$0xff] }
 0x146   : > { %v512_v37 = vpop.xlane.xlu0 %511  ;;  %v514_v38 = vpop.xlane.xlu1 %513  ;;  %v9807_v11 = vpack.c.bf16 %v737_v10, %v734_v48  ;;  %9834 = vmatprep.subr.bf16.mxu1 %v9833_v50  ;;  %v9813_v25 = vpack.c.bf16 %v750_v7, %v747_v21  ;;  %v748_v32 = vld [vmem:[#allocation5 + $0x130] sm:$0xff]  ;;  %v9817_v33 = vpack.c.bf16 %v756_v31, %v753_v30 }
 0x147   : > { %v532_v42 = vmul.f32 0.0078125, %v512_v37  ;;  %v562_v43 = vmul.f32 %v11542_v35, %v11542_v35  ;;  %v533_v46 = vmul.f32 0.0078125, %v514_v38  ;;  %v563_v51 = vmul.f32 %v11545_v36, %v11545_v36 }
 0x148   : > { %9808 = vmatpush1.bf16.msra.mxu0 %v9807_v11  ;;  %9836 = vmatpush3.bf16.msra.mxu1 %v9833_v50  ;;  %v9845_v37 = vpack.c.bf16 %v751_v8, %v748_v32 }
 0x149   : > { %586 = vadd.xlane.f32.xlu1 %v561_v9  ;;  %588 = vadd.xlane.f32.xlu0 %v562_v43  ;;  %v11552_v54 = vsub.f32 %v11476_v12, %v532_v42  ;;  %v11555_v55 = vsub.f32 %v11479_v13, %v533_v46  ;;  %v740_v12 = vld [vmem:[#allocation5 + $0xf0] sm:$0xff]  ;;  %v9837_v13 = vpack.c.bf16 %v739_v2, %v736_v62  ;;  %v755_v9 = vld [vmem:[#allocation5 + $0x168] sm:$0xff]  ;;  %v11113_v42 = vmov 0.0  }
 0x14a   : > { %v516_v56 = vpop.xlane.xlu0 %515  ;;  %v518_v57 = vpop.xlane.xlu1 %517  ;;  %v9811_v17 = vpack.c.bf16 %v743_v3, %v740_v12  ;;  %9810 = vmatprep.subr.bf16.mxu0 %v9809_v5  ;;  %v9819_v38 = vpack.c.bf16 %v755_v9, %v752_v34  ;;  %839 = vmatprep.mubr.f32.mxu0 %v11113_v42 }
 0x14b   : > { %v534_v63 = vmul.f32 0.0078125, %v516_v56  ;;  %v564_v0 = vmul.f32 %v11552_v54, %v11552_v54  ;;  %v535_v1 = vmul.f32 0.0078125, %v518_v57  ;;  %v565_v18 = vmul.f32 %v11555_v55, %v11555_v55  ;;  %9838 = vmatprep.subr.bf16.mxu1 %v9837_v13 }
 0x14c   : > { %9812 = vmatpush1.bf16.msra.mxu0 %v9811_v17  ;;  %9840 = vmatpush3.bf16.msra.mxu1 %v9837_v13  ;;  %v11575_v17 = vld [vmem:[%s13310_s1] ss:$0 sm:$0xff] }
 0x14d   : > { %590 = vadd.xlane.f32.xlu1 %v563_v51  ;;  %592 = vadd.xlane.f32.xlu0 %v564_v0  ;;  %v11562_v19 = vsub.f32 %v11484_v14, %v534_v63  ;;  %v11565_v20 = vsub.f32 %v11487_v15, %v535_v1  ;;  %v9815_v14 = vpack.c.bf16 %v749_v28, %v746_v27 }
 0x14e   : > { %9814 = vmatprep.subr.bf16.mxu0 %v9813_v25  ;;  %9842 = vmatprep.subr.bf16.mxu1 %v9841_v29  ;;  %v11581_v25 = vld [vmem:[%s13386_s27] ss:$0 sm:$0xff]  ;;  %s10998_s27 = scalar_lea.vmem %s13254_s2, 2048 }
 0x14f   : > { %v566_v24 = vmul.f32 %v11562_v19, %v11562_v19  ;;  %v567_v15 = vmul.f32 %v11565_v20, %v11565_v20  ;;  %p10999_p10 = scmp.ne.s32.totalorder %s13254_s2, %s10998_s27 }
 0x150   : > { %9816 = vmatpush1.bf16.msra.mxu0 %v9815_v14  ;;  %9844 = vmatpush3.bf16.msra.mxu1 %v9841_v29 }
 0x151   : > { %594 = vadd.xlane.f32.xlu1 %v565_v18  ;;  %596 = vadd.xlane.f32.xlu0 %v566_v24 }
 0x152   : > { %9818 = vmatprep.subr.bf16.mxu0 %v9817_v33  ;;  %9846 = vmatprep.subr.bf16.mxu1 %v9845_v37 }
 0x154   : > { %9820 = vmatpush1.bf16.msra.mxu0 %v9819_v38  ;;  %9848 = vmatpush3.bf16.msra.mxu1 %v9845_v37 }
 0x155   : > { %598 = vadd.xlane.f32.xlu1 %v567_v15  ;;  %9850 = vmatprep.subr.bf16.mxu1 %v9849_v41 }
 0x158   : > { %9852 = vmatpush3.bf16.msra.mxu1 %v9849_v41 }
 0x1c2   : > { %v569_v43 = vpop.xlane.xlu0 %568 }
 0x1c3   : > { %v600_v46 = vmul.f32 0.0078125, %v569_v43 }
 0x1c5   : > { %v616_v47 = vadd.f32 1e-05, %v600_v46 }
 0x1c6   : > { %v571_v48 = vpop.xlane.xlu1 %570  ;;  %v573_v10 = vpop.xlane.xlu0 %572 }
 0x1c7   : > { %10610 = vrsqrt.f32 %v616_v47  ;;  %v601_v49 = vmul.f32 0.0078125, %v571_v48  ;;  %v602_v50 = vmul.f32 0.0078125, %v573_v10 }
 0x1c9   : > { %v617_v11 = vadd.f32 1e-05, %v601_v49  ;;  %v618_v51 = vadd.f32 1e-05, %v602_v50 }
 0x1ca   : > { %v575_v56 = vpop.xlane.xlu1 %574  ;;  %v577_v57 = vpop.xlane.xlu0 %576 }
 0x1cb   : > { %10612 = vrsqrt.f32 %v617_v11  ;;  %v603_v58 = vmul.f32 0.0078125, %v575_v56  ;;  %v604_v59 = vmul.f32 0.0078125, %v577_v57 }
 0x1cc   : > { %10614 = vrsqrt.f32 %v618_v51 }
 0x1cd   : > { %v619_v62 = vadd.f32 1e-05, %v603_v58  ;;  %v620_v63 = vadd.f32 1e-05, %v604_v59 }
 0x1ce   : > { %v579_v0 = vpop.xlane.xlu1 %578  ;;  %v581_v1 = vpop.xlane.xlu0 %580 }
 0x1cf   : > { %10616 = vrsqrt.f32 %v619_v62  ;;  %v605_v2 = vmul.f32 0.0078125, %v579_v0  ;;  %v606_v12 = vmul.f32 0.0078125, %v581_v1 }
 0x1d0   : > { %10618 = vrsqrt.f32 %v620_v63 }
 0x1d1   : > { %v10611_v3 = vpop.eup %10610  ;;  %v621_v5 = vadd.f32 1e-05, %v605_v2  ;;  %v622_v13 = vadd.f32 1e-05, %v606_v12 }
 0x1d2   : > { %v583_v18 = vpop.xlane.xlu1 %582  ;;  %v585_v21 = vpop.xlane.xlu0 %584  ;;  %v648_v7 = vmul.f32 %v10611_v3, %v11492_v44 }
 0x1d3   : > { %10620 = vrsqrt.f32 %v621_v5  ;;  %v607_v23 = vmul.f32 0.0078125, %v583_v18  ;;  %v608_v24 = vmul.f32 0.0078125, %v585_v21 }
 0x1d4   : > { %10622 = vrsqrt.f32 %v622_v13  ;;  %v671_v26 = vmul.f32 %v11575_v17, %v648_v7 }
 0x1d5   : > { %v10613_v27 = vpop.eup %10612  ;;  %v623_v28 = vadd.f32 1e-05, %v607_v23  ;;  %v624_v29 = vadd.f32 1e-05, %v608_v24 }
 0x1d6   : > { %v10615_v14 = vpop.eup %10614  ;;  %v587_v15 = vpop.xlane.xlu1 %586  ;;  %v694_v31 = vadd.f32 %v11581_v25, %v671_v26  ;;  %v649_v44 = vmul.f32 %v10613_v27, %v11502_v52 }
 0x1d7   : > { %v589_v30 = vpop.xlane.xlu0 %588  ;;  %10624 = vrsqrt.f32 %v623_v28  ;;  %v609_v32 = vmul.f32 0.0078125, %v587_v15  ;;  %v650_v8 = vmul.f32 %v10615_v14, %v11495_v45 }
 0x1d8   : > { %v610_v33 = vmul.f32 0.0078125, %v589_v30  ;;  %10626 = vrsqrt.f32 %v624_v29  ;;  %840 = vmatmul.mubr.f32.vlgmr.msra.gmra.mrb[0].mxu0 %v694_v31  ;;  %9189 = vmatprep.mubr.f32.mxu1 %v694_v31  ;;  %v672_v34 = vmul.f32 %v11575_v17, %v649_v44 }
 0x1d9   : > { %v10617_v9 = vpop.eup %10616  ;;  %v625_v37 = vadd.f32 1e-05, %v609_v32  ;;  %845 = vmatprep.mubr.f32.mxu0 %v11113_v42  ;;  %v673_v39 = vmul.f32 %v11575_v17, %v650_v8 }
 0x1da   : > { %v626_v38 = vadd.f32 1e-05, %v610_v33  ;;  %v10619_v40 = vpop.eup %10618  ;;  %v591_v41 = vpop.xlane.xlu1 %590  ;;  %v695_v43 = vadd.f32 %v11581_v25, %v672_v34  ;;  %v651_v46 = vmul.f32 %v10617_v9, %v11505_v53 }
 0x1db   : > { %v593_v52 = vpop.xlane.xlu0 %592  ;;  %10628 = vrsqrt.f32 %v625_v37  ;;  %v611_v45 = vmul.f32 0.0078125, %v591_v41  ;;  %v696_v48 = vadd.f32 %v11581_v25, %v673_v39  ;;  %v652_v49 = vmul.f32 %v10619_v40, %v11512_v60 }
 0x1dc   : > { %v612_v47 = vmul.f32 0.0078125, %v593_v52  ;;  %10630 = vrsqrt.f32 %v626_v38  ;;  %846 = vmatmul.mubr.f32.gmra.mrb[2].mxu0 %v695_v43  ;;  %9190 = vmatmul.mubr.f32.vlgmr.msra.gmra.mrb[0].mxu1 %v695_v43  ;;  %v674_v10 = vmul.f32 %v11575_v17, %v651_v46 }
 0x1dd   : > { %v10621_v50 = vpop.eup %10620  ;;  %v627_v11 = vadd.f32 1e-05, %v611_v45  ;;  %9192 = vmatprep.mubr.f32.mxu1 %v696_v48  ;;  %851 = vmatprep.mubr.f32.mxu0 %v11113_v42  ;;  %v675_v59 = vmul.f32 %v11575_v17, %v652_v49 }
 0x1de   : > { %v628_v51 = vadd.f32 1e-05, %v612_v47  ;;  %v10623_v56 = vpop.eup %10622  ;;  %v595_v53 = vpop.xlane.xlu1 %594  ;;  %v697_v58 = vadd.f32 %v11581_v25, %v674_v10  ;;  %v653_v62 = vmul.f32 %v10621_v50, %v11515_v61  ;;  %v758_v10 = vld [vmem:[%s13387_s21] sm:$0x7] }
 0x1df   : > { %v597_v57 = vpop.xlane.xlu0 %596  ;;  %10632 = vrsqrt.f32 %v627_v11  ;;  %v613_v63 = vmul.f32 0.0078125, %v595_v53  ;;  %v654_v60 = vmul.f32 %v10623_v56, %v11522_v16  ;;  %v698_v1 = vadd.f32 %v11581_v25, %v675_v59 }
 0x1e0   : > { %v614_v0 = vmul.f32 0.0078125, %v597_v57  ;;  %10634 = vrsqrt.f32 %v628_v51  ;;  %852 = vmatmul.mubr.f32.gmra.mrb[4].mxu0 %v696_v48  ;;  %9193 = vmatmul.mubr.f32.gmra.mrb[2].mxu1 %v697_v58  ;;  %v676_v2 = vmul.f32 %v11575_v17, %v653_v62 }
 0x1e1   : > { %v10625_v12 = vpop.eup %10624  ;;  %v629_v3 = vadd.f32 1e-05, %v613_v63  ;;  %857 = vmatprep.mubr.f32.mxu0 %v11113_v42  ;;  %v677_v13 = vmul.f32 %v11575_v17, %v654_v60  ;;  %9195 = vmatprep.mubr.f32.mxu1 %v698_v1 }
 0x1e2   : > { %v630_v5 = vadd.f32 1e-05, %v614_v0  ;;  %v10627_v61 = vpop.eup %10626  ;;  %v599_v18 = vpop.xlane.xlu1 %598  ;;  %v699_v21 = vadd.f32 %v11581_v25, %v676_v2  ;;  %v655_v16 = vmul.f32 %v10625_v12, %v11525_v4  ;;  %v1148_v12 = vld [vmem:[%s11421_s26 + $0x198] sm:$0xff] }
 0x1e3   : > { %10636 = vrsqrt.f32 %v629_v3  ;;  %v615_v7 = vmul.f32 0.0078125, %v599_v18  ;;  %v700_v23 = vadd.f32 %v11581_v25, %v677_v13  ;;  %v656_v24 = vmul.f32 %v10627_v61, %v11532_v22 }
 0x1e4   : > { %10638 = vrsqrt.f32 %v630_v5  ;;  %858 = vmatmul.mubr.f32.gmra.mrb[6].mxu0 %v697_v58  ;;  %9196 = vmatmul.mubr.f32.gmra.mrb[4].mxu1 %v699_v21  ;;  %v678_v26 = vmul.f32 %v11575_v17, %v655_v16 }
 0x1e5   : > { %v10629_v27 = vpop.eup %10628  ;;  %v631_v28 = vadd.f32 1e-05, %v615_v7  ;;  %9198 = vmatprep.mubr.f32.mxu1 %v700_v23  ;;  %863 = vmatprep.mubr.f32.mxu0 %v11113_v42  ;;  %v679_v29 = vmul.f32 %v11575_v17, %v656_v24 }
 0x1e6   : > { %v10631_v14 = vpop.eup %10630  ;;  %v701_v4 = vadd.f32 %v11581_v25, %v678_v26  ;;  %v657_v15 = vmul.f32 %v10629_v27, %v11535_v6 }
 0x1e7   : > { %10640 = vrsqrt.f32 %v631_v28  ;;  %v702_v22 = vadd.f32 %v11581_v25, %v679_v29  ;;  %v658_v30 = vmul.f32 %v10631_v14, %v11542_v35 }
 0x1e8   : > { %864 = vmatmul.mubr.f32.gmra.mrb[8].mxu0 %v698_v1  ;;  %9199 = vmatmul.mubr.f32.gmra.mrb[6].mxu1 %v701_v4  ;;  %v680_v31 = vmul.f32 %v11575_v17, %v657_v15 }
 0x1e9   : > { %v10633_v44 = vpop.eup %10632  ;;  %9201 = vmatprep.mubr.f32.mxu1 %v702_v22  ;;  %869 = vmatprep.mubr.f32.mxu0 %v11113_v42  ;;  %v681_v32 = vmul.f32 %v11575_v17, %v658_v30 }
 0x1ea   : > { %v10635_v33 = vpop.eup %10634  ;;  %v703_v8 = vadd.f32 %v11581_v25, %v680_v31  ;;  %v659_v6 = vmul.f32 %v10633_v44, %v11545_v36 }
 0x1eb   : > { %v704_v34 = vadd.f32 %v11581_v25, %v681_v32  ;;  %v660_v9 = vmul.f32 %v10635_v33, %v11552_v54 }
 0x1ec   : > { %870 = vmatmul.mubr.f32.gmra.mrb[10].mxu0 %v699_v21  ;;  %9202 = vmatmul.mubr.f32.gmra.mrb[8].mxu1 %v703_v8  ;;  %v682_v35 = vmul.f32 %v11575_v17, %v659_v6 }
 0x1ed   : > { %v10637_v37 = vpop.eup %10636  ;;  %9204 = vmatprep.mubr.f32.mxu1 %v704_v34  ;;  %875 = vmatprep.mubr.f32.mxu0 %v11113_v42  ;;  %v683_v38 = vmul.f32 %v11575_v17, %v660_v9 }
 0x1ee   : > { %v10639_v39 = vpop.eup %10638  ;;  %v705_v40 = vadd.f32 %v11581_v25, %v682_v35  ;;  %v661_v41 = vmul.f32 %v10637_v37, %v11555_v55 }
 0x1ef   : > { %v706_v36 = vadd.f32 %v11581_v25, %v683_v38  ;;  %v662_v52 = vmul.f32 %v10639_v39, %v11562_v19 }
 0x1f0   : > { %876 = vmatmul.mubr.f32.gmra.mrb[12].mxu0 %v700_v23  ;;  %9205 = vmatmul.mubr.f32.gmra.mrb[10].mxu1 %v705_v40  ;;  %v684_v54 = vmul.f32 %v11575_v17, %v661_v41 }
 0x1f1   : > { %v10641_v43 = vpop.eup %10640  ;;  %9207 = vmatprep.mubr.f32.mxu1 %v706_v36  ;;  %881 = vmatprep.mubr.f32.mxu0 %v11113_v42  ;;  %v685_v46 = vmul.f32 %v11575_v17, %v662_v52 }
 0x1f2   : > { %v707_v45 = vadd.f32 %v11581_v25, %v684_v54  ;;  %v663_v47 = vmul.f32 %v10641_v43, %v11565_v20  ;;  %v760_v20 = vlaneseq }
 0x1f3   : > { %v708_v55 = vadd.f32 %v11581_v25, %v685_v46 }
 0x1f4   : > { %882 = vmatmul.mubr.f32.gmra.mrb[14].mxu0 %v701_v4  ;;  %9208 = vmatmul.mubr.f32.gmra.mrb[12].mxu1 %v707_v45  ;;  %v686_v19 = vmul.f32 %v11575_v17, %v663_v47  ;;  %v761_v17 = vshrl.u32 %v760_v20, 7 }
 0x1f5   : > { %9210 = vmatprep.mubr.f32.mxu1 %v708_v55  ;;  %887 = vmatprep.mubr.f32.mxu0 %v11113_v42 }
 0x1f6   : > { %v709_v48 = vadd.f32 %v11581_v25, %v686_v19  ;;  %v762_v25 = vsub.s32 0, %v761_v17  ;;  %v770_v50 = vsub.s32 2, %v761_v17  ;;  %v766_v11 = vsub.s32 1, %v761_v17 }
 0x1f8   : > { %888 = vmatmul.mubr.f32.gmra.mrb[16].mxu0 %v702_v22  ;;  %9211 = vmatmul.mubr.f32.gmra.mrb[14].mxu1 %v709_v48  ;;  %v11648_v49 = vrot.slane %v758_v10, %v762_v25  ;;  %v11653_v57 = vrot.slane %v758_v10, %v770_v50 }
 0x1f9   : > { %893 = vmatprep.mubr.f32.mxu0 %v11113_v42 }
 0x1fc   : > { %894 = vmatmul.mubr.f32.gmra.mrb[18].mxu0 %v703_v8 }
 0x1fd   : > { %899 = vmatprep.mubr.f32.mxu0 %v11113_v42 }
 0x200   : > { %900 = vmatmul.mubr.f32.gmra.mrb[20].mxu0 %v704_v34 }
 0x201   : > { %905 = vmatprep.mubr.f32.mxu0 %v11113_v42 }
 0x204   : > { %906 = vmatmul.mubr.f32.gmra.mrb[22].mxu0 %v705_v40 }
 0x205   : > { %911 = vmatprep.mubr.f32.mxu0 %v11113_v42 }
 0x208   : > { %912 = vmatmul.mubr.f32.gmra.mrb[24].mxu0 %v706_v36 }
 0x209   : > { %917 = vmatprep.mubr.f32.mxu0 %v11113_v42 }
 0x20c   : > { %918 = vmatmul.mubr.f32.gmra.mrb[26].mxu0 %v707_v45 }
 0x20d   : > { %923 = vmatprep.mubr.f32.mxu0 %v11113_v42 }
 0x210   : > { %924 = vmatmul.mubr.f32.gmra.mrb[28].mxu0 %v708_v55 }
 0x211   : > { %929 = vmatprep.mubr.f32.mxu0 %v11113_v42  ;;  %v11655_v42 = vrot.slane %v758_v10, %v766_v11 }
 0x214   : > { %930 = vmatmul.mubr.f32.gmra.mrb[30].mxu0 %v709_v48 }
 0x2ab   : > { %v841_v51 = vpop.f32.mrb[0].mxu0 }
 0x2ac   : > { %v11651_v56 = vadd.f32 %v841_v51, %v11648_v49  ;;  %v843_v53 = vpop.f32.mrb[1].mxu0 }
 0x2ad   : > { %v844_v60 = vadd.f32 %v843_v53, %v11655_v42 }
 0x2ae   : > { %9217 = vmatprep.mubr.msk.f32.mxu1 %vm1161_vm0, %v11651_v56 }
 0x2af   : > { %v847_v58 = vpop.f32.mrb[2].mxu0  ;;  %v9191_v59 = vpop.f32.mrb[0].mxu1 }
 0x2b0   : > { %v1008_v62 = vadd.f32 %v9191_v59, %v11653_v57  ;;  %v849_v63 = vpop.f32.mrb[3].mxu0  ;;  %v1002_v0 = vpop.f32.mrb[1].mxu1  ;;  %v11690_v44 = vadd.f32 %v847_v58, %v11648_v49 }
 0x2b1   : > { %v850_v1 = vadd.f32 %v849_v63, %v11655_v42  ;;  %v1003_v2 = vadd.f32 %v1002_v0, %v11653_v57 }
 0x2b3   : > { %v853_v3 = vpop.f32.mrb[4].mxu0  ;;  %v9194_v5 = vpop.f32.mrb[2].mxu1  ;;  %v9853_v13 = vpack.c.bf16 %v850_v1, %v844_v60  ;;  %v11669_v61 = vpack.c.bf16 %v1008_v62, %v1003_v2  ;;  %v11671_v18 = vpack.i.bf16 %v850_v1, %v844_v60  ;;  %v11673_v21 = vpack.i.bf16 %v1008_v62, %v1003_v2 }
 0x2b4   : > { %v1018_v16 = vadd.f32 %v9194_v5, %v11653_v57  ;;  %v855_v7 = vpop.f32.mrb[5].mxu0  ;;  %v1012_v23 = vpop.f32.mrb[3].mxu1  ;;  %v11699_v35 = vadd.f32 %v853_v3, %v11648_v49 }
 0x2b5   : > { %13390 = vst [vmem:[#allocation24_spill] sm:$0xff] %v11673_v21  ;;  %v1013_v24 = vadd.f32 %v1012_v23, %v11653_v57  ;;  %9855 = vmatprep.subr.msk.bf16.mxu1 %vm11665_vm1, %v9853_v13  ;;  %v856_v22 = vadd.f32 %v855_v7, %v11655_v42 }
 0x2b6   : > { %9858 = vmatpush3.bf16.xpose.msk.msra.mxu1 %vm11665_vm1, %v9853_v13  ;;  %13393 = vst [vmem:[#allocation27_spill] sm:$0xff] %v11699_v35 }
 0x2b7   : > { %v859_v26 = vpop.f32.mrb[6].mxu0  ;;  %v9197_v27 = vpop.f32.mrb[4].mxu1  ;;  %v11681_v28 = vpack.c.bf16 %v1018_v16, %v1013_v24  ;;  %v11683_v29 = vpack.i.bf16 %v1018_v16, %v1013_v24 }
 0x2b8   : > { %v1028_v14 = vadd.f32 %v9197_v27, %v11653_v57  ;;  %v861_v4 = vpop.f32.mrb[7].mxu0  ;;  %v1022_v15 = vpop.f32.mrb[5].mxu1  ;;  %v11720_v48 = vadd.f32 %v859_v26, %v11648_v49 }
 0x2b9   : > { %13391 = vst [vmem:[#allocation25_spill] sm:$0xff] %v11683_v29  ;;  %v862_v30 = vadd.f32 %v861_v4, %v11655_v42  ;;  %v1023_v31 = vadd.f32 %v1022_v15, %v11653_v57 }
 0x2ba   : > { %13395 = vst [vmem:[#allocation29_spill] sm:$0xff] %v11720_v48 }
 0x2bb   : > { %v865_v32 = vpop.f32.mrb[8].mxu0  ;;  %v9200_v33 = vpop.f32.mrb[6].mxu1  ;;  %v9859_v8 = vpack.c.bf16 %v862_v30, %v856_v22  ;;  %v11692_v6 = vpack.c.bf16 %v1028_v14, %v1023_v31  ;;  %v11694_v34 = vpack.i.bf16 %v862_v30, %v856_v22  ;;  %v11696_v9 = vpack.i.bf16 %v1028_v14, %v1023_v31 }
 0x2bc   : > { %v1038_v37 = vadd.f32 %v9200_v33, %v11653_v57  ;;  %v867_v38 = vpop.f32.mrb[9].mxu0  ;;  %v1032_v39 = vpop.f32.mrb[7].mxu1  ;;  %v11729_v51 = vadd.f32 %v865_v32, %v11648_v49 }
 0x2bd   : > { %13392 = vst [vmem:[#allocation26_spill] sm:$0xff] %v11696_v9  ;;  %v1033_v40 = vadd.f32 %v1032_v39, %v11653_v57  ;;  %9218 = vmatmul.mubr.msk.f32.vlgmr.msra.gmra.mrb[16].mxu1 %vm1161_vm0, %v11690_v44  ;;  %9861 = vmatprep.subr.msk.bf16.mxu1 %vm11665_vm1, %v9859_v8  ;;  %v868_v47 = vadd.f32 %v867_v38, %v11655_v42 }
 0x2be   : > { %9864 = vmatpush3.bf16.xpose.msk.msra.mxu1 %vm11665_vm1, %v9859_v8  ;;  %9224 = vmatprep.mubr.msk.f32.mxu1 %vm1161_vm0, %v11699_v35 }
 0x2bf   : > { %v871_v41 = vpop.f32.mrb[10].mxu0  ;;  %v9203_v36 = vpop.f32.mrb[8].mxu1  ;;  %v11711_v52 = vpack.c.bf16 %v1038_v37, %v1033_v40  ;;  %v11713_v54 = vpack.i.bf16 %v1038_v37, %v1033_v40 }
 0x2c0   : > { %v1048_v43 = vadd.f32 %v9203_v36, %v11653_v57  ;;  %v873_v46 = vpop.f32.mrb[11].mxu0  ;;  %v1042_v45 = vpop.f32.mrb[9].mxu1  ;;  %v11750_v23 = vadd.f32 %v871_v41, %v11648_v49 }
 0x2c1   : > { %13394 = vst [vmem:[#allocation28_spill] sm:$0xff] %v11713_v54  ;;  %v874_v55 = vadd.f32 %v873_v46, %v11655_v42  ;;  %v1043_v19 = vadd.f32 %v1042_v45, %v11653_v57 }
 0x2c3   : > { %v877_v20 = vpop.f32.mrb[12].mxu0  ;;  %v9206_v17 = vpop.f32.mrb[10].mxu1  ;;  %v9865_v25 = vpack.c.bf16 %v874_v55, %v868_v47  ;;  %v11722_v10 = vpack.i.bf16 %v874_v55, %v868_v47  ;;  %v11724_v50 = vpack.c.bf16 %v1048_v43, %v1043_v19  ;;  %v11726_v11 = vpack.i.bf16 %v1048_v43, %v1043_v19 }
 0x2c4   : > { %v1058_v53 = vadd.f32 %v9206_v17, %v11653_v57  ;;  %v879_v58 = vpop.f32.mrb[13].mxu0  ;;  %v1052_v59 = vpop.f32.mrb[11].mxu1  ;;  %v11753_v24 = vadd.f32 %v877_v20, %v11648_v49 }
 0x2c5   : > { %13396 = vst [vmem:[#allocation30_spill] sm:$0xff] %v11722_v10  ;;  %13397 = vst [vmem:[#allocation31_spill] sm:$0xff] %v11726_v11  ;;  %v1053_v62 = vadd.f32 %v1052_v59, %v11653_v57  ;;  %9225 = vmatmul.mubr.msk.f32.vlgmr.msra.gmra.mrb[18].mxu1 %vm1161_vm0, %v11720_v48  ;;  %9867 = vmatprep.subr.msk.bf16.mxu1 %vm11665_vm1, %v9865_v25  ;;  %v880_v13 = vadd.f32 %v879_v58, %v11655_v42 }
 0x2c6   : > { %9870 = vmatpush3.bf16.xpose.msk.msra.mxu1 %vm11665_vm1, %v9865_v25  ;;  %9231 = vmatprep.mubr.msk.f32.mxu1 %vm1161_vm0, %v11729_v51 }
 0x2c7   : > { %v883_v63 = vpop.f32.mrb[14].mxu0  ;;  %v9209_v0 = vpop.f32.mrb[12].mxu1  ;;  %v11741_v60 = vpack.c.bf16 %v1058_v53, %v1053_v62  ;;  %v11743_v1 = vpack.i.bf16 %v1058_v53, %v1053_v62 }
 0x2c8   : > { %v1068_v2 = vadd.f32 %v9209_v0, %v11653_v57  ;;  %v885_v3 = vpop.f32.mrb[15].mxu0  ;;  %v1062_v5 = vpop.f32.mrb[13].mxu1  ;;  %v11783_v36 = vadd.f32 %v883_v63, %v11648_v49 }
 0x2c9   : > { %13398 = vst [vmem:[#allocation32_spill] sm:$0xff] %v11743_v1  ;;  %v886_v16 = vadd.f32 %v885_v3, %v11655_v42  ;;  %v1063_v7 = vadd.f32 %v1062_v5, %v11653_v57 }
 0x2cb   : > { %v889_v26 = vpop.f32.mrb[16].mxu0  ;;  %v9212_v27 = vpop.f32.mrb[14].mxu1  ;;  %v9871_v14 = vpack.c.bf16 %v886_v16, %v880_v13  ;;  %v11755_v4 = vpack.i.bf16 %v886_v16, %v880_v13  ;;  %v11757_v15 = vpack.c.bf16 %v1068_v2, %v1063_v7  ;;  %v11759_v22 = vpack.i.bf16 %v1068_v2, %v1063_v7 }
 0x2cc   : > { %v11762_v30 = vadd.f32 %v889_v26, %v11648_v49  ;;  %v1078_v31 = vadd.f32 %v9212_v27, %v11653_v57  ;;  %v891_v32 = vpop.f32.mrb[17].mxu0  ;;  %v1072_v33 = vpop.f32.mrb[15].mxu1 }
 0x2cd   : > { %13399 = vst [vmem:[#allocation33_spill] sm:$0xff] %v11755_v4  ;;  %13400 = vst [vmem:[#allocation34_spill] sm:$0xff] %v11759_v22  ;;  %v1073_v8 = vadd.f32 %v1072_v33, %v11653_v57  ;;  %9232 = vmatmul.mubr.msk.f32.vlgmr.msra.gmra.mrb[20].mxu1 %vm1161_vm0, %v11750_v23  ;;  %9873 = vmatprep.subr.msk.bf16.mxu1 %vm11665_vm1, %v9871_v14  ;;  %v892_v40 = vadd.f32 %v891_v32, %v11655_v42 }
 0x2ce   : > { %9876 = vmatpush3.bf16.xpose.msk.msra.mxu1 %vm11665_vm1, %v9871_v14  ;;  %9238 = vmatprep.mubr.msk.f32.mxu1 %vm1161_vm0, %v11753_v24 }
 0x2cf   : > { %9245 = vmatprep.mubr.msk.f32.mxu0 %vm1161_vm0, %v11762_v30  ;;  %v895_v37 = vpop.f32.mrb[18].mxu0  ;;  %v11776_v38 = vpack.c.bf16 %v1078_v31, %v1073_v8  ;;  %v11778_v39 = vpack.i.bf16 %v1078_v31, %v1073_v8 }
 0x2d0   : > { %v897_v57 = vpop.f32.mrb[19].mxu0  ;;  %v11801_v53 = vadd.f32 %v895_v37, %v11648_v49 }
 0x2d1   : > { %v898_v41 = vadd.f32 %v897_v57, %v11655_v42 }
 0x2d2   : > { %13402 = vst [vmem:[#allocation36_spill] sm:$0xff] %v11801_v53 }
 0x2d3   : > { %v901_v43 = vpop.f32.mrb[20].mxu0  ;;  %v9877_v46 = vpack.c.bf16 %v898_v41, %v892_v40  ;;  %v11785_v45 = vpack.i.bf16 %v898_v41, %v892_v40 }
 0x2d4   : > { %v11788_v47 = vadd.f32 %v901_v43, %v11648_v49  ;;  %v903_v55 = vpop.f32.mrb[21].mxu0 }
 0x2d5   : > { %9239 = vmatmul.mubr.msk.f32.vlgmr.msra.gmra.mrb[22].mxu1 %vm1161_vm0, %v11783_v36  ;;  %9879 = vmatprep.subr.msk.bf16.mxu0 %vm11665_vm1, %v9877_v46  ;;  %v904_v17 = vadd.f32 %v903_v55, %v11655_v42 }
 0x2d6   : > { %13401 = vst [vmem:[#allocation35_spill] sm:$0xff] %v11788_v47  ;;  %9882 = vmatpush3.bf16.xpose.msk.msra.mxu0 %vm11665_vm1, %v9877_v46  ;;  %9252 = vmatprep.mubr.msk.f32.mxu1 %vm1161_vm0, %v11788_v47 }
 0x2d7   : > { %v907_v19 = vpop.f32.mrb[22].mxu0 }
 0x2d8   : > { %v909_v20 = vpop.f32.mrb[23].mxu0  ;;  %v11822_v7 = vadd.f32 %v907_v19, %v11648_v49 }
 0x2d9   : > { %v910_v25 = vadd.f32 %v909_v20, %v11655_v42 }
 0x2db   : > { %v913_v58 = vpop.f32.mrb[24].mxu0  ;;  %v9883_v59 = vpack.c.bf16 %v910_v25, %v904_v17  ;;  %v11803_v62 = vpack.i.bf16 %v910_v25, %v904_v17  ;;  %v1100_v17 = vld [vmem:[%s11421_s26 + $0x18] sm:$0xff] }
 0x2dc   : > { %v11806_v63 = vadd.f32 %v913_v58, %v11648_v49  ;;  %v915_v0 = vpop.f32.mrb[25].mxu0  ;;  %v1099_v58 = vld [vmem:[%s11421_s26 + $0x10] sm:$0xff] }
 0x2dd   : > { %9246 = vmatmul.mubr.msk.f32.vlgmr.msra.gmra.mrb[32].mxu0 %vm1161_vm0, %v11801_v53  ;;  %9885 = vmatprep.subr.msk.bf16.mxu1 %vm11665_vm1, %v9883_v59  ;;  %v916_v13 = vadd.f32 %v915_v0, %v11655_v42 }
 0x2de   : > { %13403 = vst [vmem:[#allocation37_spill] sm:$0xff] %v11806_v63  ;;  %9888 = vmatpush3.bf16.xpose.msk.msra.mxu1 %vm11665_vm1, %v9883_v59  ;;  %9259 = vmatprep.mubr.msk.f32.mxu0 %vm1161_vm0, %v11806_v63 }
 0x2df   : > { %v919_v2 = vpop.f32.mrb[26].mxu0 }
 0x2e0   : > { %v11817_v3 = vadd.f32 %v919_v2, %v11648_v49  ;;  %v921_v5 = vpop.f32.mrb[27].mxu0 }
 0x2e1   : > { %v922_v16 = vadd.f32 %v921_v5, %v11655_v42 }
 0x2e2   : > { %13404 = vst [vmem:[#allocation38_spill] sm:$0xff] %v11817_v3 }
 0x2e3   : > { %v925_v26 = vpop.f32.mrb[28].mxu0  ;;  %v9889_v27 = vpack.c.bf16 %v922_v16, %v916_v13  ;;  %v11824_v14 = vpack.i.bf16 %v922_v16, %v916_v13  ;;  %v1102_v13 = vld [vmem:[%s11421_s26 + $0x28] sm:$0xff] }
 0x2e4   : > { %v11827_v31 = vadd.f32 %v925_v26, %v11648_v49  ;;  %v927_v32 = vpop.f32.mrb[29].mxu0 }
 0x2e5   : > { %9253 = vmatmul.mubr.msk.f32.vlgmr.msra.gmra.mrb[24].mxu1 %vm1161_vm0, %v11822_v7  ;;  %9891 = vmatprep.subr.msk.bf16.mxu0 %vm11665_vm1, %v9889_v27  ;;  %v928_v57 = vadd.f32 %v927_v32, %v11655_v42 }
 0x2e6   : > { %13405 = vst [vmem:[#allocation39_spill] sm:$0xff] %v11827_v31  ;;  %9894 = vmatpush3.bf16.xpose.msk.msra.mxu0 %vm11665_vm1, %v9889_v27  ;;  %9266 = vmatprep.mubr.msk.f32.mxu1 %vm1161_vm0, %v11827_v31  ;;  %v1101_v27 = vld [vmem:[%s11421_s26 + $0x20] sm:$0xff] }
 0x2e7   : > { %v931_v33 = vpop.f32.mrb[30].mxu0  ;;  %9902 = vmatprep.subr.bf16.mxu0 %v11669_v61 }
 0x2e8   : > { %v11839_v8 = vadd.f32 %v931_v33, %v11648_v49  ;;  %v933_v37 = vpop.f32.mrb[31].mxu0  ;;  %v1098_v49 = vld [vmem:[%s11421_s26 + $0x8] sm:$0xff] }
 0x2e9   : > { %v934_v40 = vadd.f32 %v933_v37, %v11655_v42  ;;  %v1097_v42 = vld [vmem:[%s11421_s26] sm:$0xff] }
 0x2ea   : > { %13406 = vst [vmem:[#allocation40_spill] sm:$0xff] %v11839_v8 }
 0x2eb   : > { %v9895_v41 = vpack.c.bf16 %v934_v40, %v928_v57  ;;  %v11843_v43 = vpack.i.bf16 %v934_v40, %v928_v57  ;;  %v1104_v40 = vld [vmem:[%s11421_s26 + $0x38] sm:$0xff] }
 0x2ed   : > { %9260 = vmatmul.mubr.msk.f32.vlgmr.msra.gmra.mrb[34].mxu0 %vm1161_vm0, %v11817_v3  ;;  %9897 = vmatprep.subr.msk.bf16.mxu1 %vm11665_vm1, %v9895_v41 }
 0x2ee   : > { %9900 = vmatpush3.bf16.xpose.msk.msra.mxu1 %vm11665_vm1, %v9895_v41  ;;  %9904 = vmatpush3.bf16.msra.mxu0 %v11669_v61 }
 0x2ef   : > { %9906 = vmatprep.subr.bf16.mxu1 %v11681_v28  ;;  %9910 = vmatprep.subr.bf16.mxu0 %v11692_v6 }
 0x2f5   : > { %9267 = vmatmul.mubr.msk.f32.vlgmr.msra.gmra.mrb[26].mxu1 %vm1161_vm0, %v11839_v8 }
 0x2f6   : > { %9908 = vmatpush3.bf16.msra.mxu1 %v11681_v28 }
 0x2f7   : > { %9914 = vmatprep.subr.bf16.mxu1 %v11711_v52 }
 0x390   : > { %v9219_v46 = vpop.f32.mrb[16].mxu1 }
 0x391   : > { %v11860_v55 = vadd.f32 %v9219_v46, %v1098_v49  ;;  %v1240_v61 = vpop.f32.mrb[17].mxu1 }
 0x392   : > { %v11862_v19 = vadd.f32 %v1240_v61, %v1097_v42  ;;  %v1103_v42 = vld [vmem:[%s11421_s26 + $0x30] sm:$0xff] }
 0x393   : > { %v1862_v20 = vsel %vm1858_vm2, %v11860_v55, -inf }
 0x394   : > { %1863 = vmax.xlane.f32.xlu1 %v1862_v20  ;;  %v1859_v28 = vsel %vm1858_vm2, %v11862_v19, -inf }
 0x395   : > { %1860 = vmax.xlane.f32.xlu0 %v1859_v28 }
 0x398   : > { %v9226_v25 = vpop.f32.mrb[18].mxu1 }
 0x399   : > { %v11870_v59 = vadd.f32 %v9226_v25, %v1100_v17  ;;  %v1327_v0 = vpop.f32.mrb[19].mxu1  ;;  %v1106_v17 = vld [vmem:[%s11421_s26 + $0x48] sm:$0xff] }
 0x39a   : > { %v11872_v2 = vadd.f32 %v1327_v0, %v1099_v58  ;;  %v1105_v0 = vld [vmem:[%s11421_s26 + $0x40] sm:$0xff] }
 0x39b   : > { %v1868_v5 = vsel %vm1858_vm2, %v11870_v59, -inf }
 0x39c   : > { %1869 = vmax.xlane.f32.xlu0 %v1868_v5  ;;  %v1865_v16 = vsel %vm1858_vm2, %v11872_v2, -inf }
 0x3a0   : > { %v9233_v26 = vpop.f32.mrb[20].mxu1  ;;  %1866 = vmax.xlane.f32.xlu0 %v1865_v16 }
 0x3a1   : > { %v11880_v32 = vadd.f32 %v9233_v26, %v1102_v13  ;;  %v1414_v33 = vpop.f32.mrb[21].mxu1 }
 0x3a2   : > { %v11882_v37 = vadd.f32 %v1414_v33, %v1101_v27  ;;  %v1108_v27 = vld [vmem:[%s11421_s26 + $0x58] sm:$0xff] }
 0x3a3   : > { %v1874_v57 = vsel %vm1858_vm2, %v11880_v32, -inf }
 0x3a4   : > { %1875 = vmax.xlane.f32.xlu1 %v1874_v57  ;;  %v1871_v41 = vsel %vm1858_vm2, %v11882_v37, -inf  ;;  %v1107_v57 = vld [vmem:[%s11421_s26 + $0x50] sm:$0xff] }
 0x3a8   : > { %v9240_v49 = vpop.f32.mrb[22].mxu1  ;;  %1872 = vmax.xlane.f32.xlu1 %v1871_v41 }
 0x3a9   : > { %v11890_v46 = vadd.f32 %v9240_v49, %v1104_v40  ;;  %v1501_v61 = vpop.f32.mrb[23].mxu1 }
 0x3aa   : > { %v11892_v20 = vadd.f32 %v1501_v61, %v1103_v42 }
 0x3ab   : > { %v1880_v28 = vsel %vm1858_vm2, %v11890_v46, -inf }
 0x3ac   : > { %1881 = vmax.xlane.f32.xlu0 %v1880_v28  ;;  %v1877_v25 = vsel %vm1858_vm2, %v11892_v20, -inf }
 0x3b0   : > { %1878 = vmax.xlane.f32.xlu0 %v1877_v25  ;;  %v9247_v58 = vpop.f32.mrb[32].mxu0  ;;  %v1109_v25 = vld [vmem:[%s11421_s26 + $0x60] sm:$0xff] }
 0x3b1   : > { %v11900_v5 = vadd.f32 %v9247_v58, %v1106_v17  ;;  %v1588_v13 = vpop.f32.mrb[33].mxu0  ;;  %v1110_v17 = vld [vmem:[%s11421_s26 + $0x68] sm:$0xff] }
 0x3b2   : > { %v11902_v16 = vadd.f32 %v1588_v13, %v1105_v0 }
 0x3b3   : > { %v1886_v26 = vsel %vm1858_vm2, %v11900_v5, -inf }
 0x3b4   : > { %1887 = vmax.xlane.f32.xlu1 %v1886_v26  ;;  %v1883_v33 = vsel %vm1858_vm2, %v11902_v16, -inf }
 0x3b8   : > { %v9254_v40 = vpop.f32.mrb[24].mxu1  ;;  %1884 = vmax.xlane.f32.xlu1 %v1883_v33 }
 0x3b9   : > { %v11910_v41 = vadd.f32 %v9254_v40, %v1108_v27  ;;  %v1675_v49 = vpop.f32.mrb[25].mxu1  ;;  %v1111_v40 = vld [vmem:[%s11421_s26 + $0x70] sm:$0xff] }
 0x3ba   : > { %v11912_v42 = vadd.f32 %v1675_v49, %v1107_v57  ;;  %v1112_v57 = vld [vmem:[%s11421_s26 + $0x78] sm:$0xff] }
 0x3bb   : > { %v1892_v61 = vsel %vm1858_vm2, %v11910_v41, -inf }
 0x3bc   : > { %1893 = vmax.xlane.f32.xlu1 %v1892_v61  ;;  %v1889_v28 = vsel %vm1858_vm2, %v11912_v42, -inf }
 0x3bd   : > { %1890 = vmax.xlane.f32.xlu0 %v1889_v28 }
 0x3c0   : > { %v9261_v58 = vpop.f32.mrb[34].mxu0 }
 0x3c1   : > { %v11920_v0 = vadd.f32 %v9261_v58, %v1110_v17  ;;  %v1762_v13 = vpop.f32.mrb[35].mxu0 }
 0x3c2   : > { %v11922_v26 = vadd.f32 %v1762_v13, %v1109_v25 }
 0x3c3   : > { %v1898_v27 = vsel %vm1858_vm2, %v11920_v0, -inf }
 0x3c4   : > { %1899 = vmax.xlane.f32.xlu1 %v1898_v27  ;;  %v1895_v33 = vsel %vm1858_vm2, %v11922_v26, -inf }
 0x3c5   : > { %1896 = vmax.xlane.f32.xlu0 %v1895_v33 }
 0x3c8   : > { %v9268_v49 = vpop.f32.mrb[26].mxu1 }
 0x3c9   : > { %v11930_v61 = vadd.f32 %v9268_v49, %v1112_v57  ;;  %v1849_v28 = vpop.f32.mrb[27].mxu1 }
 0x3ca   : > { %v11932_v22 = vadd.f32 %v1849_v28, %v1111_v40 }
 0x3cb   : > { %v1904_v17 = vsel %vm1858_vm2, %v11930_v61, -inf }
 0x3cc   : > { %1905 = vmax.xlane.f32.xlu1 %v1904_v17  ;;  %v1901_v25 = vsel %vm1858_vm2, %v11932_v22, -inf }
 0x3cd   : > { %1902 = vmax.xlane.f32.xlu0 %v1901_v25 }
 0x3dd   : > { %10376 = vrot.lane.b32.xlu1 %v11694_v34, %s11114_s14 }
 0x3e1   : > { %10381 = vrot.lane.b32.xlu1 %v11722_v10, %s11114_s14 }
 0x3e3   : > { %10371 = vrot.lane.b32.xlu0 %v11671_v18, %s11114_s14 }
 0x3e5   : > { %2683 = vrot.lane.b32.xlu1 %v11651_v56, %s11114_s14 }
 0x3e7   : > { %2685 = vrot.lane.b32.xlu0 %v11690_v44, %s11114_s14 }
 0x3e9   : > { %10386 = vrot.lane.b32.xlu1 %v11755_v4, %s11114_s14 }
 0x3eb   : > { %2774 = vrot.lane.b32.xlu0 %v11699_v35, %s11114_s14 }
 0x3ed   : > { %2776 = vrot.lane.b32.xlu1 %v11720_v48, %s11114_s14 }
 0x421   : > { %v1864_v58 = vpop.xlane.xlu1 %1863 }
 0x422   : > { %v1908_v13 = vsub.f32 %v11860_v55, %v1864_v58  ;;  %v1861_v27 = vpop.xlane.xlu0 %1860 }
 0x423   : > { %v1907_v33 = vsub.f32 %v11862_v19, %v1861_v27 }
 0x424   : > { %v1925_v57 = vmul.f32 1.442695, %v1908_v13 }
 0x425   : > { %v1923_v40 = vmul.f32 1.442695, %v1907_v33 }
 0x426   : > { %10642 = vpow2.f32 %v1925_v57 }
 0x427   : > { %10644 = vpow2.f32 %v1923_v40 }
 0x429   : > { %v1870_v49 = vpop.xlane.xlu0 %1869 }
 0x42a   : > { %v1910_v28 = vsub.f32 %v11870_v59, %v1870_v49 }
 0x42c   : > { %v1929_v17 = vmul.f32 1.442695, %v1910_v28 }
 0x42d   : > { %v1867_v25 = vpop.xlane.xlu0 %1866 }
 0x42e   : > { %10646 = vpow2.f32 %v1929_v17  ;;  %v1909_v4 = vsub.f32 %v11872_v2, %v1867_v25 }
 0x430   : > { %v11958_v10 = vpop.eup %10642  ;;  %v1927_v48 = vmul.f32 1.442695, %v1909_v4 }
 0x431   : > { %v11960_v35 = vpop.eup %10644  ;;  %v1876_v55 = vpop.xlane.xlu1 %1875  ;;  %v1958_v19 = vsel %vm1858_vm2, %v11958_v10, 0.0 }
 0x432   : > { %10648 = vpow2.f32 %v1927_v48  ;;  %v1912_v58 = vsub.f32 %v11880_v32, %v1876_v55  ;;  %1959 = vadd.xlane.f32.xlu1 %v1958_v19  ;;  %v1955_v59 = vsel %vm1858_vm2, %v11960_v35, 0.0 }
 0x433   : > { %1956 = vadd.xlane.f32.xlu0 %v1955_v59 }
 0x434   : > { %v1933_v13 = vmul.f32 1.442695, %v1912_v58 }
 0x435   : > { %v1873_v27 = vpop.xlane.xlu1 %1872 }
 0x436   : > { %10650 = vpow2.f32 %v1933_v13  ;;  %v1911_v2 = vsub.f32 %v11882_v37, %v1873_v27 }
 0x438   : > { %v11968_v4 = vpop.eup %10646  ;;  %v1931_v33 = vmul.f32 1.442695, %v1911_v2 }
 0x439   : > { %v1882_v57 = vpop.xlane.xlu0 %1881  ;;  %v1964_v40 = vsel %vm1858_vm2, %v11968_v4, 0.0 }
 0x43a   : > { %10652 = vpow2.f32 %v1931_v33  ;;  %v1914_v48 = vsub.f32 %v11890_v46, %v1882_v57  ;;  %1965 = vadd.xlane.f32.xlu0 %v1964_v40 }
 0x43c   : > { %v11973_v32 = vpop.eup %10648  ;;  %v1937_v49 = vmul.f32 1.442695, %v1914_v48 }
 0x43d   : > { %v1879_v28 = vpop.xlane.xlu0 %1878  ;;  %v1961_v17 = vsel %vm1858_vm2, %v11973_v32, 0.0 }
 0x43e   : > { %10654 = vpow2.f32 %v1937_v49  ;;  %v1913_v37 = vsub.f32 %v11892_v20, %v1879_v28  ;;  %1962 = vadd.xlane.f32.xlu0 %v1961_v17 }
 0x440   : > { %v11978_v25 = vpop.eup %10650  ;;  %v1935_v55 = vmul.f32 1.442695, %v1913_v37 }
 0x441   : > { %v1888_v19 = vpop.xlane.xlu1 %1887  ;;  %v1970_v58 = vsel %vm1858_vm2, %v11978_v25, 0.0 }
 0x442   : > { %10656 = vpow2.f32 %v1935_v55  ;;  %v1916_v46 = vsub.f32 %v11900_v5, %v1888_v19  ;;  %1971 = vadd.xlane.f32.xlu1 %v1970_v58 }
 0x444   : > { %v11983_v59 = vpop.eup %10652  ;;  %v1941_v13 = vmul.f32 1.442695, %v1916_v46 }
 0x445   : > { %v1885_v27 = vpop.xlane.xlu1 %1884  ;;  %v1967_v2 = vsel %vm1858_vm2, %v11983_v59, 0.0 }
 0x446   : > { %10658 = vpow2.f32 %v1941_v13  ;;  %v1915_v20 = vsub.f32 %v11902_v16, %v1885_v27  ;;  %1968 = vadd.xlane.f32.xlu1 %v1967_v2 }
 0x448   : > { %v11988_v33 = vpop.eup %10654  ;;  %v1939_v57 = vmul.f32 1.442695, %v1915_v20 }
 0x449   : > { %v1894_v40 = vpop.xlane.xlu1 %1893  ;;  %v1976_v48 = vsel %vm1858_vm2, %v11988_v33, 0.0 }
 0x44a   : > { %10660 = vpow2.f32 %v1939_v57  ;;  %v1918_v5 = vsub.f32 %v11910_v41, %v1894_v40  ;;  %v1891_v49 = vpop.xlane.xlu0 %1890  ;;  %1977 = vadd.xlane.f32.xlu0 %v1976_v48 }
 0x44b   : > { %v1917_v28 = vsub.f32 %v11912_v42, %v1891_v49 }
 0x44c   : > { %v11994_v17 = vpop.eup %10656  ;;  %v1945_v37 = vmul.f32 1.442695, %v1918_v5 }
 0x44d   : > { %v1943_v55 = vmul.f32 1.442695, %v1917_v28  ;;  %v1973_v16 = vsel %vm1858_vm2, %v11994_v17, 0.0 }
 0x44e   : > { %10662 = vpow2.f32 %v1945_v37  ;;  %1974 = vadd.xlane.f32.xlu0 %v1973_v16 }
 0x44f   : > { %10664 = vpow2.f32 %v1943_v55 }
 0x450   : > { %v11998_v19 = vpop.eup %10658 }
 0x451   : > { %v1900_v58 = vpop.xlane.xlu1 %1899  ;;  %v1982_v41 = vsel %vm1858_vm2, %v11998_v19, 0.0 }
 0x452   : > { %v1920_v46 = vsub.f32 %v11920_v0, %v1900_v58  ;;  %v1897_v13 = vpop.xlane.xlu0 %1896  ;;  %1983 = vadd.xlane.f32.xlu1 %v1982_v41 }
 0x453   : > { %v1919_v42 = vsub.f32 %v11922_v26, %v1897_v13 }
 0x454   : > { %v12004_v27 = vpop.eup %10660  ;;  %v1949_v2 = vmul.f32 1.442695, %v1920_v46 }
 0x455   : > { %v1947_v20 = vmul.f32 1.442695, %v1919_v42  ;;  %v1979_v57 = vsel %vm1858_vm2, %v12004_v27, 0.0 }
 0x456   : > { %10666 = vpow2.f32 %v1949_v2  ;;  %1980 = vadd.xlane.f32.xlu1 %v1979_v57 }
 0x457   : > { %10668 = vpow2.f32 %v1947_v20 }
 0x458   : > { %v12008_v40 = vpop.eup %10662 }
 0x459   : > { %v12010_v48 = vpop.eup %10664  ;;  %v1906_v5 = vpop.xlane.xlu1 %1905  ;;  %v1988_v0 = vsel %vm1858_vm2, %v12008_v40, 0.0 }
 0x45a   : > { %v1922_v26 = vsub.f32 %v11930_v61, %v1906_v5  ;;  %1989 = vadd.xlane.f32.xlu1 %v1988_v0  ;;  %v1903_v49 = vpop.xlane.xlu0 %1902  ;;  %v1985_v28 = vsel %vm1858_vm2, %v12010_v48, 0.0 }
 0x45b   : > { %v1921_v37 = vsub.f32 %v11932_v22, %v1903_v49  ;;  %1986 = vadd.xlane.f32.xlu0 %v1985_v28 }
 0x45c   : > { %v1953_v55 = vmul.f32 1.442695, %v1922_v26 }
 0x45d   : > { %v1951_v16 = vmul.f32 1.442695, %v1921_v37  ;;  %v12072_v20 = vpop.permute.xlu1 %10376 }
 0x45e   : > { %10670 = vpow2.f32 %v1953_v55  ;;  %v12080_v0 = vpop.permute.xlu0 %10371 }
 0x45f   : > { %10672 = vpow2.f32 %v1951_v16 }
 0x460   : > { %v12018_v58 = vpop.eup %10666 }
 0x461   : > { %v12020_v41 = vpop.eup %10668  ;;  %v1994_v46 = vsel %vm1858_vm2, %v12018_v58, 0.0  ;;  %v12076_v57 = vpop.permute.xlu1 %10381 }
 0x462   : > { %1995 = vadd.xlane.f32.xlu1 %v1994_v46  ;;  %v1991_v61 = vsel %vm1858_vm2, %v12020_v41, 0.0  ;;  %v12084_v49 = vpop.permute.xlu0 %2685 }
 0x463   : > { %1992 = vadd.xlane.f32.xlu0 %v1991_v61 }
 0x465   : > { %v12078_v5 = vpop.permute.xlu1 %2683 }
 0x466   : > { %v12088_v37 = vpop.permute.xlu0 %2774 }
 0x468   : > { %v12026_v13 = vpop.eup %10670 }
 0x469   : > { %v12028_v22 = vpop.eup %10672  ;;  %v2000_v42 = vsel %vm1858_vm2, %v12026_v13, 0.0  ;;  %v12082_v26 = vpop.permute.xlu1 %10386 }
 0x46a   : > { %2001 = vadd.xlane.f32.xlu1 %v2000_v42  ;;  %v1997_v2 = vsel %vm1858_vm2, %v12028_v22, 0.0 }
 0x46b   : > { %1998 = vadd.xlane.f32.xlu0 %v1997_v2 }
 0x46d   : > { %v12086_v28 = vpop.permute.xlu1 %2776 }
 0x47b   : > { %2865 = vrot.lane.b32.xlu1 %v11729_v51, %s11114_s14 }
 0x47f   : > { %10396 = vrot.lane.b32.xlu1 %v11803_v62, %s11114_s14 }
 0x481   : > { %10391 = vrot.lane.b32.xlu0 %v11785_v45, %s11114_s14 }
 0x483   : > { %2958 = vrot.lane.b32.xlu1 %v11783_v36, %s11114_s14 }
 0x485   : > { %2867 = vrot.lane.b32.xlu0 %v11750_v23, %s11114_s14 }
 0x487   : > { %3047 = vrot.lane.b32.xlu1 %v11762_v30, %s11114_s14 }
 0x489   : > { %2956 = vrot.lane.b32.xlu0 %v11753_v24, %s11114_s14 }
 0x48b   : > { %10406 = vrot.lane.b32.xlu1 %v11843_v43, %s11114_s14 }
 0x48d   : > { %10401 = vrot.lane.b32.xlu0 %v11824_v14, %s11114_s14 }
 0x48f   : > { %3140 = vrot.lane.b32.xlu1 %v11822_v7, %s11114_s14 }
 0x491   : > { %3049 = vrot.lane.b32.xlu0 %v11801_v53, %s11114_s14 }
 0x493   : > { %3231 = vrot.lane.b32.xlu1 %v11817_v3, %s11114_s14 }
 0x495   : > { %3138 = vrot.lane.b32.xlu0 %v11788_v47, %s11114_s14 }
 0x497   : > { %3322 = vrot.lane.b32.xlu1 %v11839_v8, %s11114_s14 }
 0x499   : > { %3229 = vrot.lane.b32.xlu0 %v11806_v63, %s11114_s14 }
 0x49b   : > { %10416 = vrot.lane.b32.xlu1 %v11683_v29, %s11114_s14 }
 0x49d   : > { %3320 = vrot.lane.b32.xlu0 %v11827_v31, %s11114_s14 }
 0x49f   : > { %10421 = vrot.lane.b32.xlu1 %v11696_v9, %s11114_s14 }
 0x4a1   : > { %10411 = vrot.lane.b32.xlu0 %v11673_v21, %s11114_s14 }
 0x4a3   : > { %10426 = vrot.lane.b32.xlu1 %v11713_v54, %s11114_s14 }
 0x4bf   : > { %v1960_v55 = vpop.xlane.xlu1 %1959 }
 0x4c0   : > { %10674 = vrcp.f32 %v1960_v55  ;;  %v1957_v16 = vpop.xlane.xlu0 %1956 }
 0x4c1   : > { %10676 = vrcp.f32 %v1957_v16 }
 0x4c7   : > { %v1966_v46 = vpop.xlane.xlu0 %1965 }
 0x4c8   : > { %10678 = vrcp.f32 %v1966_v46 }
 0x4ca   : > { %v10675_v61 = vpop.eup %10674 }
 0x4cb   : > { %v10677_v42 = vpop.eup %10676  ;;  %v1963_v2 = vpop.xlane.xlu0 %1962  ;;  %v2020_v54 = vmul.f32 %v10675_v61, %v11958_v10 }
 0x4cc   : > { %10680 = vrcp.f32 %v1963_v2  ;;  %v2019_v9 = vmul.f32 %v10677_v42, %v11960_v35 }
 0x4ce   : > { %9273 = vmatprep.mubr.msk.f32.mxu0 %vm1858_vm2, %v2019_v9 }
 0x4cf   : > { %v1972_v21 = vpop.xlane.xlu1 %1971  ;;  %9274 = vmatmul.mubr.msk.f32.vlgmr.msra.gmra.mrb[36].mxu0 %vm1858_vm2, %v2020_v54 }
 0x4d0   : > { %9912 = vmatpush3.bf16.msra.mxu0 %v11692_v6  ;;  %10682 = vrcp.f32 %v1972_v21 }
 0x4d1   : > { %9918 = vmatprep.subr.bf16.mxu0 %v11724_v50 }
 0x4d2   : > { %v10679_v16 = vpop.eup %10678 }
 0x4d3   : > { %v1969_v55 = vpop.xlane.xlu1 %1968  ;;  %v2022_v35 = vmul.f32 %v10679_v16, %v11968_v4  ;;  %v10374_v16 = vunpack.i.h.bf16 %v12080_v0 }
 0x4d4   : > { %10684 = vrcp.f32 %v1969_v55 }
 0x4d6   : > { %v10681_v46 = vpop.eup %10680 }
 0x4d7   : > { %v1978_v29 = vpop.xlane.xlu0 %1977  ;;  %v2021_v2 = vmul.f32 %v10681_v46, %v11973_v32  ;;  %v10373_v46 = vunpack.i.l.bf16 %v12080_v0 }
 0x4d8   : > { %10686 = vrcp.f32 %v1978_v29 }
 0x4d9   : > { %9280 = vmatprep.mubr.msk.f32.mxu1 %vm1858_vm2, %v2021_v2 }
 0x4da   : > { %9281 = vmatmul.mubr.msk.f32.vlgmr.msra.gmra.mrb[28].mxu1 %vm1858_vm2, %v2022_v35  ;;  %v10683_v21 = vpop.eup %10682 }
 0x4db   : > { %9916 = vmatpush3.bf16.msra.mxu1 %v11711_v52  ;;  %v1975_v6 = vpop.xlane.xlu0 %1974  ;;  %v2024_v32 = vmul.f32 %v10683_v21, %v11978_v25 }
 0x4dc   : > { %9922 = vmatprep.subr.bf16.mxu1 %v11741_v60  ;;  %10688 = vrcp.f32 %v1975_v6 }
 0x4de   : > { %v10685_v9 = vpop.eup %10684 }
 0x4df   : > { %v1984_v54 = vpop.xlane.xlu1 %1983  ;;  %v2023_v10 = vmul.f32 %v10685_v9, %v11983_v59  ;;  %v10379_v9 = vunpack.i.h.bf16 %v12072_v20 }
 0x4e0   : > { %10690 = vrcp.f32 %v1984_v54  ;;  %v10378_v54 = vunpack.i.l.bf16 %v12072_v20 }
 0x4e1   : > { %9287 = vmatprep.mubr.msk.f32.mxu0 %vm1858_vm2, %v2023_v10 }
 0x4e2   : > { %9288 = vmatmul.mubr.msk.f32.vlgmr.msra.gmra.mrb[38].mxu0 %vm1858_vm2, %v2024_v32  ;;  %v10687_v52 = vpop.eup %10686  ;;  %v9939_v0 = vpack.c.bf16 %v10379_v9, %v10378_v54 }
 0x4e3   : > { %9920 = vmatpush3.bf16.msra.mxu0 %v11724_v50  ;;  %v1981_v29 = vpop.xlane.xlu1 %1980  ;;  %v2026_v25 = vmul.f32 %v10687_v52, %v11988_v33 }
 0x4e4   : > { %10692 = vrcp.f32 %v1981_v29  ;;  %9926 = vmatprep.subr.bf16.mxu0 %v11757_v15 }
 0x4e6   : > { %v10689_v4 = vpop.eup %10688 }
 0x4e7   : > { %v1990_v61 = vpop.xlane.xlu1 %1989  ;;  %v2025_v42 = vmul.f32 %v10689_v4, %v11994_v17 }
 0x4e8   : > { %10694 = vrcp.f32 %v1990_v61  ;;  %v1987_v59 = vpop.xlane.xlu0 %1986 }
 0x4e9   : > { %10696 = vrcp.f32 %v1987_v59  ;;  %9294 = vmatprep.mubr.msk.f32.mxu1 %vm1858_vm2, %v2025_v42 }
 0x4ea   : > { %9295 = vmatmul.mubr.msk.f32.vlgmr.msra.gmra.mrb[30].mxu1 %vm1858_vm2, %v2026_v25  ;;  %v10691_v50 = vpop.eup %10690 }
 0x4eb   : > { %9924 = vmatpush3.bf16.msra.mxu1 %v11741_v60  ;;  %v2028_v35 = vmul.f32 %v10691_v50, %v11998_v19  ;;  %v9933_v60 = vpack.c.bf16 %v10374_v16, %v10373_v46  ;;  %v10388_v50 = vunpack.i.l.bf16 %v12082_v26 }
 0x4ec   : > { %9930 = vmatprep.subr.bf16.mxu1 %v11776_v38 }
 0x4ee   : > { %v10693_v55 = vpop.eup %10692 }
 0x4ef   : > { %v1996_v17 = vpop.xlane.xlu1 %1995  ;;  %v2027_v2 = vmul.f32 %v10693_v55, %v12004_v27 }
 0x4f0   : > { %10698 = vrcp.f32 %v1996_v17  ;;  %v1993_v33 = vpop.xlane.xlu0 %1992 }
 0x4f1   : > { %10700 = vrcp.f32 %v1993_v33  ;;  %9301 = vmatprep.mubr.msk.f32.mxu0 %vm1858_vm2, %v2027_v2 }
 0x4f2   : > { %v10695_v6 = vpop.eup %10694  ;;  %9302 = vmatmul.mubr.msk.f32.vlgmr.msra.gmra.mrb[40].mxu0 %vm1858_vm2, %v2028_v35 }
 0x4f3   : > { %v10697_v21 = vpop.eup %10696  ;;  %9928 = vmatpush3.bf16.msra.mxu0 %v11757_v15  ;;  %v2030_v19 = vmul.f32 %v10695_v6, %v12008_v40  ;;  %v10383_v40 = vunpack.i.l.bf16 %v12076_v57 }
 0x4f4   : > { %9935 = vmatprep.subr.msk.bf16.mxu0 %vm11665_vm1, %v9933_v60  ;;  %v2029_v27 = vmul.f32 %v10697_v21, %v12010_v48  ;;  %v10384_v48 = vunpack.i.h.bf16 %v12076_v57 }
 0x4f6   : > { %9308 = vmatprep.mubr.msk.f32.mxu1 %vm1858_vm2, %v2029_v27 }
 0x4f7   : > { %v2002_v10 = vpop.xlane.xlu1 %2001  ;;  %9309 = vmatmul.mubr.msk.f32.vlgmr.msra.gmra.mrb[32].mxu1 %vm1858_vm2, %v2030_v19 }
 0x4f8   : > { %10702 = vrcp.f32 %v2002_v10  ;;  %9932 = vmatpush3.bf16.msra.mxu1 %v11776_v38  ;;  %v1999_v32 = vpop.xlane.xlu0 %1998  ;;  %v9945_v38 = vpack.c.bf16 %v10384_v48, %v10383_v40 }
 0x4f9   : > { %9941 = vmatprep.subr.msk.bf16.mxu1 %vm11665_vm1, %v9939_v0  ;;  %10704 = vrcp.f32 %v1999_v32 }
 0x4fa   : > { %v10699_v15 = vpop.eup %10698 }
 0x4fb   : > { %v10701_v20 = vpop.eup %10700  ;;  %v2866_v29 = vpop.permute.xlu1 %2865  ;;  %v2032_v61 = vmul.f32 %v10699_v15, %v12018_v58  ;;  %v10389_v58 = vunpack.i.h.bf16 %v12082_v26 }
 0x4fc   : > { %v10392_v52 = vpop.permute.xlu0 %10391  ;;  %v2031_v4 = vmul.f32 %v10701_v20, %v12020_v41 }
 0x4fd   : > { %v10394_v55 = vunpack.i.h.bf16 %v10392_v52  ;;  %v10393_v16 = vunpack.i.l.bf16 %v10392_v52  ;;  %v9951_v33 = vpack.c.bf16 %v10389_v58, %v10388_v50 }
 0x4fe   : > { %9315 = vmatprep.mubr.msk.f32.mxu0 %vm1858_vm2, %v2031_v4 }
 0x4ff   : > { %v10397_v42 = vpop.permute.xlu1 %10396  ;;  %9316 = vmatmul.mubr.msk.f32.vlgmr.msra.gmra.mrb[42].mxu0 %vm1858_vm2, %v2032_v61  ;;  %v9957_v35 = vpack.c.bf16 %v10394_v55, %v10393_v16 }
 0x500   : > { %9938 = vmatpush3.bf16.xpose.msk.msra.mxu0 %vm11665_vm1, %v9933_v60  ;;  %9329 = vmatprep.mubr.msk.f32.mxu0 %vm1161_vm0, %v12078_v5  ;;  %v2868_v59 = vpop.permute.xlu0 %2867 }
 0x501   : > { %9947 = vmatprep.subr.msk.bf16.mxu0 %vm11665_vm1, %v9945_v38 }
 0x502   : > { %v10703_v57 = vpop.eup %10702 }
 0x503   : > { %v10705_v41 = vpop.eup %10704  ;;  %v2959_v25 = vpop.permute.xlu1 %2958  ;;  %v2034_v2 = vmul.f32 %v10703_v57, %v12026_v13 }
 0x504   : > { %v2957_v46 = vpop.permute.xlu0 %2956  ;;  %v2033_v17 = vmul.f32 %v10705_v41, %v12028_v22  ;;  %v10399_v22 = vunpack.i.h.bf16 %v10397_v42 }
 0x506   : > { %9322 = vmatprep.mubr.msk.f32.mxu1 %vm1858_vm2, %v2033_v17 }
 0x507   : > { %9330 = vmatmul.mubr.msk.f32.vlgmr.msra.gmra.mrb[44].mxu0 %vm1161_vm0, %v12084_v49  ;;  %v3048_v5 = vpop.permute.xlu1 %3047  ;;  %9323 = vmatmul.mubr.msk.f32.vlgmr.msra.gmra.mrb[34].mxu1 %vm1858_vm2, %v2034_v2  ;;  %v10398_v49 = vunpack.i.l.bf16 %v10397_v42 }
 0x508   : > { %9944 = vmatpush3.bf16.xpose.msk.msra.mxu1 %vm11665_vm1, %v9939_v0  ;;  %9950 = vmatpush3.bf16.xpose.msk.msra.mxu0 %vm11665_vm1, %v9945_v38  ;;  %v10402_v26 = vpop.permute.xlu0 %10401 }
 0x509   : > { %9343 = vmatprep.mubr.msk.f32.mxu0 %vm1161_vm0, %v2866_v29  ;;  %9336 = vmatprep.mubr.msk.f32.mxu1 %vm1161_vm0, %v12088_v37  ;;  %v10404_v6 = vunpack.i.h.bf16 %v10402_v26  ;;  %v10403_v60 = vunpack.i.l.bf16 %v10402_v26  ;;  %v9963_v54 = vpack.c.bf16 %v10399_v22, %v10398_v49 }
 0x50a   : > { %9953 = vmatprep.subr.msk.bf16.mxu1 %vm11665_vm1, %v9951_v33  ;;  %9959 = vmatprep.subr.msk.bf16.mxu0 %vm11665_vm1, %v9957_v35 }
 0x50b   : > { %v10407_v13 = vpop.permute.xlu1 %10406  ;;  %v9969_v37 = vpack.c.bf16 %v10404_v6, %v10403_v60 }
 0x50c   : > { %v3050_v21 = vpop.permute.xlu0 %3049  ;;  %v10409_v19 = vunpack.i.h.bf16 %v10407_v13  ;;  %v10408_v0 = vunpack.i.l.bf16 %v10407_v13 }
 0x50e   : > { %v9975_v15 = vpack.c.bf16 %v10409_v19, %v10408_v0 }
 0x50f   : > { %9337 = vmatmul.mubr.msk.f32.vlgmr.msra.gmra.mrb[36].mxu1 %vm1161_vm0, %v12086_v28  ;;  %9344 = vmatmul.mubr.msk.f32.vlgmr.msra.gmra.mrb[46].mxu0 %vm1161_vm0, %v2868_v59  ;;  %v3141_v9 = vpop.permute.xlu1 %3140 }
 0x510   : > { %9956 = vmatpush3.bf16.xpose.msk.msra.mxu1 %vm11665_vm1, %v9951_v33  ;;  %9350 = vmatprep.mubr.msk.f32.mxu1 %vm1161_vm0, %v2957_v46  ;;  %v3139_v27 = vpop.permute.xlu0 %3138 }
 0x511   : > { %9962 = vmatpush3.bf16.xpose.msk.msra.mxu0 %vm11665_vm1, %v9957_v35  ;;  %9357 = vmatprep.mubr.msk.f32.mxu0 %vm1161_vm0, %v3048_v5 }
 0x512   : > { %9965 = vmatprep.subr.msk.bf16.mxu1 %vm11665_vm1, %v9963_v54  ;;  %9971 = vmatprep.subr.msk.bf16.mxu0 %vm11665_vm1, %v9969_v37 }
 0x513   : > { %v3232_v28 = vpop.permute.xlu1 %3231 }
 0x514   : > { %v3230_v10 = vpop.permute.xlu0 %3229 }
 0x517   : > { %9351 = vmatmul.mubr.msk.f32.vlgmr.msra.gmra.mrb[38].mxu1 %vm1161_vm0, %v2959_v25  ;;  %v3323_v32 = vpop.permute.xlu1 %3322 }
 0x518   : > { %9358 = vmatmul.mubr.msk.f32.vlgmr.msra.gmra.mrb[48].mxu0 %vm1161_vm0, %v3050_v21  ;;  %9968 = vmatpush3.bf16.xpose.msk.msra.mxu1 %vm11665_vm1, %v9963_v54  ;;  %v3321_v20 = vpop.permute.xlu0 %3320  ;;  %v1114_v54 = vld [vmem:[%s11421_s26 + $0x88] sm:$0xff] }
 0x519   : > { %9364 = vmatprep.mubr.msk.f32.mxu1 %vm1161_vm0, %v3139_v27  ;;  %9974 = vmatpush3.bf16.xpose.msk.msra.mxu0 %vm11665_vm1, %v9969_v37 }
 0x51a   : > { %9371 = vmatprep.mubr.msk.f32.mxu0 %vm1161_vm0, %v3230_v10  ;;  %9977 = vmatprep.subr.msk.bf16.mxu1 %vm11665_vm1, %v9975_v15 }
 0x51b   : > { %v10417_v48 = vpop.permute.xlu1 %10416 }
 0x51c   : > { %v10419_v40 = vunpack.i.h.bf16 %v10417_v48  ;;  %v10418_v29 = vunpack.i.l.bf16 %v10417_v48  ;;  %v10412_v52 = vpop.permute.xlu0 %10411 }
 0x51d   : > { %v10414_v4 = vunpack.i.h.bf16 %v10412_v52  ;;  %v10413_v61 = vunpack.i.l.bf16 %v10412_v52  ;;  %v1118_v52 = vld [vmem:[%s11421_s26 + $0xa8] sm:$0xff] }
 0x51e   : > { %v9985_v38 = vpack.c.bf16 %v10419_v40, %v10418_v29  ;;  %v1115_v40 = vld [vmem:[%s11421_s26 + $0x90] sm:$0xff] }
 0x51f   : > { %9365 = vmatmul.mubr.msk.f32.vlgmr.msra.gmra.mrb[40].mxu1 %vm1161_vm0, %v3141_v9  ;;  %v10422_v42 = vpop.permute.xlu1 %10421  ;;  %v9981_v59 = vpack.c.bf16 %v10414_v4, %v10413_v61 }
 0x520   : > { %9372 = vmatmul.mubr.msk.f32.vlgmr.msra.gmra.mrb[50].mxu0 %vm1161_vm0, %v3232_v28  ;;  %v10424_v57 = vunpack.i.h.bf16 %v10422_v42  ;;  %v10423_v41 = vunpack.i.l.bf16 %v10422_v42  ;;  %9980 = vmatpush3.bf16.xpose.msk.msra.mxu1 %vm11665_vm1, %v9975_v15  ;;  %v1113_v28 = vld [vmem:[%s11421_s26 + $0x80] sm:$0xff] }
 0x521   : > { %9378 = vmatprep.mubr.msk.f32.mxu1 %vm1161_vm0, %v3321_v20  ;;  %9986 = vmatprep.subr.bf16.mxu1 %v9985_v38  ;;  %v1116_v20 = vld [vmem:[%s11421_s26 + $0x98] sm:$0xff] }
 0x522   : > { %9982 = vmatprep.subr.bf16.mxu0 %v9981_v59  ;;  %v12191_v58 = vpack.c.bf16 %v10424_v57, %v10423_v41 }
 0x523   : > { %9984 = vmatpush3.bf16.msra.mxu0 %v9981_v59  ;;  %v10427_v25 = vpop.permute.xlu1 %10426 }
 0x524   : > { %v10429_v50 = vunpack.i.h.bf16 %v10427_v25  ;;  %v10428_v55 = vunpack.i.l.bf16 %v10427_v25  ;;  %9990 = vmatprep.subr.bf16.mxu0 %v12191_v58  ;;  %v1117_v25 = vld [vmem:[%s11421_s26 + $0xa0] sm:$0xff] }
 0x526   : > { %v12194_v16 = vpack.c.bf16 %v10429_v50, %v10428_v55  ;;  %v1120_v55 = vld [vmem:[%s11421_s26 + $0xb8] sm:$0xff] }
 0x527   : > { %9379 = vmatmul.mubr.msk.f32.vlgmr.msra.gmra.mrb[42].mxu1 %vm1161_vm0, %v3323_v32 }
 0x528   : > { %9988 = vmatpush3.bf16.msra.mxu1 %v9985_v38 }
 0x529   : > { %9994 = vmatprep.subr.bf16.mxu1 %v12194_v16 }
 0x5a2   : > { %v12198_v46 = vpop.f32.mrb[36].mxu0 }
 0x5a3   : > { %v12200_v17 = vpop.f32.mrb[37].mxu0 }
 0x5ad   : > { %v12202_v2 = vpop.f32.mrb[28].mxu1 }
 0x5ae   : > { %v12204_v5 = vpop.f32.mrb[29].mxu1 }
 0x5b5   : > { %v12206_v33 = vpop.f32.mrb[38].mxu0 }
 0x5b6   : > { %v12208_v35 = vpop.f32.mrb[39].mxu0 }
 0x5bd   : > { %v12210_v26 = vpop.f32.mrb[30].mxu1 }
 0x5be   : > { %v12212_v13 = vpop.f32.mrb[31].mxu1 }
 0x5c5   : > { %v12214_v22 = vpop.f32.mrb[40].mxu0 }
 0x5c6   : > { %v12216_v49 = vpop.f32.mrb[41].mxu0 }
 0x5ca   : > { %v12218_v6 = vpop.f32.mrb[32].mxu1 }
 0x5cb   : > { %13407 = vst [vmem:[#allocation41_spill] sm:$0xff] %v12218_v6  ;;  %v12220_v60 = vpop.f32.mrb[33].mxu1 }
 0x5cc   : > { %13408 = vst [vmem:[#allocation42_spill] sm:$0xff] %v12220_v60 }
 0x5d2   : > { %v12222_v21 = vpop.f32.mrb[42].mxu0 }
 0x5d3   : > { %13409 = vst [vmem:[#allocation43_spill] sm:$0xff] %v12222_v21  ;;  %v12224_v9 = vpop.f32.mrb[43].mxu0  ;;  %v1128_v21 = vld [vmem:[%s11421_s26 + $0xf8] sm:$0xff] }
 0x5d4   : > { %13410 = vst [vmem:[#allocation44_spill] sm:$0xff] %v12224_v9 }
 0x5da   : > { %v9331_v37 = vpop.f32.mrb[44].mxu0  ;;  %v12227_v27 = vpop.f32.mrb[34].mxu1 }
 0x5db   : > { %13411 = vst [vmem:[#allocation45_spill] sm:$0xff] %v12227_v27  ;;  %v12230_v19 = vadd.f32 %v9331_v37, %v1114_v54  ;;  %v2765_v0 = vpop.f32.mrb[45].mxu0  ;;  %v12232_v10 = vpop.f32.mrb[35].mxu1  ;;  %v1126_v27 = vld [vmem:[%s11421_s26 + $0xe8] sm:$0xff] }
 0x5dc   : > { %13412 = vst [vmem:[#allocation46_spill] sm:$0xff] %v12232_v10  ;;  %v12234_v32 = vadd.f32 %v2765_v0, %v1113_v28  ;;  %v1122_v0 = vld [vmem:[%s11421_s26 + $0xc8] sm:$0xff] }
 0x5dd   : > { %v3414_v15 = vsel %vm1858_vm2, %v12230_v19, -inf }
 0x5de   : > { %3415 = vmax.xlane.f32.xlu0 %v3414_v15  ;;  %v3411_v48 = vsel %vm1858_vm2, %v12234_v32, -inf  ;;  %v1121_v15 = vld [vmem:[%s11421_s26 + $0xc0] sm:$0xff] }
 0x5e2   : > { %v9338_v29 = vpop.f32.mrb[36].mxu1  ;;  %v9345_v4 = vpop.f32.mrb[46].mxu0  ;;  %3412 = vmax.xlane.f32.xlu0 %v3411_v48 }
 0x5e3   : > { %v12243_v61 = vadd.f32 %v9338_v29, %v1116_v20  ;;  %v2856_v38 = vpop.f32.mrb[37].mxu1  ;;  %v2947_v42 = vpop.f32.mrb[47].mxu0  ;;  %v12247_v57 = vadd.f32 %v9345_v4, %v1118_v52 }
 0x5e4   : > { %v12245_v59 = vadd.f32 %v2856_v38, %v1115_v40  ;;  %v12255_v54 = vadd.f32 %v2947_v42, %v1117_v25 }
 0x5e5   : > { %v3420_v41 = vsel %vm1858_vm2, %v12243_v61, -inf  ;;  %v3426_v37 = vsel %vm1858_vm2, %v12247_v57, -inf }
 0x5e6   : > { %3421 = vmax.xlane.f32.xlu0 %v3420_v41  ;;  %v3417_v50 = vsel %vm1858_vm2, %v12245_v59, -inf  ;;  %v3423_v42 = vsel %vm1858_vm2, %v12255_v54, -inf  ;;  %v1119_v41 = vld [vmem:[%s11421_s26 + $0xb0] sm:$0xff] }
 0x5e7   : > { %3418 = vmax.xlane.f32.xlu1 %v3417_v50 }
 0x5ea   : > { %v9352_v28 = vpop.f32.mrb[38].mxu1  ;;  %3427 = vmax.xlane.f32.xlu0 %v3426_v37  ;;  %v1123_v37 = vld [vmem:[%s11421_s26 + $0xd0] sm:$0xff] }
 0x5eb   : > { %v12261_v20 = vadd.f32 %v9352_v28, %v1120_v55  ;;  %v9359_v48 = vpop.f32.mrb[48].mxu0  ;;  %v3038_v40 = vpop.f32.mrb[39].mxu1  ;;  %v1124_v28 = vld [vmem:[%s11421_s26 + $0xd8] sm:$0xff] }
 0x5ec   : > { %v3129_v29 = vpop.f32.mrb[49].mxu0  ;;  %v12263_v52 = vadd.f32 %v9359_v48, %v1122_v0  ;;  %v12272_v25 = vadd.f32 %v3038_v40, %v1119_v41 }
 0x5ed   : > { %v12265_v4 = vadd.f32 %v3129_v29, %v1121_v15  ;;  %v3432_v38 = vsel %vm1858_vm2, %v12261_v20, -inf  ;;  %v1125_v29 = vld [vmem:[%s11421_s26 + $0xe0] sm:$0xff] }
 0x5ee   : > { %3433 = vmax.xlane.f32.xlu1 %v3432_v38  ;;  %3424 = vmax.xlane.f32.xlu0 %v3423_v42  ;;  %v3438_v50 = vsel %vm1858_vm2, %v12263_v52, -inf  ;;  %v3429_v41 = vsel %vm1858_vm2, %v12272_v25, -inf }
 0x5ef   : > { %v3435_v55 = vsel %vm1858_vm2, %v12265_v4, -inf }
 0x5f2   : > { %v9366_v0 = vpop.f32.mrb[40].mxu1  ;;  %3439 = vmax.xlane.f32.xlu1 %v3438_v50  ;;  %3436 = vmax.xlane.f32.xlu0 %v3435_v55 }
 0x5f3   : > { %v9373_v15 = vpop.f32.mrb[50].mxu0  ;;  %v3220_v48 = vpop.f32.mrb[41].mxu1  ;;  %v12283_v42 = vadd.f32 %v9366_v0, %v1124_v28 }
 0x5f4   : > { %v12281_v38 = vadd.f32 %v3220_v48, %v1123_v37  ;;  %v3311_v40 = vpop.f32.mrb[51].mxu0  ;;  %v12292_v55 = vadd.f32 %v9373_v15, %v1126_v27  ;;  %v1127_v48 = vld [vmem:[%s11421_s26 + $0xf0] sm:$0xff] }
 0x5f5   : > { %v12288_v10 = vadd.f32 %v3311_v40, %v1125_v29  ;;  %v3444_v37 = vsel %vm1858_vm2, %v12283_v42, -inf }
 0x5f6   : > { %3430 = vmax.xlane.f32.xlu1 %v3429_v41  ;;  %v3441_v50 = vsel %vm1858_vm2, %v12281_v38, -inf  ;;  %v3450_v27 = vsel %vm1858_vm2, %v12292_v55, -inf }
 0x5f7   : > { %3442 = vmax.xlane.f32.xlu0 %v3441_v50  ;;  %v3447_v0 = vsel %vm1858_vm2, %v12288_v10, -inf }
 0x5fa   : > { %v9380_v28 = vpop.f32.mrb[42].mxu1  ;;  %3445 = vmax.xlane.f32.xlu1 %v3444_v37 }
 0x5fb   : > { %v3402_v9 = vpop.f32.mrb[43].mxu1  ;;  %3448 = vmax.xlane.f32.xlu0 %v3447_v0  ;;  %v12302_v40 = vadd.f32 %v9380_v28, %v1128_v21 }
 0x5fc   : > { %v12300_v29 = vadd.f32 %v3402_v9, %v1127_v48 }
 0x5fd   : > { %v3456_v41 = vsel %vm1858_vm2, %v12302_v40, -inf }
 0x5fe   : > { %3451 = vmax.xlane.f32.xlu1 %v3450_v27  ;;  %v3453_v15 = vsel %vm1858_vm2, %v12300_v29, -inf }
 0x5ff   : > { %3454 = vmax.xlane.f32.xlu0 %v3453_v15 }
 0x602   : > { %3457 = vmax.xlane.f32.xlu1 %v3456_v41 }
 0x613   : > { %10436 = vrot.lane.b32.xlu1 %v11743_v1, %s11114_s14 }
 0x615   : > { %10431 = vrot.lane.b32.xlu0 %v11726_v11, %s11114_s14 }
 0x66b   : > { %v3416_v21 = vpop.xlane.xlu0 %3415 }
 0x66c   : > { %v3460_v9 = vsub.f32 %v12230_v19, %v3416_v21 }
 0x66e   : > { %v3477_v50 = vmul.f32 1.442695, %v3460_v9 }
 0x66f   : > { %v3413_v37 = vpop.xlane.xlu0 %3412 }
 0x670   : > { %10706 = vpow2.f32 %v3477_v50  ;;  %v3459_v48 = vsub.f32 %v12234_v32, %v3413_v37 }
 0x672   : > { %v3475_v28 = vmul.f32 1.442695, %v3459_v48 }
 0x673   : > { %v3422_v0 = vpop.xlane.xlu0 %3421 }
 0x674   : > { %10708 = vpow2.f32 %v3475_v28  ;;  %v3462_v27 = vsub.f32 %v12243_v61, %v3422_v0  ;;  %v3419_v15 = vpop.xlane.xlu1 %3418 }
 0x675   : > { %v3461_v41 = vsub.f32 %v12245_v59, %v3419_v15 }
 0x676   : > { %v3481_v1 = vmul.f32 1.442695, %v3462_v27 }
 0x677   : > { %v3479_v6 = vmul.f32 1.442695, %v3461_v41  ;;  %v3428_v60 = vpop.xlane.xlu0 %3427 }
 0x678   : > { %10710 = vpow2.f32 %v3481_v1  ;;  %v3464_v11 = vsub.f32 %v12247_v57, %v3428_v60 }
 0x679   : > { %10712 = vpow2.f32 %v3479_v6 }
 0x67a   : > { %v12319_v19 = vpop.eup %10706  ;;  %v3485_v21 = vmul.f32 1.442695, %v3464_v11 }
 0x67b   : > { %v3434_v9 = vpop.xlane.xlu1 %3433  ;;  %v3425_v32 = vpop.xlane.xlu0 %3424  ;;  %v3510_v50 = vsel %vm1858_vm2, %v12319_v19, 0.0 }
 0x67c   : > { %10714 = vpow2.f32 %v3485_v21  ;;  %v3466_v61 = vsub.f32 %v12261_v20, %v3434_v9  ;;  %v3463_v59 = vsub.f32 %v12255_v54, %v3425_v32  ;;  %3511 = vadd.xlane.f32.xlu0 %v3510_v50 }
 0x67e   : > { %v12325_v37 = vpop.eup %10708  ;;  %v3489_v1 = vmul.f32 1.442695, %v3466_v61  ;;  %v3483_v48 = vmul.f32 1.442695, %v3463_v59 }
 0x67f   : > { %v3440_v60 = vpop.xlane.xlu1 %3439  ;;  %v3437_v57 = vpop.xlane.xlu0 %3436  ;;  %v3507_v11 = vsel %vm1858_vm2, %v12325_v37, 0.0 }
 0x680   : > { %10716 = vpow2.f32 %v3489_v1  ;;  %v3468_v6 = vsub.f32 %v12263_v52, %v3440_v60  ;;  %v3467_v28 = vsub.f32 %v12265_v4, %v3437_v57  ;;  %3508 = vadd.xlane.f32.xlu0 %v3507_v11 }
 0x681   : > { %10718 = vpow2.f32 %v3483_v48 }
 0x682   : > { %v12331_v20 = vpop.eup %10710  ;;  %v3493_v54 = vmul.f32 1.442695, %v3468_v6  ;;  %v3491_v0 = vmul.f32 1.442695, %v3467_v28 }
 0x683   : > { %v3431_v27 = vpop.xlane.xlu1 %3430  ;;  %v3516_v15 = vsel %vm1858_vm2, %v12331_v20, 0.0  ;;  %v12335_v41 = vpop.eup %10712 }
 0x684   : > { %10720 = vpow2.f32 %v3493_v54  ;;  %v3465_v21 = vsub.f32 %v12272_v25, %v3431_v27  ;;  %3517 = vadd.xlane.f32.xlu1 %v3516_v15  ;;  %v3443_v9 = vpop.xlane.xlu0 %3442  ;;  %v3513_v59 = vsel %vm1858_vm2, %v12335_v41, 0.0 }
 0x685   : > { %10722 = vpow2.f32 %v3491_v0  ;;  %v3469_v52 = vsub.f32 %v12281_v38, %v3443_v9 }
 0x686   : > { %v12339_v4 = vpop.eup %10714  ;;  %v3487_v32 = vmul.f32 1.442695, %v3465_v21 }
 0x687   : > { %v3495_v50 = vmul.f32 1.442695, %v3469_v52  ;;  %v3446_v61 = vpop.xlane.xlu1 %3445  ;;  %v3522_v1 = vsel %vm1858_vm2, %v12339_v4, 0.0 }
 0x688   : > { %10724 = vpow2.f32 %v3487_v32  ;;  %v3470_v48 = vsub.f32 %v12283_v42, %v3446_v61  ;;  %3514 = vadd.xlane.f32.xlu1 %v3513_v59  ;;  %3523 = vadd.xlane.f32.xlu0 %v3522_v1  ;;  %v3449_v25 = vpop.xlane.xlu0 %3448 }
 0x689   : > { %10726 = vpow2.f32 %v3495_v50  ;;  %v3471_v38 = vsub.f32 %v12288_v10, %v3449_v25 }
 0x68a   : > { %v12347_v60 = vpop.eup %10716  ;;  %v3497_v57 = vmul.f32 1.442695, %v3470_v48 }
 0x68b   : > { %v12349_v11 = vpop.eup %10718  ;;  %v3499_v6 = vmul.f32 1.442695, %v3471_v38  ;;  %v3452_v28 = vpop.xlane.xlu1 %3451  ;;  %v3528_v54 = vsel %vm1858_vm2, %v12347_v60, 0.0 }
 0x68c   : > { %10728 = vpow2.f32 %v3497_v57  ;;  %v3472_v0 = vsub.f32 %v12292_v55, %v3452_v28  ;;  %3529 = vadd.xlane.f32.xlu1 %v3528_v54  ;;  %v3519_v42 = vsel %vm1858_vm2, %v12349_v11, 0.0  ;;  %v3455_v27 = vpop.xlane.xlu0 %3454 }
 0x68d   : > { %10730 = vpow2.f32 %v3499_v6  ;;  %3520 = vadd.xlane.f32.xlu0 %v3519_v42  ;;  %v3473_v10 = vsub.f32 %v12300_v29, %v3455_v27 }
 0x68e   : > { %v12357_v15 = vpop.eup %10720  ;;  %v3501_v21 = vmul.f32 1.442695, %v3472_v0 }
 0x68f   : > { %v12359_v9 = vpop.eup %10722  ;;  %v3503_v52 = vmul.f32 1.442695, %v3473_v10  ;;  %v3458_v32 = vpop.xlane.xlu1 %3457  ;;  %v3534_v50 = vsel %vm1858_vm2, %v12357_v15, 0.0 }
 0x690   : > { %10732 = vpow2.f32 %v3501_v21  ;;  %v3474_v55 = vsub.f32 %v12302_v40, %v3458_v32  ;;  %3535 = vadd.xlane.f32.xlu1 %v3534_v50  ;;  %v3531_v61 = vsel %vm1858_vm2, %v12359_v9, 0.0  ;;  %v13413_v21 = vld [vmem:[#allocation34_spill] sm:$0xff]  ;;  %v13416_v50 = vld [vmem:[#allocation33_spill] sm:$0xff] }
 0x691   : > { %10734 = vpow2.f32 %v3503_v52  ;;  %3532 = vadd.xlane.f32.xlu0 %v3531_v61  ;;  %v13414_v52 = vld [vmem:[#allocation27_spill] sm:$0xff]  ;;  %v13415_v32 = vld [vmem:[#allocation30_spill] sm:$0xff]  ;;  %v13418_v61 = vld [vmem:[#allocation25_spill] sm:$0xff] }
 0x692   : > { %v12366_v29 = vpop.eup %10724  ;;  %v3505_v59 = vmul.f32 1.442695, %v3474_v55  ;;  %v13417_v55 = vld [vmem:[#allocation29_spill] sm:$0xff] }
 0x693   : > { %v12368_v1 = vpop.eup %10726  ;;  %v3525_v48 = vsel %vm1858_vm2, %v12366_v29, 0.0 }
 0x694   : > { %10736 = vpow2.f32 %v3505_v59  ;;  %3526 = vadd.xlane.f32.xlu1 %v3525_v48  ;;  %v3537_v25 = vsel %vm1858_vm2, %v12368_v1, 0.0  ;;  %v13419_v59 = vld [vmem:[#allocation24_spill] sm:$0xff] }
 0x695   : > { %3538 = vadd.xlane.f32.xlu0 %v3537_v25  ;;  %v13420_v48 = vld [vmem:[#allocation28_spill] sm:$0xff]  ;;  %v13421_v25 = vld [vmem:[#allocation26_spill] sm:$0xff] }
 0x696   : > { %v12374_v40 = vpop.eup %10728 }
 0x697   : > { %v12376_v38 = vpop.eup %10730  ;;  %v3540_v57 = vsel %vm1858_vm2, %v12374_v40, 0.0 }
 0x698   : > { %3541 = vadd.xlane.f32.xlu1 %v3540_v57  ;;  %v3543_v6 = vsel %vm1858_vm2, %v12376_v38, 0.0  ;;  %v10432_v57 = vpop.permute.xlu0 %10431 }
 0x699   : > { %3544 = vadd.xlane.f32.xlu0 %v3543_v6 }
 0x69a   : > { %v12382_v28 = vpop.eup %10732 }
 0x69b   : > { %v12384_v54 = vpop.eup %10734  ;;  %v3546_v0 = vsel %vm1858_vm2, %v12382_v28, 0.0 }
 0x69c   : > { %3547 = vadd.xlane.f32.xlu1 %v3546_v0  ;;  %v3549_v42 = vsel %vm1858_vm2, %v12384_v54, 0.0  ;;  %v10437_v0 = vpop.permute.xlu1 %10436 }
 0x69d   : > { %3550 = vadd.xlane.f32.xlu0 %v3549_v42 }
 0x69e   : > { %v12390_v27 = vpop.eup %10736 }
 0x69f   : > { %v3552_v10 = vsel %vm1858_vm2, %v12390_v27, 0.0 }
 0x6a0   : > { %3553 = vadd.xlane.f32.xlu1 %v3552_v10 }
 0x6b1   : > { %10446 = vrot.lane.b32.xlu1 %v11778_v39, %s11114_s14 }
 0x6b3   : > { %10441 = vrot.lane.b32.xlu0 %v13413_v21, %s11114_s14 }
 0x6b5   : > { %10456 = vrot.lane.b32.xlu1 %v11694_v34, %s11115_s4 }
 0x6b7   : > { %10451 = vrot.lane.b32.xlu0 %v11671_v18, %s11115_s4 }
 0x6b9   : > { %4687 = vrot.lane.b32.xlu1 %v11690_v44, %s11115_s4 }
 0x6bb   : > { %4685 = vrot.lane.b32.xlu0 %v11651_v56, %s11115_s4 }
 0x6bd   : > { %4776 = vrot.lane.b32.xlu1 %v13414_v52, %s11115_s4 }
 0x6bf   : > { %10461 = vrot.lane.b32.xlu0 %v13415_v32, %s11115_s4 }
 0x6c1   : > { %10466 = vrot.lane.b32.xlu1 %v13416_v50, %s11115_s4 }
 0x6c3   : > { %4778 = vrot.lane.b32.xlu0 %v13417_v55, %s11115_s4 }
 0x6c5   : > { %4869 = vrot.lane.b32.xlu1 %v11750_v23, %s11115_s4 }
 0x6c7   : > { %4867 = vrot.lane.b32.xlu0 %v11729_v51, %s11115_s4 }
 0x6c9   : > { %4958 = vrot.lane.b32.xlu1 %v11753_v24, %s11115_s4 }
 0x6cb   : > { %10471 = vrot.lane.b32.xlu0 %v11785_v45, %s11115_s4 }
 0x6cd   : > { %10476 = vrot.lane.b32.xlu1 %v11803_v62, %s11115_s4 }
 0x6cf   : > { %4960 = vrot.lane.b32.xlu0 %v11783_v36, %s11115_s4 }
 0x6d1   : > { %5051 = vrot.lane.b32.xlu1 %v11801_v53, %s11115_s4 }
 0x6d3   : > { %5049 = vrot.lane.b32.xlu0 %v11762_v30, %s11115_s4 }
 0x6d5   : > { %5140 = vrot.lane.b32.xlu1 %v11788_v47, %s11115_s4  ;;  %v10433_v47 = vunpack.i.l.bf16 %v10432_v57 }
 0x6d7   : > { %10481 = vrot.lane.b32.xlu0 %v11824_v14, %s11115_s4 }
 0x6d9   : > { %10486 = vrot.lane.b32.xlu1 %v11843_v43, %s11115_s4 }
 0x6db   : > { %5142 = vrot.lane.b32.xlu0 %v11822_v7, %s11115_s4 }
 0x6dd   : > { %5233 = vrot.lane.b32.xlu1 %v11817_v3, %s11115_s4 }
 0x6df   : > { %5231 = vrot.lane.b32.xlu0 %v11806_v63, %s11115_s4 }
 0x6e1   : > { %5324 = vrot.lane.b32.xlu1 %v11839_v8, %s11115_s4 }
 0x6e3   : > { %5322 = vrot.lane.b32.xlu0 %v11827_v31, %s11115_s4 }
 0x6e5   : > { %10496 = vrot.lane.b32.xlu1 %v13418_v61, %s11115_s4 }
 0x6e7   : > { %10491 = vrot.lane.b32.xlu0 %v13419_v59, %s11115_s4  ;;  %v10434_v59 = vunpack.i.h.bf16 %v10432_v57 }
 0x6e9   : > { %10506 = vrot.lane.b32.xlu1 %v13420_v48, %s11115_s4 }
 0x6eb   : > { %10501 = vrot.lane.b32.xlu0 %v13421_v25, %s11115_s4 }
 0x709   : > { %v3512_v6 = vpop.xlane.xlu0 %3511 }
 0x70a   : > { %10738 = vrcp.f32 %v3512_v6  ;;  %v9997_v6 = vpack.c.bf16 %v10434_v59, %v10433_v47 }
 0x70d   : > { %v3509_v42 = vpop.xlane.xlu0 %3508 }
 0x70e   : > { %10740 = vrcp.f32 %v3509_v42 }
 0x711   : > { %v3518_v10 = vpop.xlane.xlu1 %3517 }
 0x712   : > { %10742 = vrcp.f32 %v3518_v10 }
 0x714   : > { %v10739_v61 = vpop.eup %10738 }
 0x715   : > { %v3515_v31 = vpop.xlane.xlu1 %3514  ;;  %v3524_v63 = vpop.xlane.xlu0 %3523  ;;  %v3572_v53 = vmul.f32 %v10739_v61, %v12319_v19 }
 0x716   : > { %10744 = vrcp.f32 %v3515_v31 }
 0x717   : > { %10746 = vrcp.f32 %v3524_v63  ;;  %v10438_v63 = vunpack.i.l.bf16 %v10437_v0 }
 0x718   : > { %v10741_v8 = vpop.eup %10740 }
 0x719   : > { %v3530_v3 = vpop.xlane.xlu1 %3529  ;;  %v3571_v48 = vmul.f32 %v10741_v8, %v12325_v37  ;;  %v10439_v8 = vunpack.i.h.bf16 %v10437_v0 }
 0x71a   : > { %v3521_v25 = vpop.xlane.xlu0 %3520 }
 0x71b   : > { %10748 = vrcp.f32 %v3521_v25  ;;  %9385 = vmatprep.mubr.msk.f32.mxu0 %vm1858_vm2, %v3571_v48 }
 0x71c   : > { %9386 = vmatmul.mubr.msk.f32.vlgmr.msra.gmra.mrb[52].mxu0 %vm1858_vm2, %v3572_v53  ;;  %v10743_v57 = vpop.eup %10742 }
 0x71d   : > { %9992 = vmatpush3.bf16.msra.mxu0 %v12191_v58  ;;  %v3536_v31 = vpop.xlane.xlu1 %3535  ;;  %v3574_v53 = vmul.f32 %v10743_v57, %v12331_v20  ;;  %v10001_v58 = vpack.c.bf16 %v10439_v8, %v10438_v63 }
 0x71e   : > { %10750 = vrcp.f32 %v3536_v31  ;;  %v3533_v42 = vpop.xlane.xlu0 %3532  ;;  %9998 = vmatprep.subr.bf16.mxu0 %v9997_v6 }
 0x71f   : > { %10752 = vrcp.f32 %v3533_v42 }
 0x720   : > { %v10745_v10 = vpop.eup %10744  ;;  %10754 = vrcp.f32 %v3530_v3 }
 0x721   : > { %v3527_v37 = vpop.xlane.xlu1 %3526  ;;  %v3573_v19 = vmul.f32 %v10745_v10, %v12335_v41  ;;  %v10747_v47 = vpop.eup %10746 }
 0x722   : > { %10756 = vrcp.f32 %v3527_v37  ;;  %v3539_v61 = vpop.xlane.xlu0 %3538  ;;  %v3576_v25 = vmul.f32 %v10747_v47, %v12339_v4  ;;  %v1086_v47 = vld [vmem:[#allocation7 + $0x28] sm:$0xff] }
 0x723   : > { %10758 = vrcp.f32 %v3539_v61  ;;  %9392 = vmatprep.mubr.msk.f32.mxu1 %vm1858_vm2, %v3573_v19 }
 0x724   : > { %9393 = vmatmul.mubr.msk.f32.vlgmr.msra.gmra.mrb[44].mxu1 %vm1858_vm2, %v3574_v53  ;;  %v1085_v53 = vld [vmem:[#allocation7 + $0x20] sm:$0xff] }
 0x725   : > { %v10749_v59 = vpop.eup %10748  ;;  %9996 = vmatpush3.bf16.msra.mxu1 %v12194_v16  ;;  %v3542_v48 = vpop.xlane.xlu1 %3541 }
 0x726   : > { %10002 = vmatprep.subr.bf16.mxu1 %v10001_v58  ;;  %10760 = vrcp.f32 %v3542_v48  ;;  %v3545_v3 = vpop.xlane.xlu0 %3544  ;;  %v3575_v41 = vmul.f32 %v10749_v59, %v12349_v11 }
 0x727   : > { %10762 = vrcp.f32 %v3545_v3 }
 0x728   : > { %v10751_v20 = vpop.eup %10750  ;;  %9399 = vmatprep.mubr.msk.f32.mxu0 %vm1858_vm2, %v3575_v41 }
 0x729   : > { %v10753_v0 = vpop.eup %10752  ;;  %9400 = vmatmul.mubr.msk.f32.vlgmr.msra.gmra.mrb[54].mxu0 %vm1858_vm2, %v3576_v25  ;;  %v3548_v31 = vpop.xlane.xlu1 %3547  ;;  %v3580_v42 = vmul.f32 %v10751_v20, %v12357_v15  ;;  %v10013_v25 = vpack.c.bf16 %v1086_v47, %v1085_v53 }
 0x72a   : > { %10000 = vmatpush3.bf16.msra.mxu0 %v9997_v6  ;;  %10764 = vrcp.f32 %v3548_v31  ;;  %v3551_v16 = vpop.xlane.xlu0 %3550  ;;  %v3579_v57 = vmul.f32 %v10753_v0, %v12359_v9  ;;  %v10755_v10 = vpop.eup %10754 }
 0x72b   : > { %10766 = vrcp.f32 %v3551_v16  ;;  %v3578_v15 = vmul.f32 %v10755_v10, %v12347_v60  ;;  %v1088_v16 = vld [vmem:[#allocation7 + $0x38] sm:$0xff] }
 0x72c   : > { %v10757_v11 = vpop.eup %10756  ;;  %9413 = vmatprep.mubr.msk.f32.mxu0 %vm1858_vm2, %v3579_v57 }
 0x72d   : > { %v10759_v4 = vpop.eup %10758  ;;  %9414 = vmatmul.mubr.msk.f32.vlgmr.msra.gmra.mrb[56].mxu0 %vm1858_vm2, %v3580_v42  ;;  %v3554_v8 = vpop.xlane.xlu1 %3553  ;;  %v3577_v63 = vmul.f32 %v10757_v11, %v12366_v29  ;;  %v1087_v42 = vld [vmem:[#allocation7 + $0x30] sm:$0xff] }
 0x72e   : > { %10768 = vrcp.f32 %v3554_v8  ;;  %v10442_v37 = vpop.permute.xlu0 %10441  ;;  %v3581_v6 = vmul.f32 %v10759_v4, %v12368_v1  ;;  %v10017_v10 = vpack.c.bf16 %v1088_v16, %v1087_v42  ;;  %v1081_v8 = vld [vmem:[#allocation7] sm:$0xff] }
 0x72f   : > { %v10444_v19 = vunpack.i.h.bf16 %v10442_v37  ;;  %v10443_v61 = vunpack.i.l.bf16 %v10442_v37  ;;  %9406 = vmatprep.mubr.msk.f32.mxu1 %vm1858_vm2, %v3577_v63  ;;  %v1082_v63 = vld [vmem:[#allocation7 + $0x8] sm:$0xff] }
 0x730   : > { %v10761_v9 = vpop.eup %10760  ;;  %9407 = vmatmul.mubr.msk.f32.vlgmr.msra.gmra.mrb[46].mxu1 %vm1858_vm2, %v3578_v15  ;;  %v10021_v37 = vpack.c.bf16 %v1082_v63, %v1081_v8 }
 0x731   : > { %v10763_v59 = vpop.eup %10762  ;;  %10004 = vmatpush3.bf16.msra.mxu1 %v10001_v58  ;;  %v10447_v48 = vpop.permute.xlu1 %10446  ;;  %9420 = vmatprep.mubr.msk.f32.mxu1 %vm1858_vm2, %v3581_v6  ;;  %v10005_v29 = vpack.c.bf16 %v10444_v19, %v10443_v61  ;;  %v3582_v3 = vmul.f32 %v10761_v9, %v12374_v40 }
 0x732   : > { %v10449_v60 = vunpack.i.h.bf16 %v10447_v48  ;;  %v10448_v41 = vunpack.i.l.bf16 %v10447_v48  ;;  %v3583_v1 = vmul.f32 %v10763_v59, %v12376_v38  ;;  %v10452_v57 = vpop.permute.xlu0 %10451 }
 0x733   : > { %10006 = vmatprep.subr.bf16.mxu0 %v10005_v29  ;;  %v10453_v4 = vunpack.i.l.bf16 %v10452_v57 }
 0x734   : > { %v10765_v20 = vpop.eup %10764  ;;  %9421 = vmatmul.mubr.msk.f32.vlgmr.msra.gmra.mrb[48].mxu1 %vm1858_vm2, %v3582_v3  ;;  %10008 = vmatpush3.bf16.msra.mxu0 %v10005_v29  ;;  %v10009_v0 = vpack.c.bf16 %v10449_v60, %v10448_v41  ;;  %v1083_v60 = vld [vmem:[#allocation7 + $0x10] sm:$0xff]  ;;  %v1084_v41 = vld [vmem:[#allocation7 + $0x18] sm:$0xff] }
 0x735   : > { %v10767_v31 = vpop.eup %10766  ;;  %9427 = vmatprep.mubr.msk.f32.mxu0 %vm1858_vm2, %v3583_v1  ;;  %v3584_v58 = vmul.f32 %v10765_v20, %v12382_v28  ;;  %10014 = vmatprep.subr.bf16.mxu0 %v10013_v25  ;;  %v10454_v28 = vunpack.i.h.bf16 %v10452_v57 }
 0x736   : > { %10010 = vmatprep.subr.bf16.mxu1 %v10009_v0  ;;  %v3585_v40 = vmul.f32 %v10767_v31, %v12384_v54  ;;  %v4686_v8 = vpop.permute.xlu0 %4685 }
 0x737   : > { %9428 = vmatmul.mubr.msk.f32.vlgmr.msra.gmra.mrb[58].mxu0 %vm1858_vm2, %v3584_v58  ;;  %10012 = vmatpush3.bf16.msra.mxu1 %v10009_v0  ;;  %v12488_v54 = vpack.c.bf16 %v10454_v28, %v10453_v4  ;;  %v10025_v0 = vpack.c.bf16 %v1084_v41, %v1083_v60 }
 0x738   : > { %v10769_v38 = vpop.eup %10768  ;;  %9434 = vmatprep.mubr.msk.f32.mxu1 %vm1858_vm2, %v3585_v40  ;;  %10205 = vmatprep.subr.bf16.mxu1 %v10013_v25 }
 0x739   : > { %v3586_v11 = vmul.f32 %v10769_v38, %v12390_v27  ;;  %10016 = vmatpush3.bf16.msra.mxu0 %v10013_v25  ;;  %v10457_v27 = vpop.permute.xlu1 %10456 }
 0x73a   : > { %10018 = vmatprep.subr.bf16.mxu0 %v10017_v10  ;;  %v10458_v60 = vunpack.i.l.bf16 %v10457_v27 }
 0x73b   : > { %9435 = vmatmul.mubr.msk.f32.vlgmr.msra.gmra.mrb[50].mxu1 %vm1858_vm2, %v3586_v11 }
 0x73c   : > { %10207 = vmatpush3.bf16.msra.mxu1 %v10013_v25 }
 0x73d   : > { %10206 = vmatprep.subr.bf16.mxu1 %v10017_v10  ;;  %10020 = vmatpush3.bf16.msra.mxu0 %v10017_v10  ;;  %v12493_v15 = vpop.permute.xlu1 %4687 }
 0x73e   : > { %10022 = vmatprep.subr.bf16.mxu0 %v10021_v37 }
 0x740   : > { %10208 = vmatpush3.bf16.msra.mxu1 %v10017_v10 }
 0x741   : > { %10031 = vmatprep.subr.msk.bf16.mxu1 %vm11665_vm1, %v12488_v54  ;;  %v12495_v6 = vpop.permute.xlu1 %4776 }
 0x745   : > { %v12497_v19 = vpop.permute.xlu1 %10466 }
 0x749   : > { %v12499_v61 = vpop.permute.xlu1 %4869 }
 0x74d   : > { %v12501_v9 = vpop.permute.xlu1 %4958 }
 0x751   : > { %v12503_v53 = vpop.permute.xlu1 %10476 }
 0x755   : > { %v12505_v47 = vpop.permute.xlu1 %5051 }
 0x759   : > { %v12507_v59 = vpop.permute.xlu1 %5140 }
 0x75d   : > { %v12509_v48 = vpop.permute.xlu1 %10486 }
 0x761   : > { %v12511_v29 = vpop.permute.xlu1 %5233 }
 0x765   : > { %v12513_v3 = vpop.permute.xlu1 %5324 }
 0x769   : > { %v10497_v1 = vpop.permute.xlu1 %10496 }
 0x76a   : > { %v10499_v31 = vunpack.i.h.bf16 %v10497_v1  ;;  %v10498_v58 = vunpack.i.l.bf16 %v10497_v1 }
 0x76c   : > { %v10081_v42 = vpack.c.bf16 %v10499_v31, %v10498_v58  ;;  %v13423_v58 = vld [vmem:[#allocation41_spill] sm:$0xff] }
 0x76d   : > { %v10507_v38 = vpop.permute.xlu1 %10506 }
 0x76e   : > { %v10509_v11 = vunpack.i.h.bf16 %v10507_v38  ;;  %v10508_v28 = vunpack.i.l.bf16 %v10507_v38  ;;  %v10469_v38 = vunpack.i.h.bf16 %v12497_v19 }
 0x770   : > { %v12525_v1 = vpack.c.bf16 %v10509_v11, %v10508_v28 }
 0x7ef   : > { %v9387_v25 = vpop.f32.mrb[52].mxu0 }
 0x7f0   : > { %v3667_v20 = vpop.f32.mrb[53].mxu0 }
 0x7f1   : > { %9445 = vmatprep.mubr.msk.f32.mxu0 %vm1161_vm0, %v3667_v20  ;;  %v10462_v20 = vpop.permute.xlu0 %10461 }
 0x7f2   : > { %9446 = vmatmul.mubr.msk.f32.vlgmr.msra.gmra.mrb[60].mxu0 %vm1161_vm0, %v9387_v25  ;;  %v10463_v31 = vunpack.i.l.bf16 %v10462_v20 }
 0x7f3   : > { %10024 = vmatpush3.bf16.msra.mxu0 %v10021_v37  ;;  %v10459_v37 = vunpack.i.h.bf16 %v10457_v27 }
 0x7f4   : > { %10026 = vmatprep.subr.bf16.mxu0 %v10025_v0 }
 0x7f7   : > { %10028 = vmatpush3.bf16.msra.mxu0 %v10025_v0  ;;  %v9394_v16 = vpop.f32.mrb[44].mxu1 }
 0x7f8   : > { %10082 = vmatprep.subr.bf16.mxu0 %v10081_v42  ;;  %v3756_v40 = vpop.f32.mrb[45].mxu1 }
 0x7f9   : > { %9448 = vmatprep.mubr.msk.f32.mxu0 %vm1161_vm0, %v3756_v40  ;;  %v13426_v40 = vld [vmem:[#allocation46_spill] sm:$0xff] }
 0x7fa   : > { %9449 = vmatmul.mubr.msk.f32.gmra.mrb[62].mxu0 %vm1161_vm0, %v9394_v16  ;;  %v13425_v16 = vld [vmem:[#allocation43_spill] sm:$0xff] }
 0x7fc   : > { %v9401_v57 = vpop.f32.mrb[54].mxu0 }
 0x7fd   : > { %v3845_v10 = vpop.f32.mrb[55].mxu0 }
 0x7fe   : > { %9451 = vmatprep.mubr.msk.f32.mxu0 %vm1161_vm0, %v3845_v10  ;;  %v13427_v10 = vld [vmem:[#allocation45_spill] sm:$0xff] }
 0x7ff   : > { %9452 = vmatmul.mubr.msk.f32.gmra.mrb[64].mxu0 %vm1161_vm0, %v9401_v57 }
 0x800   : > { %v9415_v4 = vpop.f32.mrb[56].mxu0  ;;  %9477 = vmatprep.mubr.msk.f32.mxu0 %vm1161_vm0, %v12200_v17  ;;  %v10035_v17 = vpack.c.bf16 %v10459_v37, %v10458_v60  ;;  %v10478_v37 = vunpack.i.l.bf16 %v12503_v53 }
 0x801   : > { %v4023_v63 = vpop.f32.mrb[57].mxu0 }
 0x803   : > { %9478 = vmatmul.mubr.msk.f32.vlgmr.msra.gmra.mrb[60].mxu0 %vm1161_vm0, %v12198_v46  ;;  %v9408_v41 = vpop.f32.mrb[46].mxu1 }
 0x804   : > { %10084 = vmatpush3.bf16.msra.mxu0 %v10081_v42  ;;  %9480 = vmatprep.mubr.msk.f32.mxu0 %vm1161_vm0, %v12204_v5  ;;  %v3934_v25 = vpop.f32.mrb[47].mxu1 }
 0x805   : > { %10090 = vmatprep.subr.bf16.mxu0 %v12525_v1  ;;  %9454 = vmatprep.mubr.msk.f32.mxu1 %vm1161_vm0, %v3934_v25 }
 0x806   : > { %9455 = vmatmul.mubr.msk.f32.vlgmr.msra.gmra.mrb[52].mxu1 %vm1161_vm0, %v9408_v41 }
 0x807   : > { %9481 = vmatmul.mubr.msk.f32.gmra.mrb[62].mxu0 %vm1161_vm0, %v12202_v2  ;;  %10034 = vmatpush3.bf16.xpose.msk.msra.mxu1 %vm11665_vm1, %v12488_v54  ;;  %v9422_v46 = vpop.f32.mrb[48].mxu1  ;;  %v4779_v54 = vpop.permute.xlu0 %4778 }
 0x808   : > { %9457 = vmatprep.mubr.msk.f32.mxu1 %vm1161_vm0, %v4023_v63  ;;  %9483 = vmatprep.mubr.msk.f32.mxu0 %vm1161_vm0, %v12208_v35  ;;  %v4112_v5 = vpop.f32.mrb[49].mxu1  ;;  %v10479_v63 = vunpack.i.h.bf16 %v12503_v53 }
 0x809   : > { %10037 = vmatprep.subr.msk.bf16.mxu1 %vm11665_vm1, %v10035_v17 }
 0x80a   : > { %v9429_v27 = vpop.f32.mrb[58].mxu0  ;;  %9458 = vmatmul.mubr.msk.f32.gmra.mrb[54].mxu1 %vm1161_vm0, %v9415_v4  ;;  %v10059_v41 = vpack.c.bf16 %v10479_v63, %v10478_v37 }
 0x80b   : > { %9484 = vmatmul.mubr.msk.f32.gmra.mrb[64].mxu0 %vm1161_vm0, %v12206_v33  ;;  %v4201_v2 = vpop.f32.mrb[59].mxu0  ;;  %9460 = vmatprep.mubr.msk.f32.mxu1 %vm1161_vm0, %v4112_v5  ;;  %v4868_v33 = vpop.permute.xlu0 %4867 }
 0x80c   : > { %9486 = vmatprep.mubr.msk.f32.mxu0 %vm1161_vm0, %v12212_v13  ;;  %v13422_v13 = vld [vmem:[#allocation42_spill] sm:$0xff] }
 0x80e   : > { %v9436_v0 = vpop.f32.mrb[50].mxu1  ;;  %9461 = vmatmul.mubr.msk.f32.gmra.mrb[56].mxu1 %vm1161_vm0, %v9422_v46  ;;  %v10488_v46 = vunpack.i.l.bf16 %v12509_v48 }
 0x80f   : > { %9487 = vmatmul.mubr.msk.f32.gmra.mrb[66].mxu0 %vm1161_vm0, %v12210_v26  ;;  %v4290_v35 = vpop.f32.mrb[51].mxu1  ;;  %9463 = vmatprep.mubr.msk.f32.mxu1 %vm1161_vm0, %v4201_v2  ;;  %v10464_v26 = vunpack.i.h.bf16 %v10462_v20  ;;  %v10472_v42 = vpop.permute.xlu0 %10471  ;;  %v10489_v20 = vunpack.i.h.bf16 %v12509_v48 }
 0x810   : > { %9489 = vmatprep.mubr.msk.f32.mxu0 %vm1161_vm0, %v12216_v49  ;;  %v13424_v49 = vld [vmem:[#allocation44_spill] sm:$0xff]  ;;  %v10474_v28 = vunpack.i.h.bf16 %v10472_v42  ;;  %v10473_v4 = vunpack.i.l.bf16 %v10472_v42 }
 0x811   : > { %v10071_v5 = vpack.c.bf16 %v10489_v20, %v10488_v46 }
 0x812   : > { %9464 = vmatmul.mubr.msk.f32.gmra.mrb[58].mxu1 %vm1161_vm0, %v9429_v27 }
 0x813   : > { %9490 = vmatmul.mubr.msk.f32.gmra.mrb[68].mxu0 %vm1161_vm0, %v12214_v22  ;;  %9466 = vmatprep.mubr.msk.f32.mxu1 %vm1161_vm0, %v4290_v35  ;;  %v10041_v22 = vpack.c.bf16 %v10464_v26, %v10463_v31  ;;  %v4961_v57 = vpop.permute.xlu0 %4960 }
 0x814   : > { %9492 = vmatprep.mubr.msk.f32.mxu0 %vm1161_vm0, %v13422_v13 }
 0x816   : > { %9467 = vmatmul.mubr.msk.f32.gmra.mrb[60].mxu1 %vm1161_vm0, %v9436_v0 }
 0x817   : > { %9493 = vmatmul.mubr.msk.f32.gmra.mrb[70].mxu0 %vm1161_vm0, %v13423_v58  ;;  %9505 = vmatprep.mubr.msk.f32.mxu1 %vm1161_vm0, %v4686_v8  ;;  %v10053_v8 = vpack.c.bf16 %v10474_v28, %v10473_v4  ;;  %v1132_v28 = vld [vmem:[%s11421_s26 + $0x118] sm:$0xff] }
 0x818   : > { %9495 = vmatprep.mubr.msk.f32.mxu0 %vm1161_vm0, %v13424_v49 }
 0x81a   : > { %9506 = vmatmul.mubr.msk.f32.vlgmr.msra.gmra.mrb[62].mxu1 %vm1161_vm0, %v12493_v15  ;;  %v10468_v15 = vunpack.i.l.bf16 %v12497_v19 }
 0x81b   : > { %9496 = vmatmul.mubr.msk.f32.gmra.mrb[72].mxu0 %vm1161_vm0, %v13425_v16  ;;  %10040 = vmatpush3.bf16.xpose.msk.msra.mxu1 %vm11665_vm1, %v10035_v17  ;;  %v1130_v16 = vld [vmem:[%s11421_s26 + $0x108] sm:$0xff] }
 0x81c   : > { %9498 = vmatprep.mubr.msk.f32.mxu0 %vm1161_vm0, %v13426_v40  ;;  %9512 = vmatprep.mubr.msk.f32.mxu1 %vm1161_vm0, %v12495_v6  ;;  %v10047_v11 = vpack.c.bf16 %v10469_v38, %v10468_v15  ;;  %v5050_v6 = vpop.permute.xlu0 %5049  ;;  %v1129_v40 = vld [vmem:[%s11421_s26 + $0x100] sm:$0xff] }
 0x81d   : > { %10043 = vmatprep.subr.msk.bf16.mxu1 %vm11665_vm1, %v10041_v22 }
 0x81f   : > { %9499 = vmatmul.mubr.msk.f32.gmra.mrb[74].mxu0 %vm1161_vm0, %v13427_v10 }
 0x820   : > { %v10482_v19 = vpop.permute.xlu0 %10481 }
 0x822   : > { %9513 = vmatmul.mubr.msk.f32.vlgmr.msra.gmra.mrb[64].mxu1 %vm1161_vm0, %v4779_v54 }
 0x823   : > { %10046 = vmatpush3.bf16.xpose.msk.msra.mxu1 %vm11665_vm1, %v10041_v22  ;;  %9519 = vmatprep.mubr.msk.f32.mxu1 %vm1161_vm0, %v4868_v33 }
 0x824   : > { %10049 = vmatprep.subr.msk.bf16.mxu1 %vm11665_vm1, %v10047_v11  ;;  %v5143_v60 = vpop.permute.xlu0 %5142 }
 0x828   : > { %v5232_v25 = vpop.permute.xlu0 %5231 }
 0x82a   : > { %9520 = vmatmul.mubr.msk.f32.vlgmr.msra.gmra.mrb[66].mxu1 %vm1161_vm0, %v12499_v61  ;;  %v10484_v61 = vunpack.i.h.bf16 %v10482_v19 }
 0x82b   : > { %10052 = vmatpush3.bf16.xpose.msk.msra.mxu1 %vm11665_vm1, %v10047_v11  ;;  %9526 = vmatprep.mubr.msk.f32.mxu1 %vm1161_vm0, %v12501_v9  ;;  %v10483_v9 = vunpack.i.l.bf16 %v10482_v19 }
 0x82c   : > { %10055 = vmatprep.subr.msk.bf16.mxu1 %vm11665_vm1, %v10053_v8  ;;  %v5323_v53 = vpop.permute.xlu0 %5322 }
 0x82d   : > { %v10065_v17 = vpack.c.bf16 %v10484_v61, %v10483_v9  ;;  %v1133_v9 = vld [vmem:[%s11421_s26 + $0x120] sm:$0xff] }
 0x830   : > { %v10492_v27 = vpop.permute.xlu0 %10491 }
 0x832   : > { %9527 = vmatmul.mubr.msk.f32.vlgmr.msra.gmra.mrb[68].mxu1 %vm1161_vm0, %v4961_v57 }
 0x833   : > { %10058 = vmatpush3.bf16.xpose.msk.msra.mxu1 %vm11665_vm1, %v10053_v8  ;;  %9533 = vmatprep.mubr.msk.f32.mxu1 %vm1161_vm0, %v5050_v6  ;;  %v1131_v8 = vld [vmem:[%s11421_s26 + $0x110] sm:$0xff] }
 0x834   : > { %10061 = vmatprep.subr.msk.bf16.mxu1 %vm11665_vm1, %v10059_v41  ;;  %v10502_v54 = vpop.permute.xlu0 %10501 }
 0x835   : > { %v10504_v48 = vunpack.i.h.bf16 %v10502_v54  ;;  %v10503_v0 = vunpack.i.l.bf16 %v10502_v54 }
 0x837   : > { %v12627_v35 = vpack.c.bf16 %v10504_v48, %v10503_v0 }
 0x83a   : > { %9534 = vmatmul.mubr.msk.f32.vlgmr.msra.gmra.mrb[70].mxu1 %vm1161_vm0, %v12505_v47  ;;  %v10494_v47 = vunpack.i.h.bf16 %v10492_v27 }
 0x83b   : > { %10064 = vmatpush3.bf16.xpose.msk.msra.mxu1 %vm11665_vm1, %v10059_v41  ;;  %9540 = vmatprep.mubr.msk.f32.mxu1 %vm1161_vm0, %v12507_v59  ;;  %v10493_v59 = vunpack.i.l.bf16 %v10492_v27  ;;  %v1134_v41 = vld [vmem:[%s11421_s26 + $0x128] sm:$0xff]  ;;  %v1136_v27 = vld [vmem:[%s11421_s26 + $0x138] sm:$0xff] }
 0x83c   : > { %10067 = vmatprep.subr.msk.bf16.mxu1 %vm11665_vm1, %v10065_v17 }
 0x83d   : > { %v10077_v2 = vpack.c.bf16 %v10494_v47, %v10493_v59  ;;  %v1135_v47 = vld [vmem:[%s11421_s26 + $0x130] sm:$0xff] }
 0x842   : > { %9541 = vmatmul.mubr.msk.f32.vlgmr.msra.gmra.mrb[72].mxu1 %vm1161_vm0, %v5143_v60 }
 0x843   : > { %10070 = vmatpush3.bf16.xpose.msk.msra.mxu1 %vm11665_vm1, %v10065_v17  ;;  %9547 = vmatprep.mubr.msk.f32.mxu1 %vm1161_vm0, %v5232_v25 }
 0x844   : > { %10073 = vmatprep.subr.msk.bf16.mxu1 %vm11665_vm1, %v10071_v5 }
 0x84a   : > { %9548 = vmatmul.mubr.msk.f32.vlgmr.msra.gmra.mrb[74].mxu1 %vm1161_vm0, %v12511_v29 }
 0x84b   : > { %10076 = vmatpush3.bf16.xpose.msk.msra.mxu1 %vm11665_vm1, %v10071_v5  ;;  %9554 = vmatprep.mubr.msk.f32.mxu1 %vm1161_vm0, %v5323_v53 }
 0x84c   : > { %10078 = vmatprep.subr.bf16.mxu1 %v10077_v2 }
 0x852   : > { %9555 = vmatmul.mubr.msk.f32.vlgmr.msra.gmra.mrb[76].mxu1 %vm1161_vm0, %v12513_v3 }
 0x853   : > { %10080 = vmatpush3.bf16.msra.mxu1 %v10077_v2 }
 0x854   : > { %10086 = vmatprep.subr.bf16.mxu1 %v12627_v35 }
 0x8d9   : > { %v12630_v29 = vpop.f32.mrb[52].mxu1 }
 0x8da   : > { %v12632_v33 = vpop.f32.mrb[53].mxu1 }
 0x8dd   : > { %v12634_v13 = vpop.f32.mrb[54].mxu1 }
 0x8de   : > { %v12636_v26 = vpop.f32.mrb[55].mxu1 }
 0x8e1   : > { %v12638_v31 = vpop.f32.mrb[56].mxu1 }
 0x8e2   : > { %v12640_v58 = vpop.f32.mrb[57].mxu1 }
 0x8e5   : > { %v12642_v49 = vpop.f32.mrb[58].mxu1 }
 0x8e6   : > { %v12644_v3 = vpop.f32.mrb[59].mxu1 }
 0x8e9   : > { %v12646_v42 = vpop.f32.mrb[60].mxu1 }
 0x8ea   : > { %v12648_v22 = vpop.f32.mrb[61].mxu1 }
 0x8eb   : > { %13428 = vst [vmem:[#allocation34_spill] sm:$0xff] %v12648_v22 }
 0x8ed   : > { %v9507_v38 = vpop.f32.mrb[62].mxu1 }
 0x8ee   : > { %v12652_v15 = vadd.f32 %v9507_v38, %v1130_v16  ;;  %v4767_v57 = vpop.f32.mrb[63].mxu1  ;;  %v1137_v38 = vld [vmem:[%s11421_s26 + $0x140] sm:$0xff] }
 0x8ef   : > { %v12654_v10 = vadd.f32 %v4767_v57, %v1129_v40  ;;  %v1138_v40 = vld [vmem:[%s11421_s26 + $0x148] sm:$0xff] }
 0x8f0   : > { %v5416_v11 = vsel %vm1858_vm2, %v12652_v15, -inf }
 0x8f1   : > { %5417 = vmax.xlane.f32.xlu1 %v5416_v11  ;;  %v5413_v6 = vsel %vm1858_vm2, %v12654_v10, -inf }
 0x8f2   : > { %5414 = vmax.xlane.f32.xlu0 %v5413_v6 }
 0x8f5   : > { %v9514_v4 = vpop.f32.mrb[64].mxu1 }
 0x8f6   : > { %v12662_v19 = vadd.f32 %v9514_v4, %v1132_v28  ;;  %v4858_v63 = vpop.f32.mrb[65].mxu1 }
 0x8f7   : > { %v12664_v37 = vadd.f32 %v4858_v63, %v1131_v8  ;;  %v1140_v63 = vld [vmem:[%s11421_s26 + $0x158] sm:$0xff] }
 0x8f8   : > { %v5422_v60 = vsel %vm1858_vm2, %v12662_v19, -inf }
 0x8f9   : > { %5423 = vmax.xlane.f32.xlu0 %v5422_v60  ;;  %v5419_v61 = vsel %vm1858_vm2, %v12664_v37, -inf  ;;  %v1139_v60 = vld [vmem:[%s11421_s26 + $0x150] sm:$0xff] }
 0x8fd   : > { %v9521_v25 = vpop.f32.mrb[66].mxu1  ;;  %5420 = vmax.xlane.f32.xlu0 %v5419_v61 }
 0x8fe   : > { %v12672_v17 = vadd.f32 %v9521_v25, %v1134_v41  ;;  %v4949_v53 = vpop.f32.mrb[67].mxu1 }
 0x8ff   : > { %v12674_v20 = vadd.f32 %v4949_v53, %v1133_v9 }
 0x900   : > { %v5428_v46 = vsel %vm1858_vm2, %v12672_v17, -inf }
 0x901   : > { %5429 = vmax.xlane.f32.xlu1 %v5428_v46  ;;  %v5425_v5 = vsel %vm1858_vm2, %v12674_v20, -inf }
 0x902   : > { %5426 = vmax.xlane.f32.xlu0 %v5425_v5  ;;  %v1142_v5 = vld [vmem:[%s11421_s26 + $0x168] sm:$0xff] }
 0x905   : > { %v9528_v59 = vpop.f32.mrb[68].mxu1 }
 0x906   : > { %v12682_v2 = vadd.f32 %v9528_v59, %v1136_v27  ;;  %v5040_v54 = vpop.f32.mrb[69].mxu1  ;;  %v1141_v27 = vld [vmem:[%s11421_s26 + $0x160] sm:$0xff] }
 0x907   : > { %v12684_v48 = vadd.f32 %v5040_v54, %v1135_v47 }
 0x908   : > { %v5434_v0 = vsel %vm1858_vm2, %v12682_v2, -inf }
 0x909   : > { %5435 = vmax.xlane.f32.xlu1 %v5434_v0  ;;  %v5431_v16 = vsel %vm1858_vm2, %v12684_v48, -inf }
 0x90a   : > { %5432 = vmax.xlane.f32.xlu0 %v5431_v16 }
 0x90d   : > { %v9535_v57 = vpop.f32.mrb[70].mxu1 }
 0x90e   : > { %v12692_v11 = vadd.f32 %v9535_v57, %v1138_v40  ;;  %v5131_v6 = vpop.f32.mrb[71].mxu1  ;;  %v1143_v57 = vld [vmem:[%s11421_s26 + $0x170] sm:$0xff] }
 0x90f   : > { %v12694_v28 = vadd.f32 %v5131_v6, %v1137_v38  ;;  %v1144_v38 = vld [vmem:[%s11421_s26 + $0x178] sm:$0xff] }
 0x910   : > { %v5440_v4 = vsel %vm1858_vm2, %v12692_v11, -inf }
 0x911   : > { %5441 = vmax.xlane.f32.xlu1 %v5440_v4  ;;  %v5437_v8 = vsel %vm1858_vm2, %v12694_v28, -inf }
 0x912   : > { %5438 = vmax.xlane.f32.xlu0 %v5437_v8 }
 0x915   : > { %v9542_v41 = vpop.f32.mrb[72].mxu1 }
 0x916   : > { %v12702_v61 = vadd.f32 %v9542_v41, %v1140_v63  ;;  %v5222_v9 = vpop.f32.mrb[73].mxu1 }
 0x917   : > { %v12704_v25 = vadd.f32 %v5222_v9, %v1139_v60  ;;  %v13429_v9 = vld [vmem:[#allocation32_spill] sm:$0xff] }
 0x918   : > { %v5446_v53 = vsel %vm1858_vm2, %v12702_v61, -inf }
 0x919   : > { %5447 = vmax.xlane.f32.xlu1 %v5446_v53  ;;  %v5443_v46 = vsel %vm1858_vm2, %v12704_v25, -inf  ;;  %v13430_v53 = vld [vmem:[#allocation31_spill] sm:$0xff] }
 0x91a   : > { %5444 = vmax.xlane.f32.xlu0 %v5443_v46 }
 0x91d   : > { %v9549_v47 = vpop.f32.mrb[74].mxu1 }
 0x91e   : > { %v12712_v59 = vadd.f32 %v9549_v47, %v1142_v5  ;;  %v5313_v54 = vpop.f32.mrb[75].mxu1 }
 0x91f   : > { %v12714_v0 = vadd.f32 %v5313_v54, %v1141_v27 }
 0x920   : > { %v5452_v16 = vsel %vm1858_vm2, %v12712_v59, -inf }
 0x921   : > { %5453 = vmax.xlane.f32.xlu1 %v5452_v16  ;;  %v5449_v40 = vsel %vm1858_vm2, %v12714_v0, -inf }
 0x922   : > { %5450 = vmax.xlane.f32.xlu0 %v5449_v40 }
 0x925   : > { %v9556_v6 = vpop.f32.mrb[76].mxu1 }
 0x926   : > { %v12722_v4 = vadd.f32 %v9556_v6, %v1144_v38  ;;  %v5404_v8 = vpop.f32.mrb[77].mxu1 }
 0x927   : > { %v12724_v63 = vadd.f32 %v5404_v8, %v1143_v57 }
 0x928   : > { %v5458_v60 = vsel %vm1858_vm2, %v12722_v4, -inf }
 0x929   : > { %5459 = vmax.xlane.f32.xlu1 %v5458_v60  ;;  %v5455_v41 = vsel %vm1858_vm2, %v12724_v63, -inf }
 0x92a   : > { %5456 = vmax.xlane.f32.xlu0 %v5455_v41 }
 0x93a   : > { %10516 = vrot.lane.b32.xlu1 %v13429_v9, %s11115_s4 }
 0x940   : > { %10511 = vrot.lane.b32.xlu0 %v13430_v53, %s11115_s4 }
 0x97e   : > { %v5418_v46 = vpop.xlane.xlu1 %5417 }
 0x97f   : > { %v5462_v5 = vsub.f32 %v12652_v15, %v5418_v46  ;;  %v5415_v27 = vpop.xlane.xlu0 %5414 }
 0x980   : > { %v5461_v47 = vsub.f32 %v12654_v10, %v5415_v27 }
 0x981   : > { %v5479_v54 = vmul.f32 1.442695, %v5462_v5 }
 0x982   : > { %v5477_v16 = vmul.f32 1.442695, %v5461_v47 }
 0x983   : > { %10770 = vpow2.f32 %v5479_v54 }
 0x984   : > { %10772 = vpow2.f32 %v5477_v16 }
 0x986   : > { %v5424_v40 = vpop.xlane.xlu0 %5423 }
 0x987   : > { %v5464_v38 = vsub.f32 %v12662_v19, %v5424_v40 }
 0x989   : > { %v5483_v57 = vmul.f32 1.442695, %v5464_v38 }
 0x98a   : > { %v5421_v6 = vpop.xlane.xlu0 %5420 }
 0x98b   : > { %10774 = vpow2.f32 %v5483_v57  ;;  %v5463_v8 = vsub.f32 %v12664_v37, %v5421_v6 }
 0x98d   : > { %v12738_v60 = vpop.eup %10770  ;;  %v5481_v41 = vmul.f32 1.442695, %v5463_v8 }
 0x98e   : > { %v12740_v22 = vpop.eup %10772  ;;  %v5430_v15 = vpop.xlane.xlu1 %5429  ;;  %v5512_v10 = vsel %vm1858_vm2, %v12738_v60, 0.0 }
 0x98f   : > { %10776 = vpow2.f32 %v5481_v41  ;;  %v5466_v46 = vsub.f32 %v12672_v17, %v5430_v15  ;;  %v5427_v5 = vpop.xlane.xlu0 %5426  ;;  %5513 = vadd.xlane.f32.xlu1 %v5512_v10  ;;  %v5509_v19 = vsel %vm1858_vm2, %v12740_v22, 0.0 }
 0x990   : > { %v5465_v27 = vsub.f32 %v12674_v20, %v5427_v5  ;;  %5510 = vadd.xlane.f32.xlu0 %v5509_v19 }
 0x991   : > { %v5487_v37 = vmul.f32 1.442695, %v5466_v46 }
 0x992   : > { %v5485_v47 = vmul.f32 1.442695, %v5465_v27 }
 0x993   : > { %10778 = vpow2.f32 %v5487_v37 }
 0x994   : > { %10780 = vpow2.f32 %v5485_v47 }
 0x995   : > { %v12748_v54 = vpop.eup %10774 }
 0x996   : > { %v5436_v16 = vpop.xlane.xlu1 %5435  ;;  %v5518_v40 = vsel %vm1858_vm2, %v12748_v54, 0.0 }
 0x997   : > { %v5468_v17 = vsub.f32 %v12682_v2, %v5436_v16  ;;  %5519 = vadd.xlane.f32.xlu1 %v5518_v40  ;;  %v5433_v38 = vpop.xlane.xlu0 %5432 }
 0x998   : > { %v5467_v57 = vsub.f32 %v12684_v48, %v5433_v38 }
 0x999   : > { %v12754_v6 = vpop.eup %10776  ;;  %v5491_v20 = vmul.f32 1.442695, %v5468_v17 }
 0x99a   : > { %v5489_v8 = vmul.f32 1.442695, %v5467_v57  ;;  %v5515_v41 = vsel %vm1858_vm2, %v12754_v6, 0.0 }
 0x99b   : > { %10782 = vpow2.f32 %v5491_v20  ;;  %5516 = vadd.xlane.f32.xlu0 %v5515_v41 }
 0x99c   : > { %10784 = vpow2.f32 %v5489_v8 }
 0x99d   : > { %v12758_v15 = vpop.eup %10778 }
 0x99e   : > { %v12760_v10 = vpop.eup %10780  ;;  %v5442_v46 = vpop.xlane.xlu1 %5441  ;;  %v5524_v2 = vsel %vm1858_vm2, %v12758_v15, 0.0 }
 0x99f   : > { %v5470_v48 = vsub.f32 %v12692_v11, %v5442_v46  ;;  %5525 = vadd.xlane.f32.xlu1 %v5524_v2  ;;  %v5439_v5 = vpop.xlane.xlu0 %5438  ;;  %v5521_v19 = vsel %vm1858_vm2, %v12760_v10, 0.0 }
 0x9a0   : > { %v5469_v27 = vsub.f32 %v12694_v28, %v5439_v5  ;;  %5522 = vadd.xlane.f32.xlu0 %v5521_v19 }
 0x9a1   : > { %v5495_v37 = vmul.f32 1.442695, %v5470_v48 }
 0x9a2   : > { %v5493_v47 = vmul.f32 1.442695, %v5469_v27 }
 0x9a3   : > { %10786 = vpow2.f32 %v5495_v37 }
 0x9a4   : > { %10788 = vpow2.f32 %v5493_v47 }
 0x9a5   : > { %v12768_v16 = vpop.eup %10782 }
 0x9a6   : > { %v12770_v40 = vpop.eup %10784  ;;  %v5448_v17 = vpop.xlane.xlu1 %5447  ;;  %v5530_v11 = vsel %vm1858_vm2, %v12768_v16, 0.0 }
 0x9a7   : > { %v5472_v38 = vsub.f32 %v12702_v61, %v5448_v17  ;;  %5531 = vadd.xlane.f32.xlu1 %v5530_v11  ;;  %v5445_v57 = vpop.xlane.xlu0 %5444  ;;  %v5527_v28 = vsel %vm1858_vm2, %v12770_v40, 0.0 }
 0x9a8   : > { %v5471_v20 = vsub.f32 %v12704_v25, %v5445_v57  ;;  %5528 = vadd.xlane.f32.xlu0 %v5527_v28 }
 0x9a9   : > { %v5499_v8 = vmul.f32 1.442695, %v5472_v38 }
 0x9aa   : > { %v5497_v41 = vmul.f32 1.442695, %v5471_v20 }
 0x9ab   : > { %10790 = vpow2.f32 %v5499_v8 }
 0x9ac   : > { %10792 = vpow2.f32 %v5497_v41 }
 0x9ad   : > { %v12778_v46 = vpop.eup %10786 }
 0x9ae   : > { %v12780_v2 = vpop.eup %10788  ;;  %v5454_v48 = vpop.xlane.xlu1 %5453  ;;  %v5536_v61 = vsel %vm1858_vm2, %v12778_v46, 0.0 }
 0x9af   : > { %v5474_v5 = vsub.f32 %v12712_v59, %v5454_v48  ;;  %5537 = vadd.xlane.f32.xlu1 %v5536_v61  ;;  %v5451_v19 = vpop.xlane.xlu0 %5450  ;;  %v5533_v25 = vsel %vm1858_vm2, %v12780_v2, 0.0 }
 0x9b0   : > { %v5473_v27 = vsub.f32 %v12714_v0, %v5451_v19  ;;  %5534 = vadd.xlane.f32.xlu0 %v5533_v25 }
 0x9b1   : > { %v5503_v37 = vmul.f32 1.442695, %v5474_v5 }
 0x9b2   : > { %v5501_v47 = vmul.f32 1.442695, %v5473_v27 }
 0x9b3   : > { %10794 = vpow2.f32 %v5503_v37 }
 0x9b4   : > { %10796 = vpow2.f32 %v5501_v47 }
 0x9b5   : > { %v12788_v17 = vpop.eup %10790 }
 0x9b6   : > { %v12790_v11 = vpop.eup %10792  ;;  %v5460_v38 = vpop.xlane.xlu1 %5459  ;;  %v5542_v59 = vsel %vm1858_vm2, %v12788_v17, 0.0 }
 0x9b7   : > { %v5476_v57 = vsub.f32 %v12722_v4, %v5460_v38  ;;  %5543 = vadd.xlane.f32.xlu1 %v5542_v59  ;;  %v5457_v28 = vpop.xlane.xlu0 %5456  ;;  %v5539_v0 = vsel %vm1858_vm2, %v12790_v11, 0.0 }
 0x9b8   : > { %v5475_v20 = vsub.f32 %v12724_v63, %v5457_v28  ;;  %5540 = vadd.xlane.f32.xlu0 %v5539_v0 }
 0x9b9   : > { %v5507_v8 = vmul.f32 1.442695, %v5476_v57 }
 0x9ba   : > { %v5505_v41 = vmul.f32 1.442695, %v5475_v20 }
 0x9bb   : > { %10798 = vpow2.f32 %v5507_v8 }
 0x9bc   : > { %10800 = vpow2.f32 %v5505_v41 }
 0x9bd   : > { %v12798_v48 = vpop.eup %10794 }
 0x9be   : > { %v5548_v61 = vsel %vm1858_vm2, %v12798_v48, 0.0  ;;  %v12802_v5 = vpop.eup %10796 }
 0x9bf   : > { %5549 = vadd.xlane.f32.xlu1 %v5548_v61  ;;  %v5545_v4 = vsel %vm1858_vm2, %v12802_v5, 0.0 }
 0x9c3   : > { %5546 = vadd.xlane.f32.xlu1 %v5545_v4 }
 0x9c5   : > { %v12806_v19 = vpop.eup %10798 }
 0x9c6   : > { %v12808_v63 = vpop.eup %10800  ;;  %v5554_v25 = vsel %vm1858_vm2, %v12806_v19, 0.0 }
 0x9c7   : > { %5555 = vadd.xlane.f32.xlu1 %v5554_v25  ;;  %v5551_v27 = vsel %vm1858_vm2, %v12808_v63, 0.0 }
 0x9c8   : > { %5552 = vadd.xlane.f32.xlu0 %v5551_v27 }
 0x9d8   : > { %10526 = vrot.lane.b32.xlu1 %v11778_v39, %s11115_s4 }
 0x9dc   : > { %10536 = vrot.lane.b32.xlu1 %v11694_v34, %s11116_s6  ;;  %v13434_v34 = vld [vmem:[#allocation40_spill] sm:$0xff] }
 0x9de   : > { %10521 = vrot.lane.b32.xlu0 %v13413_v21, %s11115_s4 }
 0x9e0   : > { %6496 = vrot.lane.b32.xlu1 %v11690_v44, %s11116_s6  ;;  %v13433_v44 = vld [vmem:[#allocation35_spill] sm:$0xff] }
 0x9e2   : > { %10531 = vrot.lane.b32.xlu0 %v11671_v18, %s11116_s6  ;;  %v13432_v18 = vld [vmem:[#allocation38_spill] sm:$0xff] }
 0x9e4   : > { %6585 = vrot.lane.b32.xlu1 %v13414_v52, %s11116_s6 }
 0x9e6   : > { %6494 = vrot.lane.b32.xlu0 %v11651_v56, %s11116_s6  ;;  %v13431_v56 = vld [vmem:[#allocation36_spill] sm:$0xff] }
 0x9e8   : > { %10546 = vrot.lane.b32.xlu1 %v13416_v50, %s11116_s6 }
 0x9ea   : > { %10541 = vrot.lane.b32.xlu0 %v13415_v32, %s11116_s6 }
 0x9ec   : > { %6678 = vrot.lane.b32.xlu1 %v11750_v23, %s11116_s6  ;;  %v13436_v23 = vld [vmem:[#allocation39_spill] sm:$0xff] }
 0x9ee   : > { %6587 = vrot.lane.b32.xlu0 %v13417_v55, %s11116_s6 }
 0x9f0   : > { %6767 = vrot.lane.b32.xlu1 %v11753_v24, %s11116_s6  ;;  %v10517_v24 = vpop.permute.xlu1 %10516 }
 0x9f1   : > { %v10519_v28 = vunpack.i.h.bf16 %v10517_v24  ;;  %v10518_v0 = vunpack.i.l.bf16 %v10517_v24 }
 0x9f2   : > { %6676 = vrot.lane.b32.xlu0 %v11729_v51, %s11116_s6  ;;  %v13435_v51 = vld [vmem:[#allocation37_spill] sm:$0xff] }
 0x9f3   : > { %v10097_v61 = vpack.c.bf16 %v10519_v28, %v10518_v0 }
 0x9f4   : > { %10556 = vrot.lane.b32.xlu1 %v11803_v62, %s11116_s6 }
 0x9f6   : > { %10551 = vrot.lane.b32.xlu0 %v11785_v45, %s11116_s6 }
 0x9f8   : > { %6858 = vrot.lane.b32.xlu1 %v11762_v30, %s11116_s6  ;;  %v10512_v30 = vpop.permute.xlu0 %10511 }
 0x9f9   : > { %v10513_v52 = vunpack.i.l.bf16 %v10512_v30 }
 0x9fa   : > { %6769 = vrot.lane.b32.xlu0 %v11783_v36, %s11116_s6 }
 0x9fc   : > { %10566 = vrot.lane.b32.xlu1 %v11843_v43, %s11116_s6  ;;  %v10514_v43 = vunpack.i.h.bf16 %v10512_v30 }
 0x9fe   : > { %10561 = vrot.lane.b32.xlu0 %v11824_v14, %s11116_s6  ;;  %v10093_v37 = vpack.c.bf16 %v10514_v43, %v10513_v52  ;;  %v1089_v52 = vld [vmem:[#allocation7 + $0x40] sm:$0xff] }
 0xa00   : > { %6951 = vrot.lane.b32.xlu1 %v11822_v7, %s11116_s6 }
 0xa02   : > { %6860 = vrot.lane.b32.xlu0 %v13431_v56, %s11116_s6 }
 0xa04   : > { %7042 = vrot.lane.b32.xlu1 %v13432_v18, %s11116_s6 }
 0xa06   : > { %6949 = vrot.lane.b32.xlu0 %v13433_v44, %s11116_s6 }
 0xa08   : > { %7133 = vrot.lane.b32.xlu1 %v13434_v34, %s11116_s6 }
 0xa0a   : > { %7040 = vrot.lane.b32.xlu0 %v13435_v51, %s11116_s6 }
 0xa0e   : > { %7131 = vrot.lane.b32.xlu0 %v13436_v23, %s11116_s6 }
 0xa1c   : > { %v5514_v36 = vpop.xlane.xlu1 %5513 }
 0xa1d   : > { %10802 = vrcp.f32 %v5514_v36  ;;  %v5511_v45 = vpop.xlane.xlu0 %5510 }
 0xa1e   : > { %10804 = vrcp.f32 %v5511_v45 }
 0xa24   : > { %v5520_v62 = vpop.xlane.xlu1 %5519 }
 0xa25   : > { %10806 = vrcp.f32 %v5520_v62 }
 0xa27   : > { %v10803_v7 = vpop.eup %10802 }
 0xa28   : > { %v10805_v14 = vpop.eup %10804  ;;  %v5517_v32 = vpop.xlane.xlu0 %5516  ;;  %v5574_v55 = vmul.f32 %v10803_v7, %v12738_v60 }
 0xa29   : > { %10808 = vrcp.f32 %v5517_v32  ;;  %v5573_v50 = vmul.f32 %v10805_v14, %v12740_v22  ;;  %v1090_v32 = vld [vmem:[#allocation7 + $0x48] sm:$0xff] }
 0xa2b   : > { %9561 = vmatprep.mubr.msk.f32.mxu1 %vm1858_vm2, %v5573_v50 }
 0xa2c   : > { %v5526_v47 = vpop.xlane.xlu1 %5525  ;;  %9562 = vmatmul.mubr.msk.f32.vlgmr.msra.gmra.mrb[78].mxu1 %vm1858_vm2, %v5574_v55 }
 0xa2d   : > { %10810 = vrcp.f32 %v5526_v47  ;;  %10088 = vmatpush3.bf16.msra.mxu1 %v12627_v35  ;;  %v5523_v38 = vpop.xlane.xlu0 %5522 }
 0xa2e   : > { %10812 = vrcp.f32 %v5523_v38  ;;  %10094 = vmatprep.subr.bf16.mxu1 %v10093_v37 }
 0xa2f   : > { %v10807_v59 = vpop.eup %10806 }
 0xa30   : > { %v5576_v60 = vmul.f32 %v10807_v59, %v12748_v54  ;;  %v10109_v59 = vpack.c.bf16 %v1090_v32, %v1089_v52 }
 0xa33   : > { %v10809_v57 = vpop.eup %10808 }
 0xa34   : > { %v5532_v20 = vpop.xlane.xlu1 %5531  ;;  %v5575_v22 = vmul.f32 %v10809_v57, %v12754_v6 }
 0xa35   : > { %10814 = vrcp.f32 %v5532_v20  ;;  %v5529_v8 = vpop.xlane.xlu0 %5528 }
 0xa36   : > { %10816 = vrcp.f32 %v5529_v8  ;;  %9568 = vmatprep.mubr.msk.f32.mxu0 %vm1858_vm2, %v5575_v22  ;;  %v1092_v8 = vld [vmem:[#allocation7 + $0x58] sm:$0xff] }
 0xa37   : > { %v10811_v41 = vpop.eup %10810  ;;  %9569 = vmatmul.mubr.msk.f32.vlgmr.msra.gmra.mrb[76].mxu0 %vm1858_vm2, %v5576_v60  ;;  %v1091_v60 = vld [vmem:[#allocation7 + $0x50] sm:$0xff] }
 0xa38   : > { %v10813_v35 = vpop.eup %10812  ;;  %10092 = vmatpush3.bf16.msra.mxu0 %v12525_v1  ;;  %v5578_v25 = vmul.f32 %v10811_v41, %v12758_v15 }
 0xa39   : > { %10098 = vmatprep.subr.bf16.mxu0 %v10097_v61  ;;  %v5577_v4 = vmul.f32 %v10813_v35, %v12760_v10 }
 0xa3b   : > { %9575 = vmatprep.mubr.msk.f32.mxu1 %vm1858_vm2, %v5577_v4 }
 0xa3c   : > { %v5538_v54 = vpop.xlane.xlu1 %5537  ;;  %9576 = vmatmul.mubr.msk.f32.vlgmr.msra.gmra.mrb[80].mxu1 %vm1858_vm2, %v5578_v25 }
 0xa3d   : > { %10818 = vrcp.f32 %v5538_v54  ;;  %10096 = vmatpush3.bf16.msra.mxu1 %v10093_v37  ;;  %v5535_v6 = vpop.xlane.xlu0 %5534 }
 0xa3e   : > { %10820 = vrcp.f32 %v5535_v6  ;;  %v10113_v6 = vpack.c.bf16 %v1092_v8, %v1091_v60 }
 0xa3f   : > { %v10815_v27 = vpop.eup %10814 }
 0xa40   : > { %v10817_v56 = vpop.eup %10816  ;;  %v5580_v1 = vmul.f32 %v10815_v27, %v12768_v16 }
 0xa41   : > { %v5579_v18 = vmul.f32 %v10817_v56, %v12770_v40 }
 0xa43   : > { %9582 = vmatprep.mubr.msk.f32.mxu0 %vm1858_vm2, %v5579_v18 }
 0xa44   : > { %v5544_v10 = vpop.xlane.xlu1 %5543  ;;  %9583 = vmatmul.mubr.msk.f32.vlgmr.msra.gmra.mrb[78].mxu0 %vm1858_vm2, %v5580_v1 }
 0xa45   : > { %10822 = vrcp.f32 %v5544_v10  ;;  %10100 = vmatpush3.bf16.msra.mxu0 %v10097_v61  ;;  %v5541_v15 = vpop.xlane.xlu0 %5540 }
 0xa46   : > { %10824 = vrcp.f32 %v5541_v15 }
 0xa47   : > { %v10819_v44 = vpop.eup %10818 }
 0xa48   : > { %v10821_v34 = vpop.eup %10820  ;;  %v5582_v23 = vmul.f32 %v10819_v44, %v12778_v46 }
 0xa49   : > { %v5581_v51 = vmul.f32 %v10821_v34, %v12780_v2 }
 0xa4b   : > { %9589 = vmatprep.mubr.msk.f32.mxu1 %vm1858_vm2, %v5581_v51 }
 0xa4c   : > { %v5550_v40 = vpop.xlane.xlu1 %5549  ;;  %9590 = vmatmul.mubr.msk.f32.vlgmr.msra.gmra.mrb[82].mxu1 %vm1858_vm2, %v5582_v23 }
 0xa4f   : > { %v10823_v16 = vpop.eup %10822 }
 0xa50   : > { %v10825_v24 = vpop.eup %10824  ;;  %v5547_v30 = vpop.xlane.xlu1 %5546  ;;  %v5584_v45 = vmul.f32 %v10823_v16, %v12788_v17 }
 0xa51   : > { %10826 = vrcp.f32 %v5547_v30  ;;  %v5583_v36 = vmul.f32 %v10825_v24, %v12790_v11 }
 0xa52   : > { %10828 = vrcp.f32 %v5550_v40 }
 0xa53   : > { %9596 = vmatprep.mubr.msk.f32.mxu0 %vm1858_vm2, %v5583_v36 }
 0xa54   : > { %v5556_v62 = vpop.xlane.xlu1 %5555  ;;  %9597 = vmatmul.mubr.msk.f32.vlgmr.msra.gmra.mrb[80].mxu0 %vm1858_vm2, %v5584_v45 }
 0xa55   : > { %10830 = vrcp.f32 %v5556_v62  ;;  %v5553_v46 = vpop.xlane.xlu0 %5552 }
 0xa56   : > { %10832 = vrcp.f32 %v5553_v46 }
 0xa58   : > { %v10527_v2 = vpop.permute.xlu1 %10526 }
 0xa59   : > { %v10529_v7 = vunpack.i.h.bf16 %v10527_v2  ;;  %v10528_v14 = vunpack.i.l.bf16 %v10527_v2  ;;  %v10522_v43 = vpop.permute.xlu0 %10521 }
 0xa5a   : > { %v10524_v50 = vunpack.i.h.bf16 %v10522_v43  ;;  %v10523_v55 = vunpack.i.l.bf16 %v10522_v43 }
 0xa5b   : > { %v10827_v11 = vpop.eup %10826  ;;  %v10105_v37 = vpack.c.bf16 %v10529_v7, %v10528_v14 }
 0xa5c   : > { %v10101_v17 = vpack.c.bf16 %v10524_v50, %v10523_v55  ;;  %v10537_v47 = vpop.permute.xlu1 %10536  ;;  %v5585_v38 = vmul.f32 %v10827_v11, %v12802_v5  ;;  %v10829_v57 = vpop.eup %10828 }
 0xa5d   : > { %10106 = vmatprep.subr.bf16.mxu0 %v10105_v37  ;;  %v10532_v28 = vpop.permute.xlu0 %10531  ;;  %v5586_v61 = vmul.f32 %v10829_v57, %v12798_v48  ;;  %v10539_v27 = vunpack.i.h.bf16 %v10537_v47  ;;  %v10538_v56 = vunpack.i.l.bf16 %v10537_v47 }
 0xa5e   : > { %v10534_v0 = vunpack.i.h.bf16 %v10532_v28  ;;  %v10533_v20 = vunpack.i.l.bf16 %v10532_v28  ;;  %10102 = vmatprep.subr.bf16.mxu1 %v10101_v17  ;;  %9603 = vmatprep.mubr.msk.f32.mxu1 %vm1858_vm2, %v5585_v38 }
 0xa5f   : > { %v10831_v22 = vpop.eup %10830  ;;  %10108 = vmatpush3.bf16.msra.mxu0 %v10105_v37  ;;  %10104 = vmatpush3.bf16.msra.mxu1 %v10101_v17 }
 0xa60   : > { %v10833_v41 = vpop.eup %10832  ;;  %v10117_v35 = vpack.c.bf16 %v10534_v0, %v10533_v20  ;;  %v6497_v4 = vpop.permute.xlu1 %6496  ;;  %10110 = vmatprep.subr.bf16.mxu0 %v10109_v59  ;;  %v5588_v54 = vmul.f32 %v10831_v22, %v12806_v19 }
 0xa61   : > { %v6495_v5 = vpop.permute.xlu0 %6494  ;;  %v5587_v25 = vmul.f32 %v10833_v41, %v12808_v63  ;;  %v10123_v63 = vpack.c.bf16 %v10539_v27, %v10538_v56 }
 0xa62   : > { %9604 = vmatmul.mubr.msk.f32.vlgmr.msra.gmra.mrb[84].mxu1 %vm1858_vm2, %v5586_v61  ;;  %10119 = vmatprep.subr.msk.bf16.mxu1 %vm11665_vm1, %v10117_v35 }
 0xa63   : > { %9610 = vmatprep.mubr.msk.f32.mxu0 %vm1858_vm2, %v5587_v25  ;;  %9649 = vmatprep.mubr.msk.f32.mxu1 %vm1161_vm0, %v6495_v5 }
 0xa64   : > { %v6586_v48 = vpop.permute.xlu1 %6585  ;;  %9611 = vmatmul.mubr.msk.f32.vlgmr.msra.gmra.mrb[82].mxu0 %vm1858_vm2, %v5588_v54 }
 0xa65   : > { %v10542_v18 = vpop.permute.xlu0 %10541  ;;  %10112 = vmatpush3.bf16.msra.mxu0 %v10109_v59 }
 0xa66   : > { %10114 = vmatprep.subr.bf16.mxu0 %v10113_v6  ;;  %v10544_v10 = vunpack.i.h.bf16 %v10542_v18  ;;  %v10543_v15 = vunpack.i.l.bf16 %v10542_v18 }
 0xa68   : > { %v10547_v19 = vpop.permute.xlu1 %10546  ;;  %10122 = vmatpush3.bf16.xpose.msk.msra.mxu1 %vm11665_vm1, %v10117_v35  ;;  %v10129_v51 = vpack.c.bf16 %v10544_v10, %v10543_v15  ;;  %v1145_v10 = vld [vmem:[%s11421_s26 + $0x180] sm:$0xff] }
 0xa69   : > { %v6588_v1 = vpop.permute.xlu0 %6587  ;;  %10125 = vmatprep.subr.msk.bf16.mxu1 %vm11665_vm1, %v10123_v63  ;;  %10116 = vmatpush3.bf16.msra.mxu0 %v10113_v6  ;;  %v10549_v16 = vunpack.i.h.bf16 %v10547_v19  ;;  %v10548_v24 = vunpack.i.l.bf16 %v10547_v19 }
 0xa6b   : > { %v10135_v62 = vpack.c.bf16 %v10549_v16, %v10548_v24 }
 0xa6c   : > { %v6679_v44 = vpop.permute.xlu1 %6678 }
 0xa6d   : > { %v6677_v34 = vpop.permute.xlu0 %6676 }
 0xa6f   : > { %9650 = vmatmul.mubr.msk.f32.vlgmr.msra.gmra.mrb[86].mxu1 %vm1161_vm0, %v6497_v4 }
 0xa70   : > { %v6768_v23 = vpop.permute.xlu1 %6767  ;;  %10128 = vmatpush3.bf16.xpose.msk.msra.mxu1 %vm11665_vm1, %v10123_v63  ;;  %9656 = vmatprep.mubr.msk.f32.mxu1 %vm1161_vm0, %v6586_v48 }
 0xa71   : > { %v10552_v40 = vpop.permute.xlu0 %10551  ;;  %10131 = vmatprep.subr.msk.bf16.mxu1 %vm11665_vm1, %v10129_v51 }
 0xa72   : > { %v10554_v7 = vunpack.i.h.bf16 %v10552_v40  ;;  %v10553_v14 = vunpack.i.l.bf16 %v10552_v40 }
 0xa74   : > { %v10557_v30 = vpop.permute.xlu1 %10556  ;;  %v10141_v52 = vpack.c.bf16 %v10554_v7, %v10553_v14  ;;  %v1149_v14 = vld [vmem:[%s11421_s26 + $0x1a0] sm:$0xff] }
 0xa75   : > { %v10559_v36 = vunpack.i.h.bf16 %v10557_v30  ;;  %v10558_v45 = vunpack.i.l.bf16 %v10557_v30  ;;  %v6770_v2 = vpop.permute.xlu0 %6769  ;;  %v1147_v30 = vld [vmem:[%s11421_s26 + $0x190] sm:$0xff] }
 0xa77   : > { %v10147_v46 = vpack.c.bf16 %v10559_v36, %v10558_v45  ;;  %9657 = vmatmul.mubr.msk.f32.vlgmr.msra.gmra.mrb[88].mxu1 %vm1161_vm0, %v6588_v1  ;;  %v1146_v1 = vld [vmem:[%s11421_s26 + $0x188] sm:$0xff] }
 0xa78   : > { %10134 = vmatpush3.bf16.xpose.msk.msra.mxu1 %vm11665_vm1, %v10129_v51  ;;  %9663 = vmatprep.mubr.msk.f32.mxu1 %vm1161_vm0, %v6677_v34  ;;  %v6859_v11 = vpop.permute.xlu1 %6858 }
 0xa79   : > { %10149 = vmatprep.subr.msk.bf16.mxu0 %vm11665_vm1, %v10147_v46  ;;  %10137 = vmatprep.subr.msk.bf16.mxu1 %vm11665_vm1, %v10135_v62  ;;  %v10562_v43 = vpop.permute.xlu0 %10561 }
 0xa7a   : > { %v10564_v32 = vunpack.i.h.bf16 %v10562_v43  ;;  %v10563_v50 = vunpack.i.l.bf16 %v10562_v43 }
 0xa7c   : > { %v10153_v37 = vpack.c.bf16 %v10564_v32, %v10563_v50  ;;  %v10567_v47 = vpop.permute.xlu1 %10566 }
 0xa7d   : > { %v6861_v55 = vpop.permute.xlu0 %6860  ;;  %v10569_v28 = vunpack.i.h.bf16 %v10567_v47  ;;  %v10568_v0 = vunpack.i.l.bf16 %v10567_v47 }
 0xa7f   : > { %9664 = vmatmul.mubr.msk.f32.vlgmr.msra.gmra.mrb[90].mxu1 %vm1161_vm0, %v6679_v44  ;;  %v10159_v60 = vpack.c.bf16 %v10569_v28, %v10568_v0 }
 0xa80   : > { %10140 = vmatpush3.bf16.xpose.msk.msra.mxu1 %vm11665_vm1, %v10135_v62  ;;  %9670 = vmatprep.mubr.msk.f32.mxu1 %vm1161_vm0, %v6768_v23  ;;  %v6952_v59 = vpop.permute.xlu1 %6951 }
 0xa81   : > { %10143 = vmatprep.subr.msk.bf16.mxu1 %vm11665_vm1, %v10141_v52  ;;  %v6950_v17 = vpop.permute.xlu0 %6949 }
 0xa84   : > { %v7043_v57 = vpop.permute.xlu1 %7042 }
 0xa85   : > { %v7041_v38 = vpop.permute.xlu0 %7040 }
 0xa87   : > { %9671 = vmatmul.mubr.msk.f32.vlgmr.msra.gmra.mrb[92].mxu1 %vm1161_vm0, %v6770_v2  ;;  %v1150_v2 = vld [vmem:[%s11421_s26 + $0x1a8] sm:$0xff] }
 0xa88   : > { %10146 = vmatpush3.bf16.xpose.msk.msra.mxu1 %vm11665_vm1, %v10141_v52  ;;  %9677 = vmatprep.mubr.msk.f32.mxu1 %vm1161_vm0, %v6859_v11  ;;  %v7134_v16 = vpop.permute.xlu1 %7133 }
 0xa89   : > { %10155 = vmatprep.subr.msk.bf16.mxu1 %vm11665_vm1, %v10153_v37  ;;  %v7132_v19 = vpop.permute.xlu0 %7131 }
 0xa8f   : > { %9678 = vmatmul.mubr.msk.f32.vlgmr.msra.gmra.mrb[94].mxu1 %vm1161_vm0, %v6861_v55 }
 0xa90   : > { %10158 = vmatpush3.bf16.xpose.msk.msra.mxu1 %vm11665_vm1, %v10153_v37  ;;  %9691 = vmatprep.mubr.msk.f32.mxu1 %vm1161_vm0, %v7041_v38  ;;  %v1152_v37 = vld [vmem:[%s11421_s26 + $0x1b8] sm:$0xff] }
 0xa97   : > { %9692 = vmatmul.mubr.msk.f32.vlgmr.msra.gmra.mrb[96].mxu1 %vm1161_vm0, %v7043_v57 }
 0xaff   : > { %v9563_v20 = vpop.f32.mrb[78].mxu1 }
 0xb00   : > { %v5667_v22 = vpop.f32.mrb[79].mxu1 }
 0xb01   : > { %9621 = vmatprep.mubr.msk.f32.mxu0 %vm1161_vm0, %v5667_v22  ;;  %v1153_v22 = vld [vmem:[%s11421_s26 + $0x1c0] sm:$0xff] }
 0xb02   : > { %9622 = vmatmul.mubr.msk.f32.vlgmr.msra.gmra.mrb[60].mxu0 %vm1161_vm0, %v9563_v20  ;;  %v1154_v20 = vld [vmem:[%s11421_s26 + $0x1c8] sm:$0xff] }
 0xb03   : > { %10152 = vmatpush3.bf16.xpose.msk.msra.mxu0 %vm11665_vm1, %v10147_v46 }
 0xb04   : > { %10161 = vmatprep.subr.msk.bf16.mxu0 %vm11665_vm1, %v10159_v60 }
 0xb0a   : > { %v9570_v8 = vpop.f32.mrb[76].mxu0 }
 0xb0b   : > { %v5754_v41 = vpop.f32.mrb[77].mxu0 }
 0xb0c   : > { %9624 = vmatprep.mubr.msk.f32.mxu0 %vm1161_vm0, %v5754_v41 }
 0xb0d   : > { %9625 = vmatmul.mubr.msk.f32.gmra.mrb[62].mxu0 %vm1161_vm0, %v9570_v8 }
 0xb0f   : > { %v9577_v61 = vpop.f32.mrb[80].mxu1 }
 0xb10   : > { %v5841_v35 = vpop.f32.mrb[81].mxu1 }
 0xb11   : > { %9627 = vmatprep.mubr.msk.f32.mxu0 %vm1161_vm0, %v5841_v35 }
 0xb12   : > { %9628 = vmatmul.mubr.msk.f32.gmra.mrb[64].mxu0 %vm1161_vm0, %v9577_v61 }
 0xb17   : > { %v9584_v4 = vpop.f32.mrb[78].mxu0 }
 0xb18   : > { %v5928_v5 = vpop.f32.mrb[79].mxu0 }
 0xb19   : > { %9630 = vmatprep.mubr.msk.f32.mxu0 %vm1161_vm0, %v5928_v5  ;;  %v1158_v5 = vld [vmem:[%s11421_s26 + $0x1e8] sm:$0xff] }
 0xb1a   : > { %9631 = vmatmul.mubr.msk.f32.gmra.mrb[66].mxu0 %vm1161_vm0, %v9584_v4 }
 0xb1f   : > { %v9591_v25 = vpop.f32.mrb[82].mxu1 }
 0xb20   : > { %v6015_v54 = vpop.f32.mrb[83].mxu1 }
 0xb21   : > { %9633 = vmatprep.mubr.msk.f32.mxu0 %vm1161_vm0, %v6015_v54 }
 0xb22   : > { %9634 = vmatmul.mubr.msk.f32.gmra.mrb[68].mxu0 %vm1161_vm0, %v9591_v25  ;;  %v1157_v25 = vld [vmem:[%s11421_s26 + $0x1e0] sm:$0xff] }
 0xb27   : > { %v9598_v6 = vpop.f32.mrb[80].mxu0 }
 0xb28   : > { %v6102_v27 = vpop.f32.mrb[81].mxu0 }
 0xb29   : > { %9636 = vmatprep.mubr.msk.f32.mxu0 %vm1161_vm0, %v6102_v27 }
 0xb2a   : > { %9637 = vmatmul.mubr.msk.f32.gmra.mrb[70].mxu0 %vm1161_vm0, %v9598_v6 }
 0xb35   : > { %v9605_v56 = vpop.f32.mrb[84].mxu1 }
 0xb36   : > { %v6189_v48 = vpop.f32.mrb[85].mxu1 }
 0xb37   : > { %v9612_v18 = vpop.f32.mrb[82].mxu0  ;;  %9639 = vmatprep.mubr.msk.f32.mxu0 %vm1161_vm0, %v6189_v48 }
 0xb38   : > { %v6276_v63 = vpop.f32.mrb[83].mxu0  ;;  %9640 = vmatmul.mubr.msk.f32.gmra.mrb[72].mxu0 %vm1161_vm0, %v9605_v56 }
 0xb39   : > { %9642 = vmatprep.mubr.msk.f32.mxu0 %vm1161_vm0, %v6276_v63 }
 0xb3c   : > { %9643 = vmatmul.mubr.msk.f32.gmra.mrb[74].mxu0 %vm1161_vm0, %v9612_v18 }
 0xb3d   : > { %9684 = vmatprep.mubr.msk.f32.mxu0 %vm1161_vm0, %v6950_v17  ;;  %v1151_v17 = vld [vmem:[%s11421_s26 + $0x1b0] sm:$0xff] }
 0xb40   : > { %9685 = vmatmul.mubr.msk.f32.vlgmr.msra.gmra.mrb[84].mxu0 %vm1161_vm0, %v6952_v59 }
 0xb41   : > { %10164 = vmatpush3.bf16.xpose.msk.msra.mxu0 %vm11665_vm1, %v10159_v60  ;;  %9698 = vmatprep.mubr.msk.f32.mxu0 %vm1161_vm0, %v7132_v19 }
 0xb42   : > { %v9651_v15 = vpop.f32.mrb[86].mxu1 }
 0xb43   : > { %v12965_v44 = vadd.f32 %v9651_v15, %v1146_v1  ;;  %v6576_v34 = vpop.f32.mrb[87].mxu1 }
 0xb44   : > { %v6577_v51 = vadd.f32 %v6576_v34, %v1145_v10 }
 0xb45   : > { %v7225_v23 = vsel %vm1858_vm2, %v12965_v44, -inf }
 0xb46   : > { %7226 = vmax.xlane.f32.xlu1 %v7225_v23  ;;  %v7222_v40 = vsel %vm1858_vm2, %v6577_v51, -inf }
 0xb47   : > { %7223 = vmax.xlane.f32.xlu0 %v7222_v40 }
 0xb48   : > { %9699 = vmatmul.mubr.msk.f32.vlgmr.msra.gmra.mrb[86].mxu0 %vm1161_vm0, %v7134_v16 }
 0xb4a   : > { %v9658_v24 = vpop.f32.mrb[88].mxu1 }
 0xb4b   : > { %v12973_v36 = vadd.f32 %v9658_v24, %v1148_v12  ;;  %v6667_v45 = vpop.f32.mrb[89].mxu1 }
 0xb4c   : > { %v12975_v62 = vadd.f32 %v6667_v45, %v1147_v30 }
 0xb4d   : > { %v7231_v46 = vsel %vm1858_vm2, %v12973_v36, -inf }
 0xb4e   : > { %7232 = vmax.xlane.f32.xlu0 %v7231_v46  ;;  %v7228_v7 = vsel %vm1858_vm2, %v12975_v62, -inf }
 0xb52   : > { %v9665_v43 = vpop.f32.mrb[90].mxu1  ;;  %7229 = vmax.xlane.f32.xlu0 %v7228_v7 }
 0xb53   : > { %v12983_v52 = vadd.f32 %v9665_v43, %v1150_v2  ;;  %v6758_v32 = vpop.f32.mrb[91].mxu1 }
 0xb54   : > { %v12985_v50 = vadd.f32 %v6758_v32, %v1149_v14 }
 0xb55   : > { %v7237_v55 = vsel %vm1858_vm2, %v12983_v52, -inf }
 0xb56   : > { %7238 = vmax.xlane.f32.xlu1 %v7237_v55  ;;  %v7234_v11 = vsel %vm1858_vm2, %v12985_v50, -inf }
 0xb57   : > { %7235 = vmax.xlane.f32.xlu0 %v7234_v11 }
 0xb5a   : > { %v9672_v47 = vpop.f32.mrb[92].mxu1 }
 0xb5b   : > { %v12993_v38 = vadd.f32 %v9672_v47, %v1152_v37  ;;  %v6849_v59 = vpop.f32.mrb[93].mxu1 }
 0xb5c   : > { %v12995_v57 = vadd.f32 %v6849_v59, %v1151_v17  ;;  %v1156_v17 = vld [vmem:[%s11421_s26 + $0x1d8] sm:$0xff] }
 0xb5d   : > { %v7243_v28 = vsel %vm1858_vm2, %v12993_v38, -inf }
 0xb5e   : > { %7244 = vmax.xlane.f32.xlu1 %v7243_v28  ;;  %v7240_v0 = vsel %vm1858_vm2, %v12995_v57, -inf  ;;  %v1155_v28 = vld [vmem:[%s11421_s26 + $0x1d0] sm:$0xff] }
 0xb5f   : > { %7241 = vmax.xlane.f32.xlu0 %v7240_v0 }
 0xb62   : > { %v9679_v60 = vpop.f32.mrb[94].mxu1 }
 0xb63   : > { %v13003_v8 = vadd.f32 %v9679_v60, %v1154_v20  ;;  %v6940_v41 = vpop.f32.mrb[95].mxu1 }
 0xb64   : > { %v13005_v61 = vadd.f32 %v6940_v41, %v1153_v22 }
 0xb65   : > { %v7249_v35 = vsel %vm1858_vm2, %v13003_v8, -inf }
 0xb66   : > { %7250 = vmax.xlane.f32.xlu1 %v7249_v35  ;;  %v7246_v4 = vsel %vm1858_vm2, %v13005_v61, -inf }
 0xb67   : > { %7247 = vmax.xlane.f32.xlu0 %v7246_v4 }
 0xb6a   : > { %v9693_v54 = vpop.f32.mrb[96].mxu1 }
 0xb6b   : > { %v13013_v6 = vadd.f32 %v9693_v54, %v1158_v5  ;;  %v7122_v27 = vpop.f32.mrb[97].mxu1 }
 0xb6c   : > { %v13015_v56 = vadd.f32 %v7122_v27, %v1157_v25  ;;  %v1160_v27 = vld [vmem:[%s11421_s26 + $0x1f8] sm:$0xff] }
 0xb6d   : > { %v7261_v48 = vsel %vm1858_vm2, %v13013_v6, -inf }
 0xb6e   : > { %7262 = vmax.xlane.f32.xlu1 %v7261_v48  ;;  %v7258_v18 = vsel %vm1858_vm2, %v13015_v56, -inf }
 0xb6f   : > { %7259 = vmax.xlane.f32.xlu0 %v7258_v18 }
 0xbd3   : > { %v7227_v63 = vpop.xlane.xlu1 %7226 }
 0xbd4   : > { %v7271_v19 = vsub.f32 %v12965_v44, %v7227_v63  ;;  %v7224_v1 = vpop.xlane.xlu0 %7223  ;;  %v1159_v63 = vld [vmem:[%s11421_s26 + $0x1f0] sm:$0xff]  ;;  %s13443_s26 = sld [smem:[#allocation21_spill]] }
 0xbd5   : > { %v7270_v10 = vsub.f32 %v6577_v51, %v7224_v1 }
 0xbd6   : > { %v7288_v15 = vmul.f32 1.442695, %v7271_v19 }
 0xbd7   : > { %v7286_v34 = vmul.f32 1.442695, %v7270_v10 }
 0xbd8   : > { %10834 = vpow2.f32 %v7288_v15 }
 0xbd9   : > { %10836 = vpow2.f32 %v7286_v34 }
 0xbda   : > { %p13445_p12 = scmp.ne.s32.totalorder %s13443_s26, 0 }
 0xbdb   : > { %v7233_v24 = vpop.xlane.xlu0 %7232 }
 0xbdc   : > { %v7273_v51 = vsub.f32 %v12973_v36, %v7233_v24  ;;  %p11000_p0 = pnand %p10999_p10, %p13445_p12 }
 0xbde   : > { %v7292_v45 = vmul.f32 1.442695, %v7273_v51  ;;  %p11001_p13 = pneg %p11000_p0 }
 0xbdf   : > { %v7230_v44 = vpop.xlane.xlu0 %7229 }
 0xbe0   : > { %v7272_v30 = vsub.f32 %v12975_v62, %v7230_v44  ;;  %10838 = vpow2.f32 %v7292_v45 }
 0xbe2   : > { %v13022_v23 = vpop.eup %10834  ;;  %v7290_v46 = vmul.f32 1.442695, %v7272_v30 }
 0xbe3   : > { %v13024_v40 = vpop.eup %10836  ;;  %v7321_v16 = vsel %vm1858_vm2, %v13022_v23, 0.0  ;;  %v7239_v2 = vpop.xlane.xlu1 %7238 }
 0xbe4   : > { %7322 = vadd.xlane.f32.xlu1 %v7321_v16  ;;  %v7318_v12 = vsel %vm1858_vm2, %v13024_v40, 0.0  ;;  %v7236_v7 = vpop.xlane.xlu0 %7235  ;;  %v7275_v14 = vsub.f32 %v12983_v52, %v7239_v2  ;;  %10840 = vpow2.f32 %v7290_v46 }
 0xbe5   : > { %7319 = vadd.xlane.f32.xlu0 %v7318_v12  ;;  %v7274_v43 = vsub.f32 %v12985_v50, %v7236_v7 }
 0xbe6   : > { %v7296_v11 = vmul.f32 1.442695, %v7275_v14 }
 0xbe7   : > { %v7294_v36 = vmul.f32 1.442695, %v7274_v43 }
 0xbe8   : > { %10842 = vpow2.f32 %v7296_v11 }
 0xbe9   : > { %10844 = vpow2.f32 %v7294_v36 }
 0xbea   : > { %v13046_v4 = vpop.eup %10838 }
 0xbeb   : > { %v7245_v32 = vpop.xlane.xlu1 %7244  ;;  %v7327_v18 = vsel %vm1858_vm2, %v13046_v4, 0.0 }
 0xbec   : > { %v7242_v55 = vpop.xlane.xlu0 %7241  ;;  %v7277_v37 = vsub.f32 %v12993_v38, %v7245_v32 }
 0xbed   : > { %v7276_v62 = vsub.f32 %v12995_v57, %v7242_v55 }
 0xbee   : > { %v7300_v52 = vmul.f32 1.442695, %v7277_v37  ;;  %v13050_v25 = vpop.eup %10840 }
 0xbef   : > { %v7298_v38 = vmul.f32 1.442695, %v7276_v62  ;;  %v7324_v1 = vsel %vm1858_vm2, %v13050_v25, 0.0 }
 0xbf0   : > { %10846 = vpow2.f32 %v7300_v52 }
 0xbf1   : > { %10848 = vpow2.f32 %v7298_v38 }
 0xbf2   : > { %v13064_v24 = vpop.eup %10842 }
 0xbf3   : > { %v7251_v47 = vpop.xlane.xlu1 %7250  ;;  %v13067_v51 = vpop.eup %10844  ;;  %v7333_v45 = vsel %vm1858_vm2, %v13064_v24, 0.0 }
 0xbf4   : > { %v7248_v59 = vpop.xlane.xlu0 %7247  ;;  %v7279_v50 = vsub.f32 %v13003_v8, %v7251_v47  ;;  %v7330_v46 = vsel %vm1858_vm2, %v13067_v51, 0.0  ;;  %v13437_v47 = vld [vmem:[#allocation24_spill] sm:$0xff] }
 0xbf5   : > { %v7278_v41 = vsub.f32 %v13005_v61, %v7248_v59  ;;  %v13438_v59 = vld [vmem:[#allocation25_spill] sm:$0xff] }
 0xbf6   : > { %v7304_v8 = vmul.f32 1.442695, %v7279_v50 }
 0xbf7   : > { %v7302_v61 = vmul.f32 1.442695, %v7278_v41 }
 0xbf8   : > { %10850 = vpow2.f32 %v7304_v8 }
 0xbf9   : > { %10852 = vpow2.f32 %v7302_v61 }
 0xbfb   : > { %v7263_v48 = vpop.xlane.xlu1 %7262 }
 0xbfc   : > { %v7260_v57 = vpop.xlane.xlu0 %7259 }
 0xbfd   : > { %v7282_v54 = vsub.f32 %v13015_v56, %v7260_v57  ;;  %v7283_v56 = vsub.f32 %v13013_v6, %v7263_v48  ;;  %v13071_v6 = vpop.eup %10846 }
 0xbfe   : > { %v13075_v2 = vpop.eup %10848  ;;  %v7339_v7 = vsel %vm1858_vm2, %v13071_v6, 0.0 }
 0xbff   : > { %v7310_v34 = vmul.f32 1.442695, %v7282_v54  ;;  %v7312_v30 = vmul.f32 1.442695, %v7283_v56  ;;  %v7336_v43 = vsel %vm1858_vm2, %v13075_v2, 0.0 }
 0xc01   : > { %10854 = vpow2.f32 %v7310_v34 }
 0xc02   : > { %10856 = vpow2.f32 %v7312_v30  ;;  %v13079_v14 = vpop.eup %10850 }
 0xc03   : > { %v13083_v32 = vpop.eup %10852  ;;  %v7345_v55 = vsel %vm1858_vm2, %v13079_v14, 0.0 }
 0xc04   : > { %v7342_v37 = vsel %vm1858_vm2, %v13083_v32, 0.0 }
 0xc0b   : > { %v13087_v11 = vpop.eup %10854 }
 0xc0c   : > { %v13093_v36 = vpop.eup %10856 }
 0xc0d   : > { %v7357_v62 = vsel %vm1858_vm2, %v13093_v36, 0.0 }
 0xc13   : > { %v9686_v0 = vpop.f32.mrb[84].mxu0 }
 0xc14   : > { %v13038_v20 = vadd.f32 %v9686_v0, %v1156_v17  ;;  %v7031_v22 = vpop.f32.mrb[85].mxu0  ;;  %v7354_v17 = vsel %vm1858_vm2, %v13087_v11, 0.0  ;;  %v13440_v0 = vld [vmem:[#allocation28_spill] sm:$0xff] }
 0xc15   : > { %v13041_v60 = vadd.f32 %v7031_v22, %v1155_v28  ;;  %v13439_v28 = vld [vmem:[#allocation26_spill] sm:$0xff] }
 0xc16   : > { %v7255_v35 = vsel %vm1858_vm2, %v13038_v20, -inf }
 0xc17   : > { %7256 = vmax.xlane.f32.xlu1 %v7255_v35  ;;  %v7252_v5 = vsel %vm1858_vm2, %v13041_v60, -inf }
 0xc18   : > { %7253 = vmax.xlane.f32.xlu0 %v7252_v5 }
 0xc1b   : > { %v9700_v19 = vpop.f32.mrb[86].mxu0  ;;  %7328 = vadd.xlane.f32.xlu1 %v7327_v18 }
 0xc1c   : > { %v13059_v10 = vadd.f32 %v9700_v19, %v1160_v27  ;;  %v7213_v15 = vpop.f32.mrb[87].mxu0  ;;  %7325 = vadd.xlane.f32.xlu0 %v7324_v1 }
 0xc1d   : > { %v7214_v16 = vadd.f32 %v7213_v15, %v1159_v63 }
 0xc1e   : > { %v7267_v12 = vsel %vm1858_vm2, %v13059_v10, -inf }
 0xc1f   : > { %7268 = vmax.xlane.f32.xlu1 %v7267_v12  ;;  %v7264_v44 = vsel %vm1858_vm2, %v7214_v16, -inf }
 0xc20   : > { %7265 = vmax.xlane.f32.xlu0 %v7264_v44 }
 0xc23   : > { %7334 = vadd.xlane.f32.xlu1 %v7333_v45 }
 0xc24   : > { %7331 = vadd.xlane.f32.xlu0 %v7330_v46 }
 0xc27   : > { %7340 = vadd.xlane.f32.xlu1 %v7339_v7 }
 0xc28   : > { %7337 = vadd.xlane.f32.xlu0 %v7336_v43 }
 0xc2b   : > { %7346 = vadd.xlane.f32.xlu1 %v7345_v55 }
 0xc2c   : > { %7343 = vadd.xlane.f32.xlu0 %v7342_v37 }
 0xc2f   : > { %7355 = vadd.xlane.f32.xlu1 %v7354_v17 }
 0xc33   : > { %7358 = vadd.xlane.f32.xlu1 %v7357_v62 }
 0xc42   : > { %10571 = vrot.lane.b32.xlu0 %v13437_v47, %s11116_s6 }
 0xc44   : > { %10576 = vrot.lane.b32.xlu1 %v13438_v59, %s11116_s6 }
 0xc46   : > { %10581 = vrot.lane.b32.xlu0 %v13439_v28, %s11116_s6 }
 0xc48   : > { %10586 = vrot.lane.b32.xlu1 %v13440_v0, %s11116_s6 }
 0xc4a   : > { %10591 = vrot.lane.b32.xlu0 %v13430_v53, %s11116_s6 }
 0xc4c   : > { %10596 = vrot.lane.b32.xlu1 %v13429_v9, %s11116_s6 }
 0xc71   : > { %v7323_v38 = vpop.xlane.xlu1 %7322 }
 0xc72   : > { %v7320_v22 = vpop.xlane.xlu0 %7319 }
 0xc73   : > { %10858 = vrcp.f32 %v7320_v22 }
 0xc7d   : > { %v10859_v52 = vpop.eup %10858 }
 0xc7e   : > { %v7382_v50 = vmul.f32 %v10859_v52, %v13024_v40 }
 0xc80   : > { %9705 = vmatprep.mubr.msk.f32.mxu1 %vm1858_vm2, %v7382_v50 }
 0xca4   : > { %v7257_v41 = vpop.xlane.xlu1 %7256 }
 0xca5   : > { %v7281_v57 = vsub.f32 %v13038_v20, %v7257_v41  ;;  %v7254_v35 = vpop.xlane.xlu0 %7253 }
 0xca6   : > { %v7280_v5 = vsub.f32 %v13041_v60, %v7254_v35 }
 0xca7   : > { %v7308_v8 = vmul.f32 1.442695, %v7281_v57 }
 0xca8   : > { %v7306_v54 = vmul.f32 1.442695, %v7280_v5  ;;  %v7329_v53 = vpop.xlane.xlu1 %7328 }
 0xca9   : > { %10860 = vpow2.f32 %v7308_v8  ;;  %v7326_v27 = vpop.xlane.xlu0 %7325 }
 0xcaa   : > { %10862 = vpow2.f32 %v7306_v54 }
 0xcab   : > { %10864 = vrcp.f32 %v7326_v27 }
 0xcac   : > { %v7269_v9 = vpop.xlane.xlu1 %7268 }
 0xcad   : > { %v7285_v61 = vsub.f32 %v13059_v10, %v7269_v9  ;;  %v7266_v40 = vpop.xlane.xlu0 %7265 }
 0xcae   : > { %v7284_v48 = vsub.f32 %v7214_v16, %v7266_v40 }
 0xcaf   : > { %v7316_v18 = vmul.f32 1.442695, %v7285_v61 }
 0xcb0   : > { %v7314_v63 = vmul.f32 1.442695, %v7284_v48  ;;  %v7335_v19 = vpop.xlane.xlu1 %7334 }
 0xcb1   : > { %10866 = vpow2.f32 %v7316_v18  ;;  %v7332_v20 = vpop.xlane.xlu0 %7331 }
 0xcb2   : > { %10868 = vpow2.f32 %v7314_v63 }
 0xcb3   : > { %v13114_v1 = vpop.eup %10860  ;;  %10870 = vrcp.f32 %v7323_v38 }
 0xcb4   : > { %v13116_v60 = vpop.eup %10862  ;;  %v7341_v15 = vpop.xlane.xlu1 %7340  ;;  %v7351_v56 = vsel %vm1858_vm2, %v13114_v1, 0.0  ;;  %10872 = vrcp.f32 %v7332_v20 }
 0xcb5   : > { %7352 = vadd.xlane.f32.xlu1 %v7351_v56  ;;  %v7338_v34 = vpop.xlane.xlu0 %7337  ;;  %v7348_v10 = vsel %vm1858_vm2, %v13116_v60, 0.0  ;;  %v10865_v16 = vpop.eup %10864  ;;  %10874 = vrcp.f32 %v7335_v19 }
 0xcb6   : > { %7349 = vadd.xlane.f32.xlu0 %v7348_v10  ;;  %v7384_v12 = vmul.f32 %v10865_v16, %v13050_v25 }
 0xcb8   : > { %v7347_v44 = vpop.xlane.xlu1 %7346  ;;  %9712 = vmatprep.mubr.msk.f32.mxu0 %vm1858_vm2, %v7384_v12 }
 0xcb9   : > { %v7344_v30 = vpop.xlane.xlu0 %7343 }
 0xcba   : > { %10876 = vrcp.f32 %v7344_v30 }
 0xcbb   : > { %v13124_v45 = vpop.eup %10866  ;;  %10878 = vrcp.f32 %v7329_v53 }
 0xcbc   : > { %v13126_v46 = vpop.eup %10868  ;;  %v7356_v7 = vpop.xlane.xlu1 %7355  ;;  %v7363_v43 = vsel %vm1858_vm2, %v13124_v45, 0.0  ;;  %10880 = vrcp.f32 %v7338_v34 }
 0xcbd   : > { %7364 = vadd.xlane.f32.xlu1 %v7363_v43  ;;  %v10572_v55 = vpop.permute.xlu0 %10571  ;;  %v7360_v25 = vsel %vm1858_vm2, %v13126_v46, 0.0  ;;  %10882 = vrcp.f32 %v7347_v44  ;;  %v10871_v59 = vpop.eup %10870 }
 0xcbe   : > { %v10574_v37 = vunpack.i.h.bf16 %v10572_v55  ;;  %v10573_v17 = vunpack.i.l.bf16 %v10572_v55  ;;  %7361 = vadd.xlane.f32.xlu0 %v7360_v25  ;;  %10884 = vrcp.f32 %v7356_v7  ;;  %v10873_v0 = vpop.eup %10872  ;;  %v7383_v50 = vmul.f32 %v10871_v59, %v13022_v23 }
 0xcbf   : > { %10886 = vrcp.f32 %v7341_v15  ;;  %v10875_v57 = vpop.eup %10874  ;;  %v7386_v54 = vmul.f32 %v10873_v0, %v13067_v51 }
 0xcc0   : > { %v10165_v62 = vpack.c.bf16 %v10574_v37, %v10573_v17  ;;  %v13132_v47 = vpop.xlane.xlu1 %7358  ;;  %v7387_v23 = vmul.f32 %v10875_v57, %v13064_v24  ;;  %v1093_v37 = vld [vmem:[#allocation7 + $0x60] sm:$0xff]  ;;  %v1094_v17 = vld [vmem:[#allocation7 + $0x68] sm:$0xff] }
 0xcc1   : > { %v10582_v28 = vpop.permute.xlu0 %10581 }
 0xcc2   : > { %v10584_v22 = vunpack.i.h.bf16 %v10582_v28  ;;  %v10583_v52 = vunpack.i.l.bf16 %v10582_v28  ;;  %10166 = vmatprep.subr.bf16.mxu1 %v10165_v62 }
 0xcc3   : > { %10168 = vmatpush3.bf16.msra.mxu1 %v10165_v62 }
 0xcc4   : > { %v10173_v38 = vpack.c.bf16 %v10584_v22, %v10583_v52  ;;  %v10577_v41 = vpop.permute.xlu1 %10576  ;;  %v10877_v53 = vpop.eup %10876 }
 0xcc5   : > { %v10579_v35 = vunpack.i.h.bf16 %v10577_v41  ;;  %v10578_v5 = vunpack.i.l.bf16 %v10577_v41  ;;  %v10592_v8 = vpop.permute.xlu0 %10591  ;;  %v10879_v40 = vpop.eup %10878  ;;  %v7390_v51 = vmul.f32 %v10877_v53, %v13083_v32 }
 0xcc6   : > { %v10594_v27 = vunpack.i.h.bf16 %v10592_v8  ;;  %v10593_v9 = vunpack.i.l.bf16 %v10592_v8  ;;  %9706 = vmatmul.mubr.msk.f32.vlgmr.msra.gmra.mrb[98].mxu1 %vm1858_vm2, %v7383_v50  ;;  %10174 = vmatprep.subr.bf16.mxu1 %v10173_v38  ;;  %v10881_v63 = vpop.eup %10880  ;;  %v7385_v34 = vmul.f32 %v10879_v40, %v13046_v4 }
 0xcc7   : > { %v10169_v61 = vpack.c.bf16 %v10579_v35, %v10578_v5  ;;  %10176 = vmatpush3.bf16.msra.mxu1 %v10173_v38  ;;  %9719 = vmatprep.mubr.msk.f32.mxu1 %vm1858_vm2, %v7386_v54  ;;  %v10883_v15 = vpop.eup %10882  ;;  %v7388_v32 = vmul.f32 %v10881_v63, %v13075_v2  ;;  %v1095_v35 = vld [vmem:[#allocation7 + $0x70] sm:$0xff] }
 0xcc8   : > { %v10181_v48 = vpack.c.bf16 %v10594_v27, %v10593_v9  ;;  %v10587_v18 = vpop.permute.xlu1 %10586  ;;  %v10885_v56 = vpop.eup %10884  ;;  %v7391_v12 = vmul.f32 %v10883_v15, %v13079_v14 }
 0xcc9   : > { %v10589_v19 = vunpack.i.h.bf16 %v10587_v18  ;;  %v10588_v20 = vunpack.i.l.bf16 %v10587_v18  ;;  %10170 = vmatprep.subr.bf16.mxu0 %v10169_v61  ;;  %v10887_v24 = vpop.eup %10886  ;;  %v7394_v4 = vmul.f32 %v10885_v56, %v13087_v11 }
 0xcca   : > { %10172 = vmatpush3.bf16.msra.mxu0 %v10169_v61  ;;  %9720 = vmatmul.mubr.msk.f32.vlgmr.msra.gmra.mrb[100].mxu1 %vm1858_vm2, %v7387_v23  ;;  %v7389_v7 = vmul.f32 %v10887_v24, %v13071_v6  ;;  %v10898_v24 = vld [vmem:[%s11410_s15 + $0x8] sm:$0xff] }
 0xccb   : > { %v10177_v10 = vpack.c.bf16 %v10589_v19, %v10588_v20  ;;  %10182 = vmatprep.subr.bf16.mxu1 %v10181_v48  ;;  %9733 = vmatprep.mubr.msk.f32.mxu1 %vm1858_vm2, %v7390_v51 }
 0xccc   : > { %10184 = vmatpush3.bf16.msra.mxu1 %v10181_v48  ;;  %v10597_v16 = vpop.permute.xlu1 %10596 }
 0xccd   : > { %v10599_v44 = vunpack.i.h.bf16 %v10597_v16  ;;  %v10598_v30 = vunpack.i.l.bf16 %v10597_v16  ;;  %9713 = vmatmul.mubr.msk.f32.vlgmr.msra.gmra.mrb[88].mxu0 %vm1858_vm2, %v7385_v34  ;;  %10178 = vmatprep.subr.bf16.mxu0 %v10177_v10 }
 0xcce   : > { %10606 = vrot.lane.b32.xlu1 %v11778_v39, %s11116_s6  ;;  %10180 = vmatpush3.bf16.msra.mxu0 %v10177_v10  ;;  %v13186_v10 = vld [vmem:[%s13441_s20] ss:$0 sm:$0xff] }
 0xccf   : > { %v10185_v43 = vpack.c.bf16 %v10599_v44, %v10598_v30  ;;  %9726 = vmatprep.mubr.msk.f32.mxu0 %vm1858_vm2, %v7388_v32  ;;  %9734 = vmatmul.mubr.msk.f32.vlgmr.msra.gmra.mrb[102].mxu1 %vm1858_vm2, %v7391_v12  ;;  %v10899_v44 = vld [vmem:[%s11410_s15] sm:$0xff] }
 0xcd0   : > { %9747 = vmatprep.mubr.msk.f32.mxu1 %vm1858_vm2, %v7394_v4 }
 0xcd1   : > { %9727 = vmatmul.mubr.msk.f32.vlgmr.msra.gmra.mrb[90].mxu0 %vm1858_vm2, %v7389_v7  ;;  %10186 = vmatprep.subr.bf16.mxu0 %v10185_v43 }
 0xcd2   : > { %10188 = vmatpush3.bf16.msra.mxu0 %v10185_v43  ;;  %v10900_v43 = vld [vmem:[%s11410_s15 + $0x18] sm:$0xff] }
 0xcd4   : > { %10601 = vrot.lane.b32.xlu0 %v13413_v21, %s11116_s6 }
 0xd42   : > { %v7353_v39 = vpop.xlane.xlu1 %7352 }
 0xd43   : > { %10888 = vrcp.f32 %v7353_v39  ;;  %v7350_v2 = vpop.xlane.xlu0 %7349 }
 0xd44   : > { %10890 = vrcp.f32 %v7350_v2 }
 0xd45   : > { %10892 = vrcp.f32 %v13132_v47  ;;  %v10197_v47 = vpack.c.bf16 %v1094_v17, %v1093_v37  ;;  %v10902_v37 = vld [vmem:[%s11410_s15 + $0x28] sm:$0xff] }
 0xd4a   : > { %v7365_v6 = vpop.xlane.xlu1 %7364 }
 0xd4b   : > { %10894 = vrcp.f32 %v7365_v6  ;;  %v7362_v14 = vpop.xlane.xlu0 %7361  ;;  %v10901_v6 = vld [vmem:[%s11410_s15 + $0x10] sm:$0xff] }
 0xd4c   : > { %10896 = vrcp.f32 %v7362_v14 }
 0xd4d   : > { %v10889_v11 = vpop.eup %10888 }
 0xd4e   : > { %v10891_v55 = vpop.eup %10890  ;;  %v10607_v25 = vpop.permute.xlu1 %10606  ;;  %v7393_v0 = vmul.f32 %v10889_v11, %v13114_v1 }
 0xd4f   : > { %v10609_v62 = vunpack.i.h.bf16 %v10607_v25  ;;  %v10608_v59 = vunpack.i.l.bf16 %v10607_v25  ;;  %v10602_v28 = vpop.permute.xlu0 %10601  ;;  %v7392_v21 = vmul.f32 %v10891_v55, %v13116_v60  ;;  %v10893_v41 = vpop.eup %10892  ;;  %v1096_v60 = vld [vmem:[#allocation7 + $0x78] sm:$0xff] }
 0xd50   : > { %v10604_v22 = vunpack.i.h.bf16 %v10602_v28  ;;  %v10603_v52 = vunpack.i.l.bf16 %v10602_v28  ;;  %v7395_v1 = vmul.f32 %v10893_v41, %v13093_v36  ;;  %v10201_v53 = vpack.c.bf16 %v1096_v60, %v1095_v35 }
 0xd51   : > { %v10193_v50 = vpack.c.bf16 %v10609_v62, %v10608_v59  ;;  %9740 = vmatprep.mubr.msk.f32.mxu0 %vm1858_vm2, %v7392_v21  ;;  %v10903_v59 = vld [vmem:[%s11410_s15 + $0x20] sm:$0xff] }
 0xd52   : > { %v10189_v38 = vpack.c.bf16 %v10604_v22, %v10603_v52  ;;  %9741 = vmatmul.mubr.msk.f32.vlgmr.msra.gmra.mrb[92].mxu0 %vm1858_vm2, %v7393_v0 }
 0xd53   : > { %10194 = vmatprep.subr.bf16.mxu0 %v10193_v50 }
 0xd54   : > { %10190 = vmatprep.subr.bf16.mxu1 %v10189_v38  ;;  %10196 = vmatpush3.bf16.msra.mxu0 %v10193_v50 }
 0xd55   : > { %v10895_v57 = vpop.eup %10894  ;;  %10192 = vmatpush3.bf16.msra.mxu1 %v10189_v38  ;;  %10198 = vmatprep.subr.bf16.mxu0 %v10197_v47  ;;  %v10904_v38 = vld [vmem:[%s11410_s15 + $0x38] sm:$0xff] }
 0xd56   : > { %v10897_v5 = vpop.eup %10896  ;;  %v7397_v54 = vmul.f32 %v10895_v57, %v13124_v45  ;;  %v10905_v57 = vld [vmem:[%s11410_s15 + $0x30] sm:$0xff] }
 0xd57   : > { %v7396_v8 = vmul.f32 %v10897_v5, %v13126_v46 }
 0xd58   : > { %9748 = vmatmul.mubr.msk.f32.vlgmr.msra.gmra.mrb[104].mxu1 %vm1858_vm2, %v7395_v1 }
 0xd59   : > { %9754 = vmatprep.mubr.msk.f32.mxu0 %vm1858_vm2, %v7396_v8 }
 0xd5a   : > { %9755 = vmatmul.mubr.msk.f32.vlgmr.msra.gmra.mrb[94].mxu0 %vm1858_vm2, %v7397_v54 }
 0xd5b   : > { %10200 = vmatpush3.bf16.msra.mxu0 %v10197_v47 }
 0xd5c   : > { %10202 = vmatprep.subr.bf16.mxu0 %v10201_v53 }
 0xd5f   : > { %10204 = vmatpush3.bf16.msra.mxu0 %v10201_v53 }
 0xd99   : > { %v9707_v27 = vpop.f32.mrb[98].mxu1 }
 0xd9a   : > { %v7476_v9 = vpop.f32.mrb[99].mxu1 }
 0xd9b   : > { %9765 = vmatprep.mubr.msk.f32.mxu0 %vm1161_vm0, %v7476_v9 }
 0xd9c   : > { %9766 = vmatmul.mubr.msk.f32.vlgmr.msra.gmra.mrb[60].mxu0 %vm1161_vm0, %v9707_v27  ;;  %v10907_v27 = vld [vmem:[%s11410_s15 + $0x40] sm:$0xff] }
 0xd9d   : > { %v9721_v36 = vpop.f32.mrb[100].mxu1 }
 0xd9e   : > { %v7650_v46 = vpop.f32.mrb[101].mxu1 }
 0xda0   : > { %v9714_v61 = vpop.f32.mrb[88].mxu0 }
 0xda1   : > { %v7563_v45 = vpop.f32.mrb[89].mxu0 }
 0xda2   : > { %v9735_v40 = vpop.f32.mrb[102].mxu1  ;;  %9768 = vmatprep.mubr.msk.f32.mxu0 %vm1161_vm0, %v7563_v45 }
 0xda3   : > { %v7824_v23 = vpop.f32.mrb[103].mxu1  ;;  %9769 = vmatmul.mubr.msk.f32.gmra.mrb[62].mxu0 %vm1161_vm0, %v9714_v61 }
 0xda4   : > { %v9728_v48 = vpop.f32.mrb[90].mxu0  ;;  %9771 = vmatprep.mubr.msk.f32.mxu0 %vm1161_vm0, %v7650_v46 }
 0xda5   : > { %v7737_v18 = vpop.f32.mrb[91].mxu0 }
 0xda7   : > { %9772 = vmatmul.mubr.msk.f32.gmra.mrb[64].mxu0 %vm1161_vm0, %v9721_v36 }
 0xda8   : > { %9774 = vmatprep.mubr.msk.f32.mxu0 %vm1161_vm0, %v7737_v18 }
 0xdab   : > { %9775 = vmatmul.mubr.msk.f32.gmra.mrb[66].mxu0 %vm1161_vm0, %v9728_v48  ;;  %v10909_v48 = vld [vmem:[%s11410_s15 + $0x50] sm:$0xff] }
 0xdac   : > { %9777 = vmatprep.mubr.msk.f32.mxu0 %vm1161_vm0, %v7824_v23 }
 0xdaf   : > { %9778 = vmatmul.mubr.msk.f32.gmra.mrb[68].mxu0 %vm1161_vm0, %v9735_v40  ;;  %v10908_v40 = vld [vmem:[%s11410_s15 + $0x58] sm:$0xff] }
 0xe25   : > { %v9742_v63 = vpop.f32.mrb[92].mxu0 }
 0xe26   : > { %v7911_v19 = vpop.f32.mrb[93].mxu0 }
 0xe27   : > { %9780 = vmatprep.mubr.msk.f32.mxu0 %vm1161_vm0, %v7911_v19 }
 0xe28   : > { %9781 = vmatmul.mubr.msk.f32.gmra.mrb[70].mxu0 %vm1161_vm0, %v9742_v63 }
 0xe2b   : > { %v9749_v20 = vpop.f32.mrb[104].mxu1 }
 0xe2c   : > { %v7998_v51 = vpop.f32.mrb[105].mxu1 }
 0xe2d   : > { %v9756_v15 = vpop.f32.mrb[94].mxu0  ;;  %9783 = vmatprep.mubr.msk.f32.mxu0 %vm1161_vm0, %v7998_v51 }
 0xe2e   : > { %v8085_v56 = vpop.f32.mrb[95].mxu0  ;;  %9784 = vmatmul.mubr.msk.f32.gmra.mrb[72].mxu0 %vm1161_vm0, %v9749_v20 }
 0xe2f   : > { %9786 = vmatprep.mubr.msk.f32.mxu0 %vm1161_vm0, %v8085_v56 }
 0xe32   : > { %9787 = vmatmul.mubr.msk.f32.gmra.mrb[74].mxu0 %vm1161_vm0, %v9756_v15  ;;  %v10910_v15 = vld [vmem:[%s11410_s15 + $0x68] sm:$0xff] }
 0xe6f   : > { %v9767_v34 = vpop.f32.mrb[60].mxu0 }
 0xe70   : > { %v8304_v16 = vadd.f32 %v10898_v24, %v9767_v34  ;;  %v8208_v12 = vpop.f32.mrb[61].mxu0  ;;  %v10911_v34 = vld [vmem:[%s11410_s15 + $0x60] sm:$0xff] }
 0xe71   : > { %v8303_v30 = vadd.f32 %v10899_v44, %v8208_v12 }
 0xe72   : > { %v8327_v32 = vadd.f32 %v13186_v10, %v8304_v16 }
 0xe73   : > { %v8326_v4 = vadd.f32 %v13186_v10, %v8303_v30 }
 0xe74   : > { %8343 = vst [vmem:[%s13194_s13 + $0x8] sm:$0xff] %v8327_v32  ;;  %v13442_v32 = vld [vmem:[#allocation34_spill] sm:$0xff] }
 0xe75   : > { %8342 = vst [vmem:[%s13194_s13] sm:$0xff] %v8326_v4 }
 0xe76   : > { %v9770_v7 = vpop.f32.mrb[62].mxu0 }
 0xe77   : > { %v8306_v39 = vadd.f32 %v10900_v43, %v9770_v7  ;;  %v8218_v2 = vpop.f32.mrb[63].mxu0  ;;  %v10913_v43 = vld [vmem:[%s11410_s15 + $0x70] sm:$0xff] }
 0xe78   : > { %v8305_v14 = vadd.f32 %v10901_v6, %v8218_v2 }
 0xe79   : > { %v8329_v11 = vadd.f32 %v13186_v10, %v8306_v39 }
 0xe7a   : > { %v8328_v55 = vadd.f32 %v13186_v10, %v8305_v14  ;;  %v9773_v25 = vpop.f32.mrb[64].mxu0 }
 0xe7b   : > { %8345 = vst [vmem:[%s13194_s13 + $0x18] sm:$0xff] %v8329_v11  ;;  %v8308_v17 = vadd.f32 %v10902_v37, %v9773_v25  ;;  %v8228_v62 = vpop.f32.mrb[65].mxu0 }
 0xe7c   : > { %8344 = vst [vmem:[%s13194_s13 + $0x10] sm:$0xff] %v8328_v55  ;;  %v8307_v28 = vadd.f32 %v10903_v59, %v8228_v62 }
 0xe7d   : > { %v8331_v21 = vadd.f32 %v13186_v10, %v8308_v17 }
 0xe7e   : > { %v8330_v0 = vadd.f32 %v13186_v10, %v8307_v28  ;;  %v9776_v22 = vpop.f32.mrb[66].mxu0 }
 0xe7f   : > { %8347 = vst [vmem:[%s13194_s13 + $0x28] sm:$0xff] %v8331_v21  ;;  %v10209_v52 = vadd.f32 %v9776_v22, %v12630_v29  ;;  %v8238_v50 = vpop.f32.mrb[67].mxu0 }
 0xe80   : > { %8346 = vst [vmem:[%s13194_s13 + $0x20] sm:$0xff] %v8330_v0  ;;  %v10210_v47 = vadd.f32 %v8238_v50, %v12632_v33  ;;  %v10906_v33 = vld [vmem:[%s11410_s15 + $0x48] sm:$0xff] }
 0xe81   : > { %v8310_v41 = vadd.f32 %v10904_v38, %v10209_v52 }
 0xe82   : > { %v8309_v35 = vadd.f32 %v10905_v57, %v10210_v47  ;;  %v9779_v60 = vpop.f32.mrb[68].mxu0 }
 0xe83   : > { %v8333_v5 = vadd.f32 %v13186_v10, %v8310_v41  ;;  %v10211_v1 = vadd.f32 %v9779_v60, %v12634_v13  ;;  %v8248_v8 = vpop.f32.mrb[69].mxu0 }
 0xe84   : > { %v8332_v29 = vadd.f32 %v13186_v10, %v8309_v35  ;;  %v10212_v54 = vadd.f32 %v8248_v8, %v12636_v26 }
 0xe85   : > { %8349 = vst [vmem:[%s13194_s13 + $0x38] sm:$0xff] %v8333_v5  ;;  %v8312_v53 = vadd.f32 %v10906_v33, %v10211_v1 }
 0xe86   : > { %8348 = vst [vmem:[%s13194_s13 + $0x30] sm:$0xff] %v8332_v29  ;;  %v8311_v9 = vadd.f32 %v10907_v27, %v10212_v54 }
 0xe87   : > { %v8335_v36 = vadd.f32 %v13186_v10, %v8312_v53 }
 0xe88   : > { %v8334_v46 = vadd.f32 %v13186_v10, %v8311_v9 }
 0xe89   : > { %8351 = vst [vmem:[%s13194_s13 + $0x48] sm:$0xff] %v8335_v36 }
 0xe8a   : > { %8350 = vst [vmem:[%s13194_s13 + $0x40] sm:$0xff] %v8334_v46 }
 0xefb   : > { %v9782_v13 = vpop.f32.mrb[70].mxu0 }
 0xefc   : > { %v10213_v61 = vadd.f32 %v9782_v13, %v12638_v31  ;;  %v8258_v26 = vpop.f32.mrb[71].mxu0 }
 0xefd   : > { %v10214_v45 = vadd.f32 %v8258_v26, %v12640_v58 }
 0xefe   : > { %v8314_v23 = vadd.f32 %v10908_v40, %v10213_v61 }
 0xeff   : > { %v8313_v18 = vadd.f32 %v10909_v48, %v10214_v45 }
 0xf00   : > { %v8337_v63 = vadd.f32 %v13186_v10, %v8314_v23 }
 0xf01   : > { %v8336_v19 = vadd.f32 %v13186_v10, %v8313_v18  ;;  %v9785_v20 = vpop.f32.mrb[72].mxu0 }
 0xf02   : > { %8353 = vst [vmem:[%s13194_s13 + $0x58] sm:$0xff] %v8337_v63  ;;  %v10215_v51 = vadd.f32 %v9785_v20, %v12642_v49  ;;  %v8268_v31 = vpop.f32.mrb[73].mxu0 }
 0xf03   : > { %8352 = vst [vmem:[%s13194_s13 + $0x50] sm:$0xff] %v8336_v19  ;;  %v10216_v58 = vadd.f32 %v8268_v31, %v12644_v3  ;;  %v10912_v3 = vld [vmem:[%s11410_s15 + $0x78] sm:$0xff]  ;;  %s11117_s15 = smov [#allocation10]  }
 0xf04   : > { %v8316_v56 = vadd.f32 %v10910_v15, %v10215_v51  ;;  %s11002_s16 = sshll.u32 %s11117_s15, 4  ;;  %s11003_s16 = int_to_ptr.vmem [resolvable:$false] %s11002_s16 }
 0xf05   : > { %v8315_v24 = vadd.f32 %v10911_v34, %v10216_v58  ;;  %v9788_v16 = vpop.f32.mrb[74].mxu0  ;;  %s11004_s25 = scalar_lea.vmem %s11003_s16, 4096  ;;  %p11005_p6 = scmp.lt.s32.totalorder %s13254_s2, %s11003_s16 }
 0xf06   : > { %v8339_v12 = vadd.f32 %v13186_v10, %v8316_v56  ;;  %v10217_v44 = vadd.f32 %v9788_v16, %v12646_v42  ;;  %v8278_v30 = vpop.f32.mrb[75].mxu0  ;;  %p11006_p7 = scmp.lt.s32.totalorder %s11004_s25, %s10998_s27 }
 0xf07   : > { %v8338_v49 = vadd.f32 %v13186_v10, %v8315_v24  ;;  %v10218_v4 = vadd.f32 %v8278_v30, %v13442_v32 }
 0xf08   : > { %8355 = vst [vmem:[%s13194_s13 + $0x68] sm:$0xff] %v8339_v12  ;;  %v8318_v7 = vadd.f32 %v10912_v3, %v10217_v44  ;;  %p11007_p4 = por %p11006_p7, %p11005_p6 }
 0xf09   : > { %8354 = vst [vmem:[%s13194_s13 + $0x60] sm:$0xff] %v8338_v49  ;;  %v8317_v39 = vadd.f32 %v10913_v43, %v10218_v4 }
 0xf0a   : > { %v8341_v2 = vadd.f32 %v13186_v10, %v8318_v7  ;;  %p11008_p11 = pnand %p11007_p4, %p11001_p13 }
 0xf0b   : > { %v8340_v42 = vadd.f32 %v13186_v10, %v8317_v39 }
 0xf0c   : > { %8357 = vst [vmem:[%s13194_s13 + $0x78] sm:$0xff] %v8341_v2 }
 0xf0d   : > { %8356 = vst [vmem:[%s13194_s13 + $0x70] sm:$0xff] %v8340_v42 }
 0xf0e   : > { %11011 = shalt.err (!%p11008_p11)
}
 0xf0f   : > { %s11012_s21 = scalar_lea.hbm %s13252_s24, 2048  ;;  %s11016_s6 = scalar_lea.hbm %s13444_s17, 8192 }
 0xf10   : > { %p11013_p5 = scmp.ne.s32.totalorder %s13252_s24, %s11012_s21  ;;  %p11017_p9 = scmp.lt.u32.totalorder %s13252_s24, %s13444_s17 }
 0xf11   : > { %p11018_p3 = scmp.lt.u32.totalorder %s11016_s6, %s11012_s21  ;;  %p11020_p10 = scmp.lt.u32.totalorder %s11012_s21, %s13252_s24 }
 0xf12   : > { %p11014_p2 = pnand %p11013_p5, %p13445_p12 }
 0xf13   : > { %p11019_p8 = por %p11018_p3, %p11017_p9 }
 0xf14   : > { %p11015_p1 = pneg %p11014_p2 }
 0xf15   : > { %p11021_p0 = por %p11020_p10, %p11019_p8 }
 0xf17   : > { %p11022_p13 = pnand %p11021_p0, %p11015_p1 }
 0xf19   : > { %11025 = shalt.err (!%p11022_p13)
}
 0xf1a   : > { %s11118_s20 = smov 128   ;;  %s11119_s13 = smov 8  }
 0xf1b   : > { %10276 = dma.vmem_to_hbm [thread:$0]  (%p13445_p12), %s13254_s2, 2048, %s13252_s24, %s8359_s12, %s11118_s20, %s11118_s20, %s11119_s13  }
 0xf1c PF: > { %s13446_s23 = sld [smem:[#allocation18_spill]]  ;;  %s13447_s19 = sld [smem:[#allocation22_spill]] }
 0xf1d   : > { %p10293_p6 = scmp.ge.s32.totalorder %s11096_s11, 2 }
 0xf22   : > { %s8388_s22 = sand.u32 1, %s13446_s23   ;;  %p13448_p7 = scmp.ne.s32.totalorder %s13447_s19, 0 }
 0xf23   : > { %s8389_s27 = scalar_lea.sflag [#allocation4], %s8388_s22 }
 0xf24   : > { %p10286_p4 = pnand %p10293_p6, %p13448_p7 }
 0xf26   : > { %11067 = dma.done.wait (!%p10286_p4), %s8389_s27, 2048  }
 0xf27   : > { %11069 = vsyncadd (!%p10286_p4), %s8389_s27, 4294965248  ;;  %s13449_s11 = sld [smem:[#allocation19_spill]]  ;;  %s13450_s15 = sld [smem:[#allocation23_spill]] }
 0xf28   : > { %s13451_s26 = sld [smem:[#allocation20_spill]]  ;;  %s13452_s27 = smov %s11076_s28 }
 0xf29   : > { %s13453_s28 = smov %s11080_s29  ;;  %s13455_s30 = smov %s11088_s9 }
 0xf2a   : > { %s13456_s9 = smov %s11092_s10 }
 0xf2d   : > { %p25_p12 = scmp.ge.s32.totalorder %s13449_s11, 6   ;;  %s13454_s29 = smov %s13450_s15 }
 0xf2e   : > { %s13457_s10 = smov %s13451_s26 }
 0xf2f   :  { %27 = sbr.rel (!%p25_p12) target bundleno = 15 (0xf), region = 123 }
 0xf36   :  { %8394 = vsyncpa [#allocation3], 1 }
 0xf37   :  { %8396 = vsyncpa [#allocation3 + $0x1], 1 }
 0xf38   :  { %8397 = vsyncpa [#allocation6], 1 }
 0xf39   :  { %8398 = vsyncpa [#allocation9], 1 }
 0xf3a   :  { %8400 = vsyncpa [#allocation9 + $0x1], 1 }
 0xf3b   :  { %8401 = vsyncpa [#allocation4], 1 }
 0xf3c   :  { %8403 = vsyncpa [#allocation4 + $0x1], 1 }

</bundles_post_ra>
